<compile_context>
chip_gen: v7x
topology: tpu7x:2x2x1
jax: 0.10.0
libtpu: 0.0.40
codegen_flags: <defaults>
</compile_context>

<pallas_src>
import numpy as np
import jax
import jax.numpy as jnp
from jax import lax
from jax.experimental import pallas as pl
from jax.experimental.pallas import tpu as pltpu

EPS = 1e-5


# ---------------------------------------------------------------------------
# Fixed Gaussian / Laplacian kernels (scipy.ndimage semantics, no scipy dep).
# ---------------------------------------------------------------------------
def _reflect(i, n):
    if n == 1:
        return 0
    period = 2 * n
    i = i % period
    return i if i < n else period - 1 - i


def _correlate1d_reflect(x, w):
    n = len(x)
    lw = (len(w) - 1) // 2
    out = np.zeros(n, np.float64)
    for i in range(n):
        out[i] = sum(w[j] * x[_reflect(i + j - lw, n)] for j in range(len(w)))
    return out


def gaussian_spatial_kernel(ksize, sigma, kernelvalue):
    delta = np.zeros(ksize, np.float64)
    delta[(ksize - 1) // 2] = 1.0
    if sigma <= 0:
        r = delta
    else:
        lw = int(4.0 * sigma + 0.5)
        xs = np.arange(-lw, lw + 1, dtype=np.float64)
        w = np.exp(-0.5 * (xs / sigma) ** 2)
        w /= w.sum()
        r = _correlate1d_reflect(delta, w)
    return kernelvalue * np.outer(r, r), r          # 2-D kernel, 1-D taps


def laplacian_spatial_kernel(ksize, kernelvalue):
    delta = np.zeros(ksize, np.float64)
    delta[(ksize - 1) // 2] = 1.0
    dd = _correlate1d_reflect(delta, np.array([1.0, -2.0, 1.0]))
    return kernelvalue * (np.outer(dd, delta) + np.outer(delta, dd))


# ---------------------------------------------------------------------------
# Deterministic parameter construction (shapes mirror EEM.__init__).
# ---------------------------------------------------------------------------
def init_params(key, ch_in, ch_out, reduction):
    ch = ch_out // 2
    cr = ch_out // reduction
    ks = jax.random.split(key, 12)

    def u(k, shape, fan_in):
        b = 1.0 / np.sqrt(fan_in)
        return jax.random.uniform(k, shape, jnp.float32, -b, b)

    p = {}
    p["w1"] = u(ks[0], (ch, ch_in // 2), ch_in // 2)      # conv1: groups=2
    p["b1"] = u(ks[1], (ch,), ch_in // 2)
    p["w2"] = u(ks[2], (ch, ch_in // 2), ch_in // 2)      # conv2: groups=2
    p["b2"] = u(ks[3], (ch,), ch_in // 2)
    p["w3"] = u(ks[4], (ch_out, ch // 2), ch // 2)        # conv3: groups=2
    p["b3"] = u(ks[5], (ch_out,), ch // 2)
    p["a1"] = jnp.full((ch,), 0.05, jnp.float32)          # PReLU inits
    p["a2"] = jnp.full((ch,), 0.05, jnp.float32)
    p["a3"] = jnp.full((ch_out,), 0.01, jnp.float32)
    p["a_out"] = jnp.full((ch_out,), 0.03, jnp.float32)
    p["gn_g"] = 1.0 + 0.1 * jax.random.normal(ks[6], (ch_out,), jnp.float32)
    p["gn_b"] = 0.1 * jax.random.normal(ks[7], (ch_out,), jnp.float32)
    p["s1w1"] = u(ks[8], (cr, ch_out), ch_out)            # SEM1 (bias=False)
    p["s1w2"] = u(ks[9], (ch_out, cr), cr)
    p["s2w1"] = u(ks[10], (cr, ch_out), ch_out)           # SEM2
    p["s2w2"] = u(ks[11], (ch_out, cr), cr)
    return p


def block_diag_left(w, groups):
    """Dense (Cout, Cin) weight for a grouped 1x1 conv weight (Cout, Cin/g)."""
    cout, ipg = w.shape
    og = cout // groups
    full = jnp.zeros((cout, ipg * groups), w.dtype)
    for g in range(groups):
        full = full.at[g * og:(g + 1) * og, g * ipg:(g + 1) * ipg].set(
            w[g * og:(g + 1) * og])
    return full


def group_ones(c, g):
    ids = np.arange(c) // (c // g)
    return jnp.asarray((ids[:, None] == ids[None, :]).astype(np.float32))


# ---------------------------------------------------------------------------
# Pallas forward
# ---------------------------------------------------------------------------
def eem_forward_pallas(x, p, groups, ksize=3, batch_block=None):
    N, cx, H, W = x.shape
    co = p["gn_g"].shape[0]
    assert cx == co, "EEM requires ch_in == ch_out (x + tot sum in forward)"
    assert ksize == 3, "roll-based stencil implemented for kernel_size=3"
    ch = co // 2
    cr = p["s1w1"].shape[0]
    HW = H * W

    # ---- batch blocking heuristic: lane width vs O(B^2) selector cost, and
    # prefer >= 2 grid steps (v7x megacore).  B == 1 additionally removes the
    # NCHW <-> (C, N*HW) wrapper transposes (input/output are free reshapes).
    if batch_block is None:
        B = max(1, min(N, 16, (2048 + HW - 1) // HW))
        while N % B:
            B -= 1
        if B > 1 and (N // B) < 2:
            B = max(1, B // 2)
            while N % B:
                B -= 1
    else:
        B = batch_block
    assert N % B == 0
    BHW = B * HW
    assert B == 1 or BHW % 128 == 0, "batch blocking (B>1) needs B*H*W % 128 == 0"

    # ---- fixed Gaussian / Laplacian spatial taps ----
    kv = 0.9
    _, gr = gaussian_spatial_kernel(ksize, ksize - 2, kv)
    Kl = laplacian_spatial_kernel(ksize, kv)
    g_l, g_c, g_r = float(gr[0]), float(gr[1]), float(gr[2])
    gv_u, gv_c, gv_d = kv * g_l, kv * g_c, kv * g_r
    # mix @ gauss(mix @ x) == (cx/groups) * gauss(mix @ x): fold the factor
    # into the Laplacian taps instead of doing a second group-sum matmul.
    gsz = float(cx // groups)
    l_c = gsz * float(Kl[1, 1]); l_u = gsz * float(Kl[0, 1])
    l_d = gsz * float(Kl[2, 1]); l_l = gsz * float(Kl[1, 0])
    l_r = gsz * float(Kl[1, 2])

    # ---- fused dense weights / packed per-channel params (host-side, once) --
    mix = group_ones(cx, groups)                                  # (cx, cx)
    w12 = jnp.zeros((co, 2 * cx), jnp.float32)
    w12 = w12.at[:ch, :cx].set(block_diag_left(p["w1"], 2))
    w12 = w12.at[ch:, cx:].set(block_diag_left(p["w2"], 2))       # (co, 2cx)
    w3d = block_diag_left(p["w3"], 2)                             # (co, ch)
    gmat = group_ones(co, 4)                                      # (co, co)
    sw1 = jnp.zeros((2 * cr, 2 * co), jnp.float32)
    sw1 = sw1.at[:cr, :co].set(p["s1w1"]).at[cr:, co:].set(p["s2w1"])
    sw2 = jnp.zeros((2 * co, 2 * cr), jnp.float32)
    sw2 = sw2.at[:co, :cr].set(p["s1w2"]).at[co:, cr:].set(p["s2w2"])
    pp = jnp.stack([
        jnp.concatenate([p["b1"], p["b2"]]),
        jnp.concatenate([p["a1"], p["a2"]]),
        p["b3"], p["a3"], p["gn_g"], p["gn_b"], p["a_out"],
    ], axis=1).astype(jnp.float32)                                # (co, 7)

    # per-sample 0/1 selector over the (b, h, w) lane axis (lane-dense)
    sel = jnp.asarray(((np.arange(BHW) // HW)[None, :] ==
                       np.arange(B)[:, None]).astype(np.float32))  # (B, BHW)

    # precomputed stencil coefficient rows (tap * boundary mask baked in) and
    # 0 / -1e30 additive rows for the separable max-pool.
    jj = np.arange(BHW)
    w_pos = jj % W
    h_pos = (jj // W) % H
    mL = (w_pos >= 1).astype(np.float32)
    mR = (w_pos <= W - 2).astype(np.float32)
    mU = (h_pos >= 1).astype(np.float32)
    mD = (h_pos <= H - 2).astype(np.float32)
    NEG = np.float32(-1e30)
    coef = jnp.asarray(np.stack([
        g_l * mL, g_r * mR, gv_u * mU, gv_d * mD,
        l_l * mL, l_r * mR, l_u * mU, l_d * mD,
        np.where(mL > 0, 0.0, NEG), np.where(mR > 0, 0.0, NEG),
        np.where(mU > 0, 0.0, NEG), np.where(mD > 0, 0.0, NEG),
    ]).astype(np.float32))                                         # (12, BHW)

    inv_hw = 1.0 / float(HW)
    inv_gd = 1.0 / float((co // 4) * HW)

    def make_kernel(stats_prec):
        def kernel(x_ref, sel_ref, mix_ref, w12_ref, w3_ref, gmat_ref,
                   sw1_ref, sw2_ref, pp_ref, coef_ref, out_ref):
            xb = x_ref[...]                                        # (cx, BHW)
            selv = sel_ref[...]                                    # (B, BHW)
            ppv = pp_ref[...]
            cf = coef_ref[...]
            cgL, cgR, cgU, cgD = cf[0:1], cf[1:2], cf[2:3], cf[3:4]
            clL, clR, clU, clD = cf[4:5], cf[5:6], cf[6:7], cf[7:8]
            nLr, nRr, nUr, nDr = cf[8:9], cf[9:10], cf[10:11], cf[11:12]

            def mm(a, b):      # conv / broadcast matmuls, DEFAULT precision
                return jnp.dot(a, b, preferred_element_type=jnp.float32)

            def psum(y):       # per-sample lane sums: (rows,BHW) x (B,BHW)^T
                return lax.dot_general(
                    y, selv, (((1,), (1,)), ((), ())),
                    precision=stats_prec,
                    preferred_element_type=jnp.float32)            # (rows, B)

            def sh(y, k):      # value at lane j+k (lane rotation on the XLU)
                return pltpu.roll(y, shift=(-k) % BHW, axis=1)

            def gauss3x3(y):   # separable, 'same' zero padding via coef rows
                t = g_c * y + cgL * sh(y, -1) + cgR * sh(y, 1)
                return gv_c * t + cgU * sh(t, -W) + cgD * sh(t, W)

            def laplace3x3(y):  # taps already include the (cx/groups) factor
                return (l_c * y + clU * sh(y, -W) + clD * sh(y, W)
                        + clL * sh(y, -1) + clR * sh(y, 1))

            # grouped Gaussian conv = channel group-sum + spatial stencil;
            # grouped Laplacian conv = (cx/groups) * laplace(dog_raw).
            dog_raw = gauss3x3(mm(mix_ref[...], xb))
            log_raw = laplace3x3(dog_raw)

            # conv1 & conv2 (grouped 1x1) fused block-diagonally, + PReLU
            y12 = mm(w12_ref[...],
                     jnp.concatenate([dog_raw - xb, log_raw], axis=0))
            y12 = y12 + ppv[:, 0:1]
            a12 = ppv[:, 1:2]
            y12 = jnp.where(y12 >= 0.0, y12, a12 * y12)

            # InstanceNorm2d (per sample, per channel, no affine)
            s12 = psum(jnp.concatenate([y12, y12 * y12], axis=0))   # (2co, B)
            mean = s12[:co] * inv_hw
            var = jnp.maximum(s12[co:] * inv_hw - mean * mean, 0.0)
            inv = lax.rsqrt(var + EPS)
            aff = mm(jnp.concatenate([inv, -mean * inv], axis=0), selv)
            y12 = y12 * aff[:co] + aff[co:]

            # DoG * LoG, then separable 3x3 / s1 / p1 max-pool (additive
            # 0 / -1e30 rows emulate the -inf padding).
            prod = y12[:ch] * y12[ch:]
            hm = jnp.maximum(prod, jnp.maximum(sh(prod, -1) + nLr,
                                               sh(prod, 1) + nRr))
            pooled = jnp.maximum(hm, jnp.maximum(sh(hm, -W) + nUr,
                                                 sh(hm, W) + nDr))

            # conv3 (grouped 1x1) + PReLU + GroupNorm(4, co) with affine
            y3 = mm(w3_ref[...], pooled) + ppv[:, 2:3]
            a3 = ppv[:, 3:4]
            y3 = jnp.where(y3 >= 0.0, y3, a3 * y3)

            s3 = psum(jnp.concatenate([y3, y3 * y3], axis=0))       # (2co, B)
            gsum = jnp.dot(gmat_ref[...],
                           jnp.concatenate([s3[:co], s3[co:]], axis=1),
                           precision=stats_prec,
                           preferred_element_type=jnp.float32)      # (co, 2B)
            gmean = gsum[:, :B] * inv_gd
            gvar = jnp.maximum(gsum[:, B:] * inv_gd - gmean * gmean, 0.0)
            ginv = lax.rsqrt(gvar + EPS)
            scale = ppv[:, 4:5] * ginv
            shift = ppv[:, 5:6] - gmean * scale
            gaff = mm(jnp.concatenate([scale, shift], axis=0), selv)
            tot = y3 * gaff[:co] + gaff[co:]

            # SEM1(tot) and SEM2(x), fused block-diagonally
            pooled2 = psum(jnp.concatenate([tot, xb], axis=0)) * inv_hw
            hid = jnp.maximum(mm(sw1_ref[...], pooled2), 0.0)        # (2cr, B)
            gate = pl.reciprocal(1.0 + jnp.exp(-mm(sw2_ref[...], hid)),
                                 approx=True)                        # sigmoid
            gfull = mm(gate, selv)                                   # (2co,BHW)

            pre = xb * (1.0 + gfull[co:]) + tot * (1.0 + gfull[:co])
            a_o = ppv[:, 6:7]
            out_ref[...] = jnp.where(pre >= 0.0, pre, a_o * pre)
        return kernel

    invariants = (sel, mix, w12, w3d, gmat, sw1, sw2, pp, coef)

    # explicit VMEM budget (v7x TensorCores only have 64 MiB)
    slab = 4 * co * BHW
    est = 26 * slab + 16 * cx * BHW + 8 * (B + 12) * BHW + (1 << 20)
    vmem_limit = int(min(64 << 20, max(32 << 20, 2 * est)))

    grid = (N // B,)

    if B == 1:
        # (N, C, HW) view: the BlockSpec delivers one lane-dense (C, HW) slab
        # per sample; no HBM<->HBM transposes on either side.
        x_in = x.reshape(N, cx, HW)
        x_spec = pl.BlockSpec((None, cx, HW), lambda nb: (nb, 0, 0))
        out_shape = jax.ShapeDtypeStruct((N, co, HW), jnp.float32)
        out_spec = pl.BlockSpec((None, co, HW), lambda nb: (nb, 0, 0))
    else:
        # b-major lane layout (C, N*HW); needs one transpose each way.
        x_in = jnp.transpose(x, (1, 0, 2, 3)).reshape(cx, N * HW)
        x_spec = pl.BlockSpec((cx, BHW), lambda nb: (0, nb))
        out_shape = jax.ShapeDtypeStruct((co, N * HW), jnp.float32)
        out_spec = pl.BlockSpec((co, BHW), lambda nb: (0, nb))

    def run(single_buffer, stats_hi):
        def inv_spec(a):
            nd = a.ndim
            kwargs = {}
            if single_buffer:
                # grid-invariant block: double-buffering it is pure VMEM waste
                kwargs["pipeline_mode"] = pl.Buffered(1)
            return pl.BlockSpec(a.shape, lambda nb, _nd=nd: (0,) * _nd,
                                **kwargs)
        stats_prec = lax.Precision.HIGHEST if stats_hi else None
        return pl.pallas_call(
            make_kernel(stats_prec),
            out_shape=out_shape,
            grid=grid,
            in_specs=[x_spec] + [inv_spec(a) for a in invariants],
            out_specs=out_spec,
            compiler_params=pltpu.CompilerParams(
                dimension_semantics=("parallel",),
                vmem_limit_bytes=vmem_limit),
        )(x_in, *invariants)

    try:
        out_raw = run(True, True)
    except Exception:
        # Older Pallas without pipeline_mode / HIGHEST-precision matmul
        # support: fall back to the previously-validated configuration.
        out_raw = run(False, False)

    if B == 1:
        return out_raw.reshape(N, co, H, W)
    return jnp.transpose(out_raw.reshape(co, N, H, W), (1, 0, 2, 3))


# ---------------------------------------------------------------------------
# Pure-JAX reference (mirrors the PyTorch module, NCHW) for validation.
# ---------------------------------------------------------------------------
def reference_forward(x, p, groups, Kg, Kl):
    N, C, H, W = x.shape
    dn = ("NCHW", "OIHW", "NCHW")

    def gconv(t, w, pad, g):
        return lax.conv_general_dilated(t, w, (1, 1), pad,
                                        dimension_numbers=dn,
                                        feature_group_count=g)

    gk_full = jnp.asarray(np.tile(Kg[None, None], (C, C // groups, 1, 1)),
                          jnp.float32)
    lk_full = jnp.asarray(np.tile(Kl[None, None], (C, C // groups, 1, 1)),
                          jnp.float32)
    dog_raw = gconv(x, gk_full, [(1, 1), (1, 1)], groups)
    log_raw = gconv(dog_raw, lk_full, [(1, 1), (1, 1)], groups)

    def conv1x1(t, w, b, g):
        return gconv(t, w[:, :, None, None], [(0, 0), (0, 0)], g) \
            + b.reshape(1, -1, 1, 1)

    def prelu(t, a):
        return jnp.where(t >= 0, t, a.reshape(1, -1, 1, 1) * t)

    def instnorm(t):
        mu = t.mean(axis=(2, 3), keepdims=True)
        var = ((t - mu) ** 2).mean(axis=(2, 3), keepdims=True)
        return (t - mu) / jnp.sqrt(var + EPS)

    def groupnorm(t, g, gamma, beta):
        n, c, hh, ww = t.shape
        tr = t.reshape(n, g, c // g, hh, ww)
        mu = tr.mean(axis=(2, 3, 4), keepdims=True)
        var = ((tr - mu) ** 2).mean(axis=(2, 3, 4), keepdims=True)
        tn = ((tr - mu) / jnp.sqrt(var + EPS)).reshape(n, c, hh, ww)
        return tn * gamma.reshape(1, -1, 1, 1) + beta.reshape(1, -1, 1, 1)

    def sem(t, w1, w2):
        y = t.mean(axis=(2, 3), keepdims=True)
        y = jnp.maximum(jnp.einsum("oi,nihw->nohw", w1, y), 0.0)
        y = jax.nn.sigmoid(jnp.einsum("oi,nihw->nohw", w2, y))
        return t * y

    dog = instnorm(prelu(conv1x1(dog_raw - x, p["w1"], p["b1"], 2), p["a1"]))
    log = instnorm(prelu(conv1x1(log_raw, p["w2"], p["b2"], 2), p["a2"]))
    m = lax.reduce_window(dog * log, -jnp.inf, lax.max, (1, 1, 3, 3),
                          (1, 1, 1, 1), [(0, 0), (0, 0), (1, 1), (1, 1)])
    tot = groupnorm(prelu(conv1x1(m, p["w3"], p["b3"], 2), p["a3"]),
                    4, p["gn_g"], p["gn_b"])
    tot1 = sem(tot, p["s1w1"], p["s1w2"])
    x1 = sem(x, p["s2w1"], p["s2w2"])
    return prelu(x + x1 + tot + tot1, p["a_out"])


if __name__ == "__main__":
    key = jax.random.PRNGKey(0)
    ch_in, ch_out = 16, 16
    ksize, groups, reduction = 3, 4, 4
    N, H, W = 2, 16, 16

    kx, kp = jax.random.split(key)
    x = jax.random.normal(kx, (N, ch_in, H, W), jnp.float32)
    params = init_params(kp, ch_in, ch_out, reduction)

    out = jax.block_until_ready(eem_forward_pallas(x, params, groups, ksize))

    Kg, _ = gaussian_spatial_kernel(ksize, ksize - 2, 0.9)
    Kl = laplacian_spatial_kernel(ksize, 0.9)
    ref = jax.block_until_ready(reference_forward(x, params, groups, Kg, Kl))

    assert out.shape == (N, ch_out, H, W), out.shape
    diff = jnp.abs(out - ref)
    max_err = float(jnp.max(diff))
    mean_err = float(jnp.mean(diff))
    # tolerances sized for DEFAULT (single-pass bf16) matmul precision on TPU;
    # semantic bugs produce O(1) mismatches on most elements.
    elementwise_ok = bool(jnp.all(diff <= 8e-2 + 1.2e-1 * jnp.abs(ref)))
    if not (np.isfinite(max_err) and mean_err < 5e-2 and elementwise_ok):
        raise AssertionError(
            f"mismatch vs reference: max={max_err:.4g}, mean={mean_err:.4g}")
    print("KERNEL_OK")
</pallas_src>

<mosaic_0001>
module attributes {stable_mosaic.version = 11 : i64} {
  func.func @kernel(%arg0: i32, %arg1: memref<1x16x256xf32, #tpu.memory_space<vmem>>, %arg2: memref<1x256xf32, #tpu.memory_space<vmem>>, %arg3: memref<16x16xf32, #tpu.memory_space<vmem>>, %arg4: memref<16x32xf32, #tpu.memory_space<vmem>>, %arg5: memref<16x8xf32, #tpu.memory_space<vmem>>, %arg6: memref<16x16xf32, #tpu.memory_space<vmem>>, %arg7: memref<8x32xf32, #tpu.memory_space<vmem>>, %arg8: memref<32x8xf32, #tpu.memory_space<vmem>>, %arg9: memref<16x7xf32, #tpu.memory_space<vmem>>, %arg10: memref<12x256xf32, #tpu.memory_space<vmem>>, %arg11: memref<1x16x256xf32, #tpu.memory_space<vmem>>) attributes {dimension_semantics = [#tpu.dimension_semantics<parallel>], iteration_bounds = array<i64: 2>, scalar_prefetch = 0 : i64, scratch_operands = 0 : i64, tpu.core_type = #tpu.core_type<tc>, window_params = [{transform_indices = @transform_0, window_bounds = array<i64: 1, 16, 256>}, {pipeline_mode = #tpu.pipeline_mode<synchronous>, transform_indices = @transform_1, window_bounds = array<i64: 1, 256>}, {pipeline_mode = #tpu.pipeline_mode<synchronous>, transform_indices = @transform_2, window_bounds = array<i64: 16, 16>}, {pipeline_mode = #tpu.pipeline_mode<synchronous>, transform_indices = @transform_3, window_bounds = array<i64: 16, 32>}, {pipeline_mode = #tpu.pipeline_mode<synchronous>, transform_indices = @transform_4, window_bounds = array<i64: 16, 8>}, {pipeline_mode = #tpu.pipeline_mode<synchronous>, transform_indices = @transform_5, window_bounds = array<i64: 16, 16>}, {pipeline_mode = #tpu.pipeline_mode<synchronous>, transform_indices = @transform_6, window_bounds = array<i64: 8, 32>}, {pipeline_mode = #tpu.pipeline_mode<synchronous>, transform_indices = @transform_7, window_bounds = array<i64: 32, 8>}, {pipeline_mode = #tpu.pipeline_mode<synchronous>, transform_indices = @transform_8, window_bounds = array<i64: 16, 7>}, {pipeline_mode = #tpu.pipeline_mode<synchronous>, transform_indices = @transform_9, window_bounds = array<i64: 12, 256>}, {transform_indices = @transform_10, window_bounds = array<i64: 1, 16, 256>}]} {
    %c0 = arith.constant 0 : index
    %c0_0 = arith.constant 0 : index
    %c0_1 = arith.constant 0 : index
    %0 = vector.load %arg1[%c0, %c0_0, %c0_1] : memref<1x16x256xf32, #tpu.memory_space<vmem>>, vector<1x16x256xf32>
    %1 = vector.shape_cast %0 : vector<1x16x256xf32> to vector<16x256xf32>
    %c0_2 = arith.constant 0 : index
    %c0_3 = arith.constant 0 : index
    %2 = vector.load %arg2[%c0_2, %c0_3] : memref<1x256xf32, #tpu.memory_space<vmem>>, vector<1x256xf32>
    %c0_4 = arith.constant 0 : index
    %c0_5 = arith.constant 0 : index
    %3 = vector.load %arg9[%c0_4, %c0_5] : memref<16x7xf32, #tpu.memory_space<vmem>>, vector<16x7xf32>
    %c0_6 = arith.constant 0 : index
    %c0_7 = arith.constant 0 : index
    %4 = vector.load %arg10[%c0_6, %c0_7] : memref<12x256xf32, #tpu.memory_space<vmem>>, vector<12x256xf32>
    %5 = vector.extract_strided_slice %4 {offsets = [0, 0], sizes = [1, 256], strides = [1, 1]} : vector<12x256xf32> to vector<1x256xf32>
    %6 = vector.extract_strided_slice %4 {offsets = [1, 0], sizes = [1, 256], strides = [1, 1]} : vector<12x256xf32> to vector<1x256xf32>
    %7 = vector.extract_strided_slice %4 {offsets = [2, 0], sizes = [1, 256], strides = [1, 1]} : vector<12x256xf32> to vector<1x256xf32>
    %8 = vector.extract_strided_slice %4 {offsets = [3, 0], sizes = [1, 256], strides = [1, 1]} : vector<12x256xf32> to vector<1x256xf32>
    %9 = vector.extract_strided_slice %4 {offsets = [4, 0], sizes = [1, 256], strides = [1, 1]} : vector<12x256xf32> to vector<1x256xf32>
    %10 = vector.extract_strided_slice %4 {offsets = [5, 0], sizes = [1, 256], strides = [1, 1]} : vector<12x256xf32> to vector<1x256xf32>
    %11 = vector.extract_strided_slice %4 {offsets = [6, 0], sizes = [1, 256], strides = [1, 1]} : vector<12x256xf32> to vector<1x256xf32>
    %12 = vector.extract_strided_slice %4 {offsets = [7, 0], sizes = [1, 256], strides = [1, 1]} : vector<12x256xf32> to vector<1x256xf32>
    %13 = vector.extract_strided_slice %4 {offsets = [8, 0], sizes = [1, 256], strides = [1, 1]} : vector<12x256xf32> to vector<1x256xf32>
    %14 = vector.extract_strided_slice %4 {offsets = [9, 0], sizes = [1, 256], strides = [1, 1]} : vector<12x256xf32> to vector<1x256xf32>
    %15 = vector.extract_strided_slice %4 {offsets = [10, 0], sizes = [1, 256], strides = [1, 1]} : vector<12x256xf32> to vector<1x256xf32>
    %16 = vector.extract_strided_slice %4 {offsets = [11, 0], sizes = [1, 256], strides = [1, 1]} : vector<12x256xf32> to vector<1x256xf32>
    %c0_8 = arith.constant 0 : index
    %c0_9 = arith.constant 0 : index
    %17 = vector.load %arg3[%c0_8, %c0_9] : memref<16x16xf32, #tpu.memory_space<vmem>>, vector<16x16xf32>
    %cst = arith.constant dense<0.000000e+00> : vector<16x256xf32>
    %18 = tpu.matmul %17, %1, %cst {dimension_numbers = #tpu.dot_dimension_numbers<[1], [0], [0], [1], [0, 0, 1, 1], [], []>} : vector<16x16xf32>, vector<16x256xf32>, vector<16x256xf32> -> vector<16x256xf32>
    %cst_10 = arith.constant 0.407807201 : f32
    %19 = vector.broadcast %cst_10 : f32 to vector<16x256xf32>
    %20 = arith.mulf %19, %18 : vector<16x256xf32>
    %c1_i32 = arith.constant 1 : i32
    %21 = tpu.dynamic_rotate %18 by %c1_i32 dim 1 : vector<16x256xf32>, i32 -> vector<16x256xf32>
    %22 = vector.broadcast %5 : vector<1x256xf32> to vector<16x256xf32>
    %23 = arith.mulf %22, %21 : vector<16x256xf32>
    %24 = arith.addf %20, %23 : vector<16x256xf32>
    %c255_i32 = arith.constant 255 : i32
    %25 = tpu.dynamic_rotate %18 by %c255_i32 dim 1 : vector<16x256xf32>, i32 -> vector<16x256xf32>
    %26 = vector.broadcast %6 : vector<1x256xf32> to vector<16x256xf32>
    %27 = arith.mulf %26, %25 : vector<16x256xf32>
    %28 = arith.addf %24, %27 : vector<16x256xf32>
    %cst_11 = arith.constant 0.367026478 : f32
    %29 = vector.broadcast %cst_11 : f32 to vector<16x256xf32>
    %30 = arith.mulf %29, %28 : vector<16x256xf32>
    %c16_i32 = arith.constant 16 : i32
    %31 = tpu.dynamic_rotate %28 by %c16_i32 dim 1 : vector<16x256xf32>, i32 -> vector<16x256xf32>
    %32 = vector.broadcast %7 : vector<1x256xf32> to vector<16x256xf32>
    %33 = arith.mulf %32, %31 : vector<16x256xf32>
    %34 = arith.addf %30, %33 : vector<16x256xf32>
    %c240_i32 = arith.constant 240 : i32
    %35 = tpu.dynamic_rotate %28 by %c240_i32 dim 1 : vector<16x256xf32>, i32 -> vector<16x256xf32>
    %36 = vector.broadcast %8 : vector<1x256xf32> to vector<16x256xf32>
    %37 = arith.mulf %36, %35 : vector<16x256xf32>
    %38 = arith.addf %34, %37 : vector<16x256xf32>
    %cst_12 = arith.constant -1.440000e+01 : f32
    %39 = vector.broadcast %cst_12 : f32 to vector<16x256xf32>
    %40 = arith.mulf %39, %38 : vector<16x256xf32>
    %c16_i32_13 = arith.constant 16 : i32
    %41 = tpu.dynamic_rotate %38 by %c16_i32_13 dim 1 : vector<16x256xf32>, i32 -> vector<16x256xf32>
    %42 = vector.broadcast %11 : vector<1x256xf32> to vector<16x256xf32>
    %43 = arith.mulf %42, %41 : vector<16x256xf32>
    %44 = arith.addf %40, %43 : vector<16x256xf32>
    %c240_i32_14 = arith.constant 240 : i32
    %45 = tpu.dynamic_rotate %38 by %c240_i32_14 dim 1 : vector<16x256xf32>, i32 -> vector<16x256xf32>
    %46 = vector.broadcast %12 : vector<1x256xf32> to vector<16x256xf32>
    %47 = arith.mulf %46, %45 : vector<16x256xf32>
    %48 = arith.addf %44, %47 : vector<16x256xf32>
    %c1_i32_15 = arith.constant 1 : i32
    %49 = tpu.dynamic_rotate %38 by %c1_i32_15 dim 1 : vector<16x256xf32>, i32 -> vector<16x256xf32>
    %50 = vector.broadcast %9 : vector<1x256xf32> to vector<16x256xf32>
    %51 = arith.mulf %50, %49 : vector<16x256xf32>
    %52 = arith.addf %48, %51 : vector<16x256xf32>
    %c255_i32_16 = arith.constant 255 : i32
    %53 = tpu.dynamic_rotate %38 by %c255_i32_16 dim 1 : vector<16x256xf32>, i32 -> vector<16x256xf32>
    %54 = vector.broadcast %10 : vector<1x256xf32> to vector<16x256xf32>
    %55 = arith.mulf %54, %53 : vector<16x256xf32>
    %56 = arith.addf %52, %55 : vector<16x256xf32>
    %c0_17 = arith.constant 0 : index
    %c0_18 = arith.constant 0 : index
    %57 = vector.load %arg4[%c0_17, %c0_18] : memref<16x32xf32, #tpu.memory_space<vmem>>, vector<16x32xf32>
    %58 = arith.subf %38, %1 : vector<16x256xf32>
    %59 = tpu.concatenate %58, %56 in 0 : vector<16x256xf32>, vector<16x256xf32> -> vector<32x256xf32>
    %cst_19 = arith.constant dense<0.000000e+00> : vector<16x256xf32>
    %60 = tpu.matmul %57, %59, %cst_19 {dimension_numbers = #tpu.dot_dimension_numbers<[1], [0], [0], [1], [0, 0, 1, 1], [], []>} : vector<16x32xf32>, vector<32x256xf32>, vector<16x256xf32> -> vector<16x256xf32>
    %61 = vector.extract_strided_slice %3 {offsets = [0, 0], sizes = [16, 1], strides = [1, 1]} : vector<16x7xf32> to vector<16x1xf32>
    %62 = vector.broadcast %61 : vector<16x1xf32> to vector<16x256xf32>
    %63 = arith.addf %60, %62 : vector<16x256xf32>
    %64 = vector.extract_strided_slice %3 {offsets = [0, 1], sizes = [16, 1], strides = [1, 1]} : vector<16x7xf32> to vector<16x1xf32>
    %cst_20 = arith.constant 0.000000e+00 : f32
    %65 = vector.broadcast %cst_20 : f32 to vector<16x256xf32>
    %66 = arith.cmpf oge, %63, %65 : vector<16x256xf32>
    %67 = vector.broadcast %64 : vector<16x1xf32> to vector<16x256xf32>
    %68 = arith.mulf %67, %63 : vector<16x256xf32>
    %69 = arith.select %66, %63, %68 : vector<16x256xi1>, vector<16x256xf32>
    %70 = arith.mulf %69, %69 : vector<16x256xf32>
    %71 = tpu.concatenate %69, %70 in 0 : vector<16x256xf32>, vector<16x256xf32> -> vector<32x256xf32>
    %cst_21 = arith.constant dense<0.000000e+00> : vector<32x1xf32>
    %72 = tpu.matmul %71, %2, %cst_21 {dimension_numbers = #tpu.dot_dimension_numbers<[1], [1], [0], [0], [0, 0, 1, 0], [], []>, precision = #tpu.contract_precision<fp32>} : vector<32x256xf32>, vector<1x256xf32>, vector<32x1xf32> -> vector<32x1xf32>
    %73 = vector.extract_strided_slice %72 {offsets = [0, 0], sizes = [16, 1], strides = [1, 1]} : vector<32x1xf32> to vector<16x1xf32>
    %cst_22 = arith.constant 3.906250e-03 : f32
    %74 = vector.broadcast %cst_22 : f32 to vector<16x1xf32>
    %75 = arith.mulf %73, %74 : vector<16x1xf32>
    %76 = vector.extract_strided_slice %72 {offsets = [16, 0], sizes = [16, 1], strides = [1, 1]} : vector<32x1xf32> to vector<16x1xf32>
    %cst_23 = arith.constant 3.906250e-03 : f32
    %77 = vector.broadcast %cst_23 : f32 to vector<16x1xf32>
    %78 = arith.mulf %76, %77 : vector<16x1xf32>
    %79 = arith.mulf %75, %75 : vector<16x1xf32>
    %80 = arith.subf %78, %79 : vector<16x1xf32>
    %cst_24 = arith.constant 0.000000e+00 : f32
    %81 = vector.broadcast %cst_24 : f32 to vector<16x1xf32>
    %82 = arith.maximumf %80, %81 : vector<16x1xf32>
    %cst_25 = arith.constant 9.99999974E-6 : f32
    %83 = vector.broadcast %cst_25 : f32 to vector<16x1xf32>
    %84 = arith.addf %82, %83 : vector<16x1xf32>
    %85 = math.rsqrt %84 : vector<16x1xf32>
    %cst_26 = arith.constant 0.000000e+00 : f32
    %86 = vector.broadcast %cst_26 : f32 to vector<16x1xf32>
    %87 = arith.subf %86, %75 : vector<16x1xf32>
    %88 = arith.mulf %87, %85 : vector<16x1xf32>
    %89 = tpu.concatenate %85, %88 in 0 : vector<16x1xf32>, vector<16x1xf32> -> vector<32x1xf32>
    %cst_27 = arith.constant dense<0.000000e+00> : vector<32x256xf32>
    %90 = tpu.matmul %89, %2, %cst_27 {dimension_numbers = #tpu.dot_dimension_numbers<[1], [0], [0], [1], [0, 0, 1, 1], [], []>} : vector<32x1xf32>, vector<1x256xf32>, vector<32x256xf32> -> vector<32x256xf32>
    %91 = vector.extract_strided_slice %90 {offsets = [0, 0], sizes = [16, 256], strides = [1, 1]} : vector<32x256xf32> to vector<16x256xf32>
    %92 = arith.mulf %69, %91 : vector<16x256xf32>
    %93 = vector.extract_strided_slice %90 {offsets = [16, 0], sizes = [16, 256], strides = [1, 1]} : vector<32x256xf32> to vector<16x256xf32>
    %94 = arith.addf %92, %93 : vector<16x256xf32>
    %95 = vector.extract_strided_slice %94 {offsets = [0, 0], sizes = [8, 256], strides = [1, 1]} : vector<16x256xf32> to vector<8x256xf32>
    %96 = vector.extract_strided_slice %94 {offsets = [8, 0], sizes = [8, 256], strides = [1, 1]} : vector<16x256xf32> to vector<8x256xf32>
    %97 = arith.mulf %95, %96 : vector<8x256xf32>
    %c1_i32_28 = arith.constant 1 : i32
    %98 = tpu.dynamic_rotate %97 by %c1_i32_28 dim 1 : vector<8x256xf32>, i32 -> vector<8x256xf32>
    %99 = vector.broadcast %13 : vector<1x256xf32> to vector<8x256xf32>
    %100 = arith.addf %98, %99 : vector<8x256xf32>
    %c255_i32_29 = arith.constant 255 : i32
    %101 = tpu.dynamic_rotate %97 by %c255_i32_29 dim 1 : vector<8x256xf32>, i32 -> vector<8x256xf32>
    %102 = vector.broadcast %14 : vector<1x256xf32> to vector<8x256xf32>
    %103 = arith.addf %101, %102 : vector<8x256xf32>
    %104 = arith.maximumf %100, %103 : vector<8x256xf32>
    %105 = arith.maximumf %97, %104 : vector<8x256xf32>
    %c16_i32_30 = arith.constant 16 : i32
    %106 = tpu.dynamic_rotate %105 by %c16_i32_30 dim 1 : vector<8x256xf32>, i32 -> vector<8x256xf32>
    %107 = vector.broadcast %15 : vector<1x256xf32> to vector<8x256xf32>
    %108 = arith.addf %106, %107 : vector<8x256xf32>
    %c240_i32_31 = arith.constant 240 : i32
    %109 = tpu.dynamic_rotate %105 by %c240_i32_31 dim 1 : vector<8x256xf32>, i32 -> vector<8x256xf32>
    %110 = vector.broadcast %16 : vector<1x256xf32> to vector<8x256xf32>
    %111 = arith.addf %109, %110 : vector<8x256xf32>
    %112 = arith.maximumf %108, %111 : vector<8x256xf32>
    %113 = arith.maximumf %105, %112 : vector<8x256xf32>
    %c0_32 = arith.constant 0 : index
    %c0_33 = arith.constant 0 : index
    %114 = vector.load %arg5[%c0_32, %c0_33] : memref<16x8xf32, #tpu.memory_space<vmem>>, vector<16x8xf32>
    %cst_34 = arith.constant dense<0.000000e+00> : vector<16x256xf32>
    %115 = tpu.matmul %114, %113, %cst_34 {dimension_numbers = #tpu.dot_dimension_numbers<[1], [0], [0], [1], [0, 0, 1, 1], [], []>} : vector<16x8xf32>, vector<8x256xf32>, vector<16x256xf32> -> vector<16x256xf32>
    %116 = vector.extract_strided_slice %3 {offsets = [0, 2], sizes = [16, 1], strides = [1, 1]} : vector<16x7xf32> to vector<16x1xf32>
    %117 = vector.broadcast %116 : vector<16x1xf32> to vector<16x256xf32>
    %118 = arith.addf %115, %117 : vector<16x256xf32>
    %119 = vector.extract_strided_slice %3 {offsets = [0, 3], sizes = [16, 1], strides = [1, 1]} : vector<16x7xf32> to vector<16x1xf32>
    %cst_35 = arith.constant 0.000000e+00 : f32
    %120 = vector.broadcast %cst_35 : f32 to vector<16x256xf32>
    %121 = arith.cmpf oge, %118, %120 : vector<16x256xf32>
    %122 = vector.broadcast %119 : vector<16x1xf32> to vector<16x256xf32>
    %123 = arith.mulf %122, %118 : vector<16x256xf32>
    %124 = arith.select %121, %118, %123 : vector<16x256xi1>, vector<16x256xf32>
    %125 = arith.mulf %124, %124 : vector<16x256xf32>
    %126 = tpu.concatenate %124, %125 in 0 : vector<16x256xf32>, vector<16x256xf32> -> vector<32x256xf32>
    %cst_36 = arith.constant dense<0.000000e+00> : vector<32x1xf32>
    %127 = tpu.matmul %126, %2, %cst_36 {dimension_numbers = #tpu.dot_dimension_numbers<[1], [1], [0], [0], [0, 0, 1, 0], [], []>, precision = #tpu.contract_precision<fp32>} : vector<32x256xf32>, vector<1x256xf32>, vector<32x1xf32> -> vector<32x1xf32>
    %c0_37 = arith.constant 0 : index
    %c0_38 = arith.constant 0 : index
    %128 = vector.load %arg6[%c0_37, %c0_38] : memref<16x16xf32, #tpu.memory_space<vmem>>, vector<16x16xf32>
    %129 = vector.extract_strided_slice %127 {offsets = [0, 0], sizes = [16, 1], strides = [1, 1]} : vector<32x1xf32> to vector<16x1xf32>
    %130 = vector.extract_strided_slice %127 {offsets = [16, 0], sizes = [16, 1], strides = [1, 1]} : vector<32x1xf32> to vector<16x1xf32>
    %131 = tpu.concatenate %129, %130 in 1 : vector<16x1xf32>, vector<16x1xf32> -> vector<16x2xf32>
    %cst_39 = arith.constant dense<0.000000e+00> : vector<16x2xf32>
    %132 = tpu.matmul %128, %131, %cst_39 {dimension_numbers = #tpu.dot_dimension_numbers<[1], [0], [0], [1], [0, 0, 1, 1], [], []>, precision = #tpu.contract_precision<fp32>} : vector<16x16xf32>, vector<16x2xf32>, vector<16x2xf32> -> vector<16x2xf32>
    %133 = vector.extract_strided_slice %132 {offsets = [0, 0], sizes = [16, 1], strides = [1, 1]} : vector<16x2xf32> to vector<16x1xf32>
    %cst_40 = arith.constant 9.765625E-4 : f32
    %134 = vector.broadcast %cst_40 : f32 to vector<16x1xf32>
    %135 = arith.mulf %133, %134 : vector<16x1xf32>
    %136 = vector.extract_strided_slice %132 {offsets = [0, 1], sizes = [16, 1], strides = [1, 1]} : vector<16x2xf32> to vector<16x1xf32>
    %cst_41 = arith.constant 9.765625E-4 : f32
    %137 = vector.broadcast %cst_41 : f32 to vector<16x1xf32>
    %138 = arith.mulf %136, %137 : vector<16x1xf32>
    %139 = arith.mulf %135, %135 : vector<16x1xf32>
    %140 = arith.subf %138, %139 : vector<16x1xf32>
    %cst_42 = arith.constant 0.000000e+00 : f32
    %141 = vector.broadcast %cst_42 : f32 to vector<16x1xf32>
    %142 = arith.maximumf %140, %141 : vector<16x1xf32>
    %cst_43 = arith.constant 9.99999974E-6 : f32
    %143 = vector.broadcast %cst_43 : f32 to vector<16x1xf32>
    %144 = arith.addf %142, %143 : vector<16x1xf32>
    %145 = math.rsqrt %144 : vector<16x1xf32>
    %146 = vector.extract_strided_slice %3 {offsets = [0, 4], sizes = [16, 1], strides = [1, 1]} : vector<16x7xf32> to vector<16x1xf32>
    %147 = arith.mulf %146, %145 : vector<16x1xf32>
    %148 = vector.extract_strided_slice %3 {offsets = [0, 5], sizes = [16, 1], strides = [1, 1]} : vector<16x7xf32> to vector<16x1xf32>
    %149 = arith.mulf %135, %147 : vector<16x1xf32>
    %150 = arith.subf %148, %149 : vector<16x1xf32>
    %151 = tpu.concatenate %147, %150 in 0 : vector<16x1xf32>, vector<16x1xf32> -> vector<32x1xf32>
    %cst_44 = arith.constant dense<0.000000e+00> : vector<32x256xf32>
    %152 = tpu.matmul %151, %2, %cst_44 {dimension_numbers = #tpu.dot_dimension_numbers<[1], [0], [0], [1], [0, 0, 1, 1], [], []>} : vector<32x1xf32>, vector<1x256xf32>, vector<32x256xf32> -> vector<32x256xf32>
    %153 = vector.extract_strided_slice %152 {offsets = [0, 0], sizes = [16, 256], strides = [1, 1]} : vector<32x256xf32> to vector<16x256xf32>
    %154 = arith.mulf %124, %153 : vector<16x256xf32>
    %155 = vector.extract_strided_slice %152 {offsets = [16, 0], sizes = [16, 256], strides = [1, 1]} : vector<32x256xf32> to vector<16x256xf32>
    %156 = arith.addf %154, %155 : vector<16x256xf32>
    %157 = tpu.concatenate %156, %1 in 0 : vector<16x256xf32>, vector<16x256xf32> -> vector<32x256xf32>
    %cst_45 = arith.constant dense<0.000000e+00> : vector<32x1xf32>
    %158 = tpu.matmul %157, %2, %cst_45 {dimension_numbers = #tpu.dot_dimension_numbers<[1], [1], [0], [0], [0, 0, 1, 0], [], []>, precision = #tpu.contract_precision<fp32>} : vector<32x256xf32>, vector<1x256xf32>, vector<32x1xf32> -> vector<32x1xf32>
    %cst_46 = arith.constant 3.906250e-03 : f32
    %159 = vector.broadcast %cst_46 : f32 to vector<32x1xf32>
    %160 = arith.mulf %158, %159 : vector<32x1xf32>
    %c0_47 = arith.constant 0 : index
    %c0_48 = arith.constant 0 : index
    %161 = vector.load %arg7[%c0_47, %c0_48] : memref<8x32xf32, #tpu.memory_space<vmem>>, vector<8x32xf32>
    %cst_49 = arith.constant dense<0.000000e+00> : vector<8x1xf32>
    %162 = tpu.matmul %161, %160, %cst_49 {dimension_numbers = #tpu.dot_dimension_numbers<[1], [0], [0], [1], [0, 0, 1, 1], [], []>} : vector<8x32xf32>, vector<32x1xf32>, vector<8x1xf32> -> vector<8x1xf32>
    %cst_50 = arith.constant 0.000000e+00 : f32
    %163 = vector.broadcast %cst_50 : f32 to vector<8x1xf32>
    %164 = arith.maximumf %162, %163 : vector<8x1xf32>
    %c0_51 = arith.constant 0 : index
    %c0_52 = arith.constant 0 : index
    %165 = vector.load %arg8[%c0_51, %c0_52] : memref<32x8xf32, #tpu.memory_space<vmem>>, vector<32x8xf32>
    %cst_53 = arith.constant dense<0.000000e+00> : vector<32x1xf32>
    %166 = tpu.matmul %165, %164, %cst_53 {dimension_numbers = #tpu.dot_dimension_numbers<[1], [0], [0], [1], [0, 0, 1, 1], [], []>} : vector<32x8xf32>, vector<8x1xf32>, vector<32x1xf32> -> vector<32x1xf32>
    %cst_54 = arith.constant 0.000000e+00 : f32
    %167 = vector.broadcast %cst_54 : f32 to vector<32x1xf32>
    %168 = arith.subf %167, %166 : vector<32x1xf32>
    %169 = math.exp %168 : vector<32x1xf32>
    %cst_55 = arith.constant 1.000000e+00 : f32
    %170 = vector.broadcast %cst_55 : f32 to vector<32x1xf32>
    %171 = arith.addf %170, %169 : vector<32x1xf32>
    %172 = tpu.reciprocal %171 {approx = true} : vector<32x1xf32> -> vector<32x1xf32>
    %cst_56 = arith.constant dense<0.000000e+00> : vector<32x256xf32>
    %173 = tpu.matmul %172, %2, %cst_56 {dimension_numbers = #tpu.dot_dimension_numbers<[1], [0], [0], [1], [0, 0, 1, 1], [], []>} : vector<32x1xf32>, vector<1x256xf32>, vector<32x256xf32> -> vector<32x256xf32>
    %174 = vector.extract_strided_slice %173 {offsets = [16, 0], sizes = [16, 256], strides = [1, 1]} : vector<32x256xf32> to vector<16x256xf32>
    %cst_57 = arith.constant 1.000000e+00 : f32
    %175 = vector.broadcast %cst_57 : f32 to vector<16x256xf32>
    %176 = arith.addf %175, %174 : vector<16x256xf32>
    %177 = arith.mulf %1, %176 : vector<16x256xf32>
    %178 = vector.extract_strided_slice %173 {offsets = [0, 0], sizes = [16, 256], strides = [1, 1]} : vector<32x256xf32> to vector<16x256xf32>
    %cst_58 = arith.constant 1.000000e+00 : f32
    %179 = vector.broadcast %cst_58 : f32 to vector<16x256xf32>
    %180 = arith.addf %179, %178 : vector<16x256xf32>
    %181 = arith.mulf %156, %180 : vector<16x256xf32>
    %182 = arith.addf %177, %181 : vector<16x256xf32>
    %183 = vector.extract_strided_slice %3 {offsets = [0, 6], sizes = [16, 1], strides = [1, 1]} : vector<16x7xf32> to vector<16x1xf32>
    %cst_59 = arith.constant 0.000000e+00 : f32
    %184 = vector.broadcast %cst_59 : f32 to vector<16x256xf32>
    %185 = arith.cmpf oge, %182, %184 : vector<16x256xf32>
    %186 = vector.broadcast %183 : vector<16x1xf32> to vector<16x256xf32>
    %187 = arith.mulf %186, %182 : vector<16x256xf32>
    %188 = arith.select %185, %182, %187 : vector<16x256xi1>, vector<16x256xf32>
    %c0_60 = arith.constant 0 : index
    %c0_61 = arith.constant 0 : index
    %c0_62 = arith.constant 0 : index
    %189 = vector.load %arg11[%c0_60, %c0_61, %c0_62] : memref<1x16x256xf32, #tpu.memory_space<vmem>>, vector<1x16x256xf32>
    %190 = vector.shape_cast %189 : vector<1x16x256xf32> to vector<16x256xf32>
    %191 = vector.shape_cast %188 : vector<16x256xf32> to vector<1x16x256xf32>
    tpu.vector_store %arg11[%c0_60, %c0_61, %c0_62], %191 {strides = array<i32>} : memref<1x16x256xf32, #tpu.memory_space<vmem>>, vector<1x16x256xf32>,
    return
  }
  func.func @transform_0(%arg0: i32) -> (i32, i32, i32) {
    %c0_i32 = arith.constant 0 : i32
    %c0_i32_0 = arith.constant 0 : i32
    %c0_i32_1 = arith.constant 0 : i32
    return %arg0, %c0_i32, %c0_i32_0 : i32, i32, i32
  }
  func.func @transform_1(%arg0: i32) -> (i32, i32) {
    %c0_i32 = arith.constant 0 : i32
    %c0_i32_0 = arith.constant 0 : i32
    %c0_i32_1 = arith.constant 0 : i32
    return %c0_i32, %c0_i32_0 : i32, i32
  }
  func.func @transform_2(%arg0: i32) -> (i32, i32) {
    %c0_i32 = arith.constant 0 : i32
    %c0_i32_0 = arith.constant 0 : i32
    %c0_i32_1 = arith.constant 0 : i32
    return %c0_i32, %c0_i32_0 : i32, i32
  }
  func.func @transform_3(%arg0: i32) -> (i32, i32) {
    %c0_i32 = arith.constant 0 : i32
    %c0_i32_0 = arith.constant 0 : i32
    %c0_i32_1 = arith.constant 0 : i32
    return %c0_i32, %c0_i32_0 : i32, i32
  }
  func.func @transform_4(%arg0: i32) -> (i32, i32) {
    %c0_i32 = arith.constant 0 : i32
    %c0_i32_0 = arith.constant 0 : i32
    %c0_i32_1 = arith.constant 0 : i32
    return %c0_i32, %c0_i32_0 : i32, i32
  }
  func.func @transform_5(%arg0: i32) -> (i32, i32) {
    %c0_i32 = arith.constant 0 : i32
    %c0_i32_0 = arith.constant 0 : i32
    %c0_i32_1 = arith.constant 0 : i32
    return %c0_i32, %c0_i32_0 : i32, i32
  }
  func.func @transform_6(%arg0: i32) -> (i32, i32) {
    %c0_i32 = arith.constant 0 : i32
    %c0_i32_0 = arith.constant 0 : i32
    %c0_i32_1 = arith.constant 0 : i32
    return %c0_i32, %c0_i32_0 : i32, i32
  }
  func.func @transform_7(%arg0: i32) -> (i32, i32) {
    %c0_i32 = arith.constant 0 : i32
    %c0_i32_0 = arith.constant 0 : i32
    %c0_i32_1 = arith.constant 0 : i32
    return %c0_i32, %c0_i32_0 : i32, i32
  }
  func.func @transform_8(%arg0: i32) -> (i32, i32) {
    %c0_i32 = arith.constant 0 : i32
    %c0_i32_0 = arith.constant 0 : i32
    %c0_i32_1 = arith.constant 0 : i32
    return %c0_i32, %c0_i32_0 : i32, i32
  }
  func.func @transform_9(%arg0: i32) -> (i32, i32) {
    %c0_i32 = arith.constant 0 : i32
    %c0_i32_0 = arith.constant 0 : i32
    %c0_i32_1 = arith.constant 0 : i32
    return %c0_i32, %c0_i32_0 : i32, i32
  }
  func.func @transform_10(%arg0: i32) -> (i32, i32, i32) {
    %c0_i32 = arith.constant 0 : i32
    %c0_i32_0 = arith.constant 0 : i32
    %c0_i32_1 = arith.constant 0 : i32
    return %arg0, %c0_i32, %c0_i32_0 : i32, i32, i32
  }
}

module attributes {stable_mosaic.version = 11 : i64} {
  func.func @kernel(%arg0: i32, %arg1: memref<1x16x256xf32, #tpu.memory_space<vmem>>, %arg2: memref<1x256xf32, #tpu.memory_space<vmem>>, %arg3: memref<16x16xf32, #tpu.memory_space<vmem>>, %arg4: memref<16x32xf32, #tpu.memory_space<vmem>>, %arg5: memref<16x8xf32, #tpu.memory_space<vmem>>, %arg6: memref<16x16xf32, #tpu.memory_space<vmem>>, %arg7: memref<8x32xf32, #tpu.memory_space<vmem>>, %arg8: memref<32x8xf32, #tpu.memory_space<vmem>>, %arg9: memref<16x7xf32, #tpu.memory_space<vmem>>, %arg10: memref<12x256xf32, #tpu.memory_space<vmem>>, %arg11: memref<1x16x256xf32, #tpu.memory_space<vmem>>) attributes {dimension_semantics = [#tpu.dimension_semantics<parallel>], iteration_bounds = array<i64: 2>, scalar_prefetch = 0 : i64, scratch_operands = 0 : i64, tpu.core_type = #tpu.core_type<tc>, window_params = [{transform_indices = @transform_0, window_bounds = array<i64: 1, 16, 256>}, {pipeline_mode = #tpu.pipeline_mode<synchronous>, transform_indices = @transform_1, window_bounds = array<i64: 1, 256>}, {pipeline_mode = #tpu.pipeline_mode<synchronous>, transform_indices = @transform_2, window_bounds = array<i64: 16, 16>}, {pipeline_mode = #tpu.pipeline_mode<synchronous>, transform_indices = @transform_3, window_bounds = array<i64: 16, 32>}, {pipeline_mode = #tpu.pipeline_mode<synchronous>, transform_indices = @transform_4, window_bounds = array<i64: 16, 8>}, {pipeline_mode = #tpu.pipeline_mode<synchronous>, transform_indices = @transform_5, window_bounds = array<i64: 16, 16>}, {pipeline_mode = #tpu.pipeline_mode<synchronous>, transform_indices = @transform_6, window_bounds = array<i64: 8, 32>}, {pipeline_mode = #tpu.pipeline_mode<synchronous>, transform_indices = @transform_7, window_bounds = array<i64: 32, 8>}, {pipeline_mode = #tpu.pipeline_mode<synchronous>, transform_indices = @transform_8, window_bounds = array<i64: 16, 7>}, {pipeline_mode = #tpu.pipeline_mode<synchronous>, transform_indices = @transform_9, window_bounds = array<i64: 12, 256>}, {transform_indices = @transform_10, window_bounds = array<i64: 1, 16, 256>}]} {
    %c0 = arith.constant 0 : index
    %c0_0 = arith.constant 0 : index
    %c0_1 = arith.constant 0 : index
    %0 = vector.load %arg1[%c0, %c0_0, %c0_1] : memref<1x16x256xf32, #tpu.memory_space<vmem>>, vector<1x16x256xf32>
    %1 = vector.shape_cast %0 : vector<1x16x256xf32> to vector<16x256xf32>
    %c0_2 = arith.constant 0 : index
    %c0_3 = arith.constant 0 : index
    %2 = vector.load %arg2[%c0_2, %c0_3] : memref<1x256xf32, #tpu.memory_space<vmem>>, vector<1x256xf32>
    %c0_4 = arith.constant 0 : index
    %c0_5 = arith.constant 0 : index
    %3 = vector.load %arg9[%c0_4, %c0_5] : memref<16x7xf32, #tpu.memory_space<vmem>>, vector<16x7xf32>
    %c0_6 = arith.constant 0 : index
    %c0_7 = arith.constant 0 : index
    %4 = vector.load %arg10[%c0_6, %c0_7] : memref<12x256xf32, #tpu.memory_space<vmem>>, vector<12x256xf32>
    %5 = vector.extract_strided_slice %4 {offsets = [0, 0], sizes = [1, 256], strides = [1, 1]} : vector<12x256xf32> to vector<1x256xf32>
    %6 = vector.extract_strided_slice %4 {offsets = [1, 0], sizes = [1, 256], strides = [1, 1]} : vector<12x256xf32> to vector<1x256xf32>
    %7 = vector.extract_strided_slice %4 {offsets = [2, 0], sizes = [1, 256], strides = [1, 1]} : vector<12x256xf32> to vector<1x256xf32>
    %8 = vector.extract_strided_slice %4 {offsets = [3, 0], sizes = [1, 256], strides = [1, 1]} : vector<12x256xf32> to vector<1x256xf32>
    %9 = vector.extract_strided_slice %4 {offsets = [4, 0], sizes = [1, 256], strides = [1, 1]} : vector<12x256xf32> to vector<1x256xf32>
    %10 = vector.extract_strided_slice %4 {offsets = [5, 0], sizes = [1, 256], strides = [1, 1]} : vector<12x256xf32> to vector<1x256xf32>
    %11 = vector.extract_strided_slice %4 {offsets = [6, 0], sizes = [1, 256], strides = [1, 1]} : vector<12x256xf32> to vector<1x256xf32>
    %12 = vector.extract_strided_slice %4 {offsets = [7, 0], sizes = [1, 256], strides = [1, 1]} : vector<12x256xf32> to vector<1x256xf32>
    %13 = vector.extract_strided_slice %4 {offsets = [8, 0], sizes = [1, 256], strides = [1, 1]} : vector<12x256xf32> to vector<1x256xf32>
    %14 = vector.extract_strided_slice %4 {offsets = [9, 0], sizes = [1, 256], strides = [1, 1]} : vector<12x256xf32> to vector<1x256xf32>
    %15 = vector.extract_strided_slice %4 {offsets = [10, 0], sizes = [1, 256], strides = [1, 1]} : vector<12x256xf32> to vector<1x256xf32>
    %16 = vector.extract_strided_slice %4 {offsets = [11, 0], sizes = [1, 256], strides = [1, 1]} : vector<12x256xf32> to vector<1x256xf32>
    %c0_8 = arith.constant 0 : index
    %c0_9 = arith.constant 0 : index
    %17 = vector.load %arg3[%c0_8, %c0_9] : memref<16x16xf32, #tpu.memory_space<vmem>>, vector<16x16xf32>
    %cst = arith.constant dense<0.000000e+00> : vector<16x256xf32>
    %18 = tpu.matmul %17, %1, %cst {dimension_numbers = #tpu.dot_dimension_numbers<[1], [0], [0], [1], [0, 0, 1, 1], [], []>} : vector<16x16xf32>, vector<16x256xf32>, vector<16x256xf32> -> vector<16x256xf32>
    %cst_10 = arith.constant 0.407807201 : f32
    %19 = vector.broadcast %cst_10 : f32 to vector<16x256xf32>
    %20 = arith.mulf %19, %18 : vector<16x256xf32>
    %c1_i32 = arith.constant 1 : i32
    %21 = tpu.dynamic_rotate %18 by %c1_i32 dim 1 : vector<16x256xf32>, i32 -> vector<16x256xf32>
    %22 = vector.broadcast %5 : vector<1x256xf32> to vector<16x256xf32>
    %23 = arith.mulf %22, %21 : vector<16x256xf32>
    %24 = arith.addf %20, %23 : vector<16x256xf32>
    %c255_i32 = arith.constant 255 : i32
    %25 = tpu.dynamic_rotate %18 by %c255_i32 dim 1 : vector<16x256xf32>, i32 -> vector<16x256xf32>
    %26 = vector.broadcast %6 : vector<1x256xf32> to vector<16x256xf32>
    %27 = arith.mulf %26, %25 : vector<16x256xf32>
    %28 = arith.addf %24, %27 : vector<16x256xf32>
    %cst_11 = arith.constant 0.367026478 : f32
    %29 = vector.broadcast %cst_11 : f32 to vector<16x256xf32>
    %30 = arith.mulf %29, %28 : vector<16x256xf32>
    %c16_i32 = arith.constant 16 : i32
    %31 = tpu.dynamic_rotate %28 by %c16_i32 dim 1 : vector<16x256xf32>, i32 -> vector<16x256xf32>
    %32 = vector.broadcast %7 : vector<1x256xf32> to vector<16x256xf32>
    %33 = arith.mulf %32, %31 : vector<16x256xf32>
    %34 = arith.addf %30, %33 : vector<16x256xf32>
    %c240_i32 = arith.constant 240 : i32
    %35 = tpu.dynamic_rotate %28 by %c240_i32 dim 1 : vector<16x256xf32>, i32 -> vector<16x256xf32>
    %36 = vector.broadcast %8 : vector<1x256xf32> to vector<16x256xf32>
    %37 = arith.mulf %36, %35 : vector<16x256xf32>
    %38 = arith.addf %34, %37 : vector<16x256xf32>
    %cst_12 = arith.constant -1.440000e+01 : f32
    %39 = vector.broadcast %cst_12 : f32 to vector<16x256xf32>
    %40 = arith.mulf %39, %38 : vector<16x256xf32>
    %c16_i32_13 = arith.constant 16 : i32
    %41 = tpu.dynamic_rotate %38 by %c16_i32_13 dim 1 : vector<16x256xf32>, i32 -> vector<16x256xf32>
    %42 = vector.broadcast %11 : vector<1x256xf32> to vector<16x256xf32>
    %43 = arith.mulf %42, %41 : vector<16x256xf32>
    %44 = arith.addf %40, %43 : vector<16x256xf32>
    %c240_i32_14 = arith.constant 240 : i32
    %45 = tpu.dynamic_rotate %38 by %c240_i32_14 dim 1 : vector<16x256xf32>, i32 -> vector<16x256xf32>
    %46 = vector.broadcast %12 : vector<1x256xf32> to vector<16x256xf32>
    %47 = arith.mulf %46, %45 : vector<16x256xf32>
    %48 = arith.addf %44, %47 : vector<16x256xf32>
    %c1_i32_15 = arith.constant 1 : i32
    %49 = tpu.dynamic_rotate %38 by %c1_i32_15 dim 1 : vector<16x256xf32>, i32 -> vector<16x256xf32>
    %50 = vector.broadcast %9 : vector<1x256xf32> to vector<16x256xf32>
    %51 = arith.mulf %50, %49 : vector<16x256xf32>
    %52 = arith.addf %48, %51 : vector<16x256xf32>
    %c255_i32_16 = arith.constant 255 : i32
    %53 = tpu.dynamic_rotate %38 by %c255_i32_16 dim 1 : vector<16x256xf32>, i32 -> vector<16x256xf32>
    %54 = vector.broadcast %10 : vector<1x256xf32> to vector<16x256xf32>
    %55 = arith.mulf %54, %53 : vector<16x256xf32>
    %56 = arith.addf %52, %55 : vector<16x256xf32>
    %c0_17 = arith.constant 0 : index
    %c0_18 = arith.constant 0 : index
    %57 = vector.load %arg4[%c0_17, %c0_18] : memref<16x32xf32, #tpu.memory_space<vmem>>, vector<16x32xf32>
    %58 = arith.subf %38, %1 : vector<16x256xf32>
    %59 = tpu.concatenate %58, %56 in 0 : vector<16x256xf32>, vector<16x256xf32> -> vector<32x256xf32>
    %cst_19 = arith.constant dense<0.000000e+00> : vector<16x256xf32>
    %60 = tpu.matmul %57, %59, %cst_19 {dimension_numbers = #tpu.dot_dimension_numbers<[1], [0], [0], [1], [0, 0, 1, 1], [], []>} : vector<16x32xf32>, vector<32x256xf32>, vector<16x256xf32> -> vector<16x256xf32>
    %61 = vector.extract_strided_slice %3 {offsets = [0, 0], sizes = [16, 1], strides = [1, 1]} : vector<16x7xf32> to vector<16x1xf32>
    %62 = vector.broadcast %61 : vector<16x1xf32> to vector<16x256xf32>
    %63 = arith.addf %60, %62 : vector<16x256xf32>
    %64 = vector.extract_strided_slice %3 {offsets = [0, 1], sizes = [16, 1], strides = [1, 1]} : vector<16x7xf32> to vector<16x1xf32>
    %cst_20 = arith.constant 0.000000e+00 : f32
    %65 = vector.broadcast %cst_20 : f32 to vector<16x256xf32>
    %66 = arith.cmpf oge, %63, %65 : vector<16x256xf32>
    %67 = vector.broadcast %64 : vector<16x1xf32> to vector<16x256xf32>
    %68 = arith.mulf %67, %63 : vector<16x256xf32>
    %69 = arith.select %66, %63, %68 : vector<16x256xi1>, vector<16x256xf32>
    %70 = arith.mulf %69, %69 : vector<16x256xf32>
    %71 = tpu.concatenate %69, %70 in 0 : vector<16x256xf32>, vector<16x256xf32> -> vector<32x256xf32>
    %cst_21 = arith.constant dense<0.000000e+00> : vector<32x1xf32>
    %72 = tpu.matmul %71, %2, %cst_21 {dimension_numbers = #tpu.dot_dimension_numbers<[1], [1], [0], [0], [0, 0, 1, 0], [], []>} : vector<32x256xf32>, vector<1x256xf32>, vector<32x1xf32> -> vector<32x1xf32>
    %73 = vector.extract_strided_slice %72 {offsets = [0, 0], sizes = [16, 1], strides = [1, 1]} : vector<32x1xf32> to vector<16x1xf32>
    %cst_22 = arith.constant 3.906250e-03 : f32
    %74 = vector.broadcast %cst_22 : f32 to vector<16x1xf32>
    %75 = arith.mulf %73, %74 : vector<16x1xf32>
    %76 = vector.extract_strided_slice %72 {offsets = [16, 0], sizes = [16, 1], strides = [1, 1]} : vector<32x1xf32> to vector<16x1xf32>
    %cst_23 = arith.constant 3.906250e-03 : f32
    %77 = vector.broadcast %cst_23 : f32 to vector<16x1xf32>
    %78 = arith.mulf %76, %77 : vector<16x1xf32>
    %79 = arith.mulf %75, %75 : vector<16x1xf32>
    %80 = arith.subf %78, %79 : vector<16x1xf32>
    %cst_24 = arith.constant 0.000000e+00 : f32
    %81 = vector.broadcast %cst_24 : f32 to vector<16x1xf32>
    %82 = arith.maximumf %80, %81 : vector<16x1xf32>
    %cst_25 = arith.constant 9.99999974E-6 : f32
    %83 = vector.broadcast %cst_25 : f32 to vector<16x1xf32>
    %84 = arith.addf %82, %83 : vector<16x1xf32>
    %85 = math.rsqrt %84 : vector<16x1xf32>
    %cst_26 = arith.constant 0.000000e+00 : f32
    %86 = vector.broadcast %cst_26 : f32 to vector<16x1xf32>
    %87 = arith.subf %86, %75 : vector<16x1xf32>
    %88 = arith.mulf %87, %85 : vector<16x1xf32>
    %89 = tpu.concatenate %85, %88 in 0 : vector<16x1xf32>, vector<16x1xf32> -> vector<32x1xf32>
    %cst_27 = arith.constant dense<0.000000e+00> : vector<32x256xf32>
    %90 = tpu.matmul %89, %2, %cst_27 {dimension_numbers = #tpu.dot_dimension_numbers<[1], [0], [0], [1], [0, 0, 1, 1], [], []>} : vector<32x1xf32>, vector<1x256xf32>, vector<32x256xf32> -> vector<32x256xf32>
    %91 = vector.extract_strided_slice %90 {offsets = [0, 0], sizes = [16, 256], strides = [1, 1]} : vector<32x256xf32> to vector<16x256xf32>
    %92 = arith.mulf %69, %91 : vector<16x256xf32>
    %93 = vector.extract_strided_slice %90 {offsets = [16, 0], sizes = [16, 256], strides = [1, 1]} : vector<32x256xf32> to vector<16x256xf32>
    %94 = arith.addf %92, %93 : vector<16x256xf32>
    %95 = vector.extract_strided_slice %94 {offsets = [0, 0], sizes = [8, 256], strides = [1, 1]} : vector<16x256xf32> to vector<8x256xf32>
    %96 = vector.extract_strided_slice %94 {offsets = [8, 0], sizes = [8, 256], strides = [1, 1]} : vector<16x256xf32> to vector<8x256xf32>
    %97 = arith.mulf %95, %96 : vector<8x256xf32>
    %c1_i32_28 = arith.constant 1 : i32
    %98 = tpu.dynamic_rotate %97 by %c1_i32_28 dim 1 : vector<8x256xf32>, i32 -> vector<8x256xf32>
    %99 = vector.broadcast %13 : vector<1x256xf32> to vector<8x256xf32>
    %100 = arith.addf %98, %99 : vector<8x256xf32>
    %c255_i32_29 = arith.constant 255 : i32
    %101 = tpu.dynamic_rotate %97 by %c255_i32_29 dim 1 : vector<8x256xf32>, i32 -> vector<8x256xf32>
    %102 = vector.broadcast %14 : vector<1x256xf32> to vector<8x256xf32>
    %103 = arith.addf %101, %102 : vector<8x256xf32>
    %104 = arith.maximumf %100, %103 : vector<8x256xf32>
    %105 = arith.maximumf %97, %104 : vector<8x256xf32>
    %c16_i32_30 = arith.constant 16 : i32
    %106 = tpu.dynamic_rotate %105 by %c16_i32_30 dim 1 : vector<8x256xf32>, i32 -> vector<8x256xf32>
    %107 = vector.broadcast %15 : vector<1x256xf32> to vector<8x256xf32>
    %108 = arith.addf %106, %107 : vector<8x256xf32>
    %c240_i32_31 = arith.constant 240 : i32
    %109 = tpu.dynamic_rotate %105 by %c240_i32_31 dim 1 : vector<8x256xf32>, i32 -> vector<8x256xf32>
    %110 = vector.broadcast %16 : vector<1x256xf32> to vector<8x256xf32>
    %111 = arith.addf %109, %110 : vector<8x256xf32>
    %112 = arith.maximumf %108, %111 : vector<8x256xf32>
    %113 = arith.maximumf %105, %112 : vector<8x256xf32>
    %c0_32 = arith.constant 0 : index
    %c0_33 = arith.constant 0 : index
    %114 = vector.load %arg5[%c0_32, %c0_33] : memref<16x8xf32, #tpu.memory_space<vmem>>, vector<16x8xf32>
    %cst_34 = arith.constant dense<0.000000e+00> : vector<16x256xf32>
    %115 = tpu.matmul %114, %113, %cst_34 {dimension_numbers = #tpu.dot_dimension_numbers<[1], [0], [0], [1], [0, 0, 1, 1], [], []>} : vector<16x8xf32>, vector<8x256xf32>, vector<16x256xf32> -> vector<16x256xf32>
    %116 = vector.extract_strided_slice %3 {offsets = [0, 2], sizes = [16, 1], strides = [1, 1]} : vector<16x7xf32> to vector<16x1xf32>
    %117 = vector.broadcast %116 : vector<16x1xf32> to vector<16x256xf32>
    %118 = arith.addf %115, %117 : vector<16x256xf32>
    %119 = vector.extract_strided_slice %3 {offsets = [0, 3], sizes = [16, 1], strides = [1, 1]} : vector<16x7xf32> to vector<16x1xf32>
    %cst_35 = arith.constant 0.000000e+00 : f32
    %120 = vector.broadcast %cst_35 : f32 to vector<16x256xf32>
    %121 = arith.cmpf oge, %118, %120 : vector<16x256xf32>
    %122 = vector.broadcast %119 : vector<16x1xf32> to vector<16x256xf32>
    %123 = arith.mulf %122, %118 : vector<16x256xf32>
    %124 = arith.select %121, %118, %123 : vector<16x256xi1>, vector<16x256xf32>
    %125 = arith.mulf %124, %124 : vector<16x256xf32>
    %126 = tpu.concatenate %124, %125 in 0 : vector<16x256xf32>, vector<16x256xf32> -> vector<32x256xf32>
    %cst_36 = arith.constant dense<0.000000e+00> : vector<32x1xf32>
    %127 = tpu.matmul %126, %2, %cst_36 {dimension_numbers = #tpu.dot_dimension_numbers<[1], [1], [0], [0], [0, 0, 1, 0], [], []>} : vector<32x256xf32>, vector<1x256xf32>, vector<32x1xf32> -> vector<32x1xf32>
    %c0_37 = arith.constant 0 : index
    %c0_38 = arith.constant 0 : index
    %128 = vector.load %arg6[%c0_37, %c0_38] : memref<16x16xf32, #tpu.memory_space<vmem>>, vector<16x16xf32>
    %129 = vector.extract_strided_slice %127 {offsets = [0, 0], sizes = [16, 1], strides = [1, 1]} : vector<32x1xf32> to vector<16x1xf32>
    %130 = vector.extract_strided_slice %127 {offsets = [16, 0], sizes = [16, 1], strides = [1, 1]} : vector<32x1xf32> to vector<16x1xf32>
    %131 = tpu.concatenate %129, %130 in 1 : vector<16x1xf32>, vector<16x1xf32> -> vector<16x2xf32>
    %cst_39 = arith.constant dense<0.000000e+00> : vector<16x2xf32>
    %132 = tpu.matmul %128, %131, %cst_39 {dimension_numbers = #tpu.dot_dimension_numbers<[1], [0], [0], [1], [0, 0, 1, 1], [], []>} : vector<16x16xf32>, vector<16x2xf32>, vector<16x2xf32> -> vector<16x2xf32>
    %133 = vector.extract_strided_slice %132 {offsets = [0, 0], sizes = [16, 1], strides = [1, 1]} : vector<16x2xf32> to vector<16x1xf32>
    %cst_40 = arith.constant 9.765625E-4 : f32
    %134 = vector.broadcast %cst_40 : f32 to vector<16x1xf32>
    %135 = arith.mulf %133, %134 : vector<16x1xf32>
    %136 = vector.extract_strided_slice %132 {offsets = [0, 1], sizes = [16, 1], strides = [1, 1]} : vector<16x2xf32> to vector<16x1xf32>
    %cst_41 = arith.constant 9.765625E-4 : f32
    %137 = vector.broadcast %cst_41 : f32 to vector<16x1xf32>
    %138 = arith.mulf %136, %137 : vector<16x1xf32>
    %139 = arith.mulf %135, %135 : vector<16x1xf32>
    %140 = arith.subf %138, %139 : vector<16x1xf32>
    %cst_42 = arith.constant 0.000000e+00 : f32
    %141 = vector.broadcast %cst_42 : f32 to vector<16x1xf32>
    %142 = arith.maximumf %140, %141 : vector<16x1xf32>
    %cst_43 = arith.constant 9.99999974E-6 : f32
    %143 = vector.broadcast %cst_43 : f32 to vector<16x1xf32>
    %144 = arith.addf %142, %143 : vector<16x1xf32>
    %145 = math.rsqrt %144 : vector<16x1xf32>
    %146 = vector.extract_strided_slice %3 {offsets = [0, 4], sizes = [16, 1], strides = [1, 1]} : vector<16x7xf32> to vector<16x1xf32>
    %147 = arith.mulf %146, %145 : vector<16x1xf32>
    %148 = vector.extract_strided_slice %3 {offsets = [0, 5], sizes = [16, 1], strides = [1, 1]} : vector<16x7xf32> to vector<16x1xf32>
    %149 = arith.mulf %135, %147 : vector<16x1xf32>
    %150 = arith.subf %148, %149 : vector<16x1xf32>
    %151 = tpu.concatenate %147, %150 in 0 : vector<16x1xf32>, vector<16x1xf32> -> vector<32x1xf32>
    %cst_44 = arith.constant dense<0.000000e+00> : vector<32x256xf32>
    %152 = tpu.matmul %151, %2, %cst_44 {dimension_numbers = #tpu.dot_dimension_numbers<[1], [0], [0], [1], [0, 0, 1, 1], [], []>} : vector<32x1xf32>, vector<1x256xf32>, vector<32x256xf32> -> vector<32x256xf32>
    %153 = vector.extract_strided_slice %152 {offsets = [0, 0], sizes = [16, 256], strides = [1, 1]} : vector<32x256xf32> to vector<16x256xf32>
    %154 = arith.mulf %124, %153 : vector<16x256xf32>
    %155 = vector.extract_strided_slice %152 {offsets = [16, 0], sizes = [16, 256], strides = [1, 1]} : vector<32x256xf32> to vector<16x256xf32>
    %156 = arith.addf %154, %155 : vector<16x256xf32>
    %157 = tpu.concatenate %156, %1 in 0 : vector<16x256xf32>, vector<16x256xf32> -> vector<32x256xf32>
    %cst_45 = arith.constant dense<0.000000e+00> : vector<32x1xf32>
    %158 = tpu.matmul %157, %2, %cst_45 {dimension_numbers = #tpu.dot_dimension_numbers<[1], [1], [0], [0], [0, 0, 1, 0], [], []>} : vector<32x256xf32>, vector<1x256xf32>, vector<32x1xf32> -> vector<32x1xf32>
    %cst_46 = arith.constant 3.906250e-03 : f32
    %159 = vector.broadcast %cst_46 : f32 to vector<32x1xf32>
    %160 = arith.mulf %158, %159 : vector<32x1xf32>
    %c0_47 = arith.constant 0 : index
    %c0_48 = arith.constant 0 : index
    %161 = vector.load %arg7[%c0_47, %c0_48] : memref<8x32xf32, #tpu.memory_space<vmem>>, vector<8x32xf32>
    %cst_49 = arith.constant dense<0.000000e+00> : vector<8x1xf32>
    %162 = tpu.matmul %161, %160, %cst_49 {dimension_numbers = #tpu.dot_dimension_numbers<[1], [0], [0], [1], [0, 0, 1, 1], [], []>} : vector<8x32xf32>, vector<32x1xf32>, vector<8x1xf32> -> vector<8x1xf32>
    %cst_50 = arith.constant 0.000000e+00 : f32
    %163 = vector.broadcast %cst_50 : f32 to vector<8x1xf32>
    %164 = arith.maximumf %162, %163 : vector<8x1xf32>
    %c0_51 = arith.constant 0 : index
    %c0_52 = arith.constant 0 : index
    %165 = vector.load %arg8[%c0_51, %c0_52] : memref<32x8xf32, #tpu.memory_space<vmem>>, vector<32x8xf32>
    %cst_53 = arith.constant dense<0.000000e+00> : vector<32x1xf32>
    %166 = tpu.matmul %165, %164, %cst_53 {dimension_numbers = #tpu.dot_dimension_numbers<[1], [0], [0], [1], [0, 0, 1, 1], [], []>} : vector<32x8xf32>, vector<8x1xf32>, vector<32x1xf32> -> vector<32x1xf32>
    %cst_54 = arith.constant 0.000000e+00 : f32
    %167 = vector.broadcast %cst_54 : f32 to vector<32x1xf32>
    %168 = arith.subf %167, %166 : vector<32x1xf32>
    %169 = math.exp %168 : vector<32x1xf32>
    %cst_55 = arith.constant 1.000000e+00 : f32
    %170 = vector.broadcast %cst_55 : f32 to vector<32x1xf32>
    %171 = arith.addf %170, %169 : vector<32x1xf32>
    %172 = tpu.reciprocal %171 {approx = true} : vector<32x1xf32> -> vector<32x1xf32>
    %cst_56 = arith.constant dense<0.000000e+00> : vector<32x256xf32>
    %173 = tpu.matmul %172, %2, %cst_56 {dimension_numbers = #tpu.dot_dimension_numbers<[1], [0], [0], [1], [0, 0, 1, 1], [], []>} : vector<32x1xf32>, vector<1x256xf32>, vector<32x256xf32> -> vector<32x256xf32>
    %174 = vector.extract_strided_slice %173 {offsets = [16, 0], sizes = [16, 256], strides = [1, 1]} : vector<32x256xf32> to vector<16x256xf32>
    %cst_57 = arith.constant 1.000000e+00 : f32
    %175 = vector.broadcast %cst_57 : f32 to vector<16x256xf32>
    %176 = arith.addf %175, %174 : vector<16x256xf32>
    %177 = arith.mulf %1, %176 : vector<16x256xf32>
    %178 = vector.extract_strided_slice %173 {offsets = [0, 0], sizes = [16, 256], strides = [1, 1]} : vector<32x256xf32> to vector<16x256xf32>
    %cst_58 = arith.constant 1.000000e+00 : f32
    %179 = vector.broadcast %cst_58 : f32 to vector<16x256xf32>
    %180 = arith.addf %179, %178 : vector<16x256xf32>
    %181 = arith.mulf %156, %180 : vector<16x256xf32>
    %182 = arith.addf %177, %181 : vector<16x256xf32>
    %183 = vector.extract_strided_slice %3 {offsets = [0, 6], sizes = [16, 1], strides = [1, 1]} : vector<16x7xf32> to vector<16x1xf32>
    %cst_59 = arith.constant 0.000000e+00 : f32
    %184 = vector.broadcast %cst_59 : f32 to vector<16x256xf32>
    %185 = arith.cmpf oge, %182, %184 : vector<16x256xf32>
    %186 = vector.broadcast %183 : vector<16x1xf32> to vector<16x256xf32>
    %187 = arith.mulf %186, %182 : vector<16x256xf32>
    %188 = arith.select %185, %182, %187 : vector<16x256xi1>, vector<16x256xf32>
    %c0_60 = arith.constant 0 : index
    %c0_61 = arith.constant 0 : index
    %c0_62 = arith.constant 0 : index
    %189 = vector.load %arg11[%c0_60, %c0_61, %c0_62] : memref<1x16x256xf32, #tpu.memory_space<vmem>>, vector<1x16x256xf32>
    %190 = vector.shape_cast %189 : vector<1x16x256xf32> to vector<16x256xf32>
    %191 = vector.shape_cast %188 : vector<16x256xf32> to vector<1x16x256xf32>
    tpu.vector_store %arg11[%c0_60, %c0_61, %c0_62], %191 {strides = array<i32>} : memref<1x16x256xf32, #tpu.memory_space<vmem>>, vector<1x16x256xf32>,
    return
  }
  func.func @transform_0(%arg0: i32) -> (i32, i32, i32) {
    %c0_i32 = arith.constant 0 : i32
    %c0_i32_0 = arith.constant 0 : i32
    %c0_i32_1 = arith.constant 0 : i32
    return %arg0, %c0_i32, %c0_i32_0 : i32, i32, i32
  }
  func.func @transform_1(%arg0: i32) -> (i32, i32) {
    %c0_i32 = arith.constant 0 : i32
    %c0_i32_0 = arith.constant 0 : i32
    %c0_i32_1 = arith.constant 0 : i32
    return %c0_i32, %c0_i32_0 : i32, i32
  }
  func.func @transform_2(%arg0: i32) -> (i32, i32) {
    %c0_i32 = arith.constant 0 : i32
    %c0_i32_0 = arith.constant 0 : i32
    %c0_i32_1 = arith.constant 0 : i32
    return %c0_i32, %c0_i32_0 : i32, i32
  }
  func.func @transform_3(%arg0: i32) -> (i32, i32) {
    %c0_i32 = arith.constant 0 : i32
    %c0_i32_0 = arith.constant 0 : i32
    %c0_i32_1 = arith.constant 0 : i32
    return %c0_i32, %c0_i32_0 : i32, i32
  }
  func.func @transform_4(%arg0: i32) -> (i32, i32) {
    %c0_i32 = arith.constant 0 : i32
    %c0_i32_0 = arith.constant 0 : i32
    %c0_i32_1 = arith.constant 0 : i32
    return %c0_i32, %c0_i32_0 : i32, i32
  }
  func.func @transform_5(%arg0: i32) -> (i32, i32) {
    %c0_i32 = arith.constant 0 : i32
    %c0_i32_0 = arith.constant 0 : i32
    %c0_i32_1 = arith.constant 0 : i32
    return %c0_i32, %c0_i32_0 : i32, i32
  }
  func.func @transform_6(%arg0: i32) -> (i32, i32) {
    %c0_i32 = arith.constant 0 : i32
    %c0_i32_0 = arith.constant 0 : i32
    %c0_i32_1 = arith.constant 0 : i32
    return %c0_i32, %c0_i32_0 : i32, i32
  }
  func.func @transform_7(%arg0: i32) -> (i32, i32) {
    %c0_i32 = arith.constant 0 : i32
    %c0_i32_0 = arith.constant 0 : i32
    %c0_i32_1 = arith.constant 0 : i32
    return %c0_i32, %c0_i32_0 : i32, i32
  }
  func.func @transform_8(%arg0: i32) -> (i32, i32) {
    %c0_i32 = arith.constant 0 : i32
    %c0_i32_0 = arith.constant 0 : i32
    %c0_i32_1 = arith.constant 0 : i32
    return %c0_i32, %c0_i32_0 : i32, i32
  }
  func.func @transform_9(%arg0: i32) -> (i32, i32) {
    %c0_i32 = arith.constant 0 : i32
    %c0_i32_0 = arith.constant 0 : i32
    %c0_i32_1 = arith.constant 0 : i32
    return %c0_i32, %c0_i32_0 : i32, i32
  }
  func.func @transform_10(%arg0: i32) -> (i32, i32, i32) {
    %c0_i32 = arith.constant 0 : i32
    %c0_i32_0 = arith.constant 0 : i32
    %c0_i32_1 = arith.constant 0 : i32
    return %arg0, %c0_i32, %c0_i32_0 : i32, i32, i32
  }
}

</mosaic_0001>

<bundles_post_ra>
// kernel: tpu_custom_call.1
= control target key start
LH: loop header
LB: loop body
LE: loop exit
PB: predicated region body
PF: predicated region fallthrough
CT: control target
= control target key end

     0   :  { %15 = vsyncpa [#allocation3], 0  ;;  %s3707_s0 = inlined_call_operand.vmem [shape: f32[2,16,256], index: 0, kind: input, shape index: {}]   ;;  %s3708_s1 = inlined_call_operand.vmem [shape: f32[1,256], index: 1, kind: input, shape index: {}]   ;;  %s3709_s2 = inlined_call_operand.hbm [shape: f32[16,16], index: 2, kind: input, shape index: {}]   ;;  %s3710_s3 = inlined_call_operand.hbm [shape: f32[16,32], index: 3, kind: input, shape index: {}]   ;;  %s3711_s4 = inlined_call_operand.vmem [shape: f32[16,8], index: 4, kind: input, shape index: {}]   ;;  %s3712_s5 = inlined_call_operand.hbm [shape: f32[16,16], index: 5, kind: input, shape index: {}]   ;;  %s3713_s6 = inlined_call_operand.hbm [shape: f32[8,32], index: 6, kind: input, shape index: {}]   ;;  %s3714_s7 = inlined_call_operand.vmem [shape: f32[32,8], index: 7, kind: input, shape index: {}]   ;;  %s3715_s8 = inlined_call_operand.vmem [shape: f32[16,7], index: 8, kind: input, shape index: {}]   ;;  %s3716_s9 = inlined_call_operand.vmem [shape: f32[12,256], index: 9, kind: input, shape index: {}]   ;;  %s3717_s10 = inlined_call_operand.hbm [shape: f32[2,16,256], index: 10, kind: output, shape index: {}]  }
   0x1   :  { %16 = vsyncpa [#allocation6], 0 }
   0x2   :  { %17 = vsyncpa [#allocation9], 0 }
   0x3   :  { %18 = vsyncpa [#allocation4], 0 }
   0x4   :  { %20 = vsyncpa [#allocation4 + $0x1], 0  ;;  %s3017_s13 = smov 0   ;;  %s3019_s14 = smov 0  }
   0x5   :  { %s3021_s15 = smov 0   ;;  %s3023_s16 = smov 0  }
   0x6 LB: > { %3727 = sst [smem:[#allocation15_spill]] %s2925_s13  ;;  %s3038_s17 = sadd.s32 4294967295, %s2937_s16   ;;  %s2937_s16 = sphi %s3023_s16, %s3750_s16   ;;  %s2933_s15 = sphi %s3021_s15, %s3752_s15   ;;  %s2929_s14 = sphi %s3019_s14, %s3754_s14   ;;  %s2925_s13 = sphi %s3017_s13, %s3753_s13  }
   0x7   : > { %3728 = sst [smem:[#allocation16_spill]] %s2933_s15  ;;  %s2413_s18 = sadd.s32 4294967294, %s2937_s16  }
   0x8   : > { %3729 = sst [smem:[#allocation17_spill]] %s2937_s16  ;;  %s3042_s19 = sadd.s32 1, %s2937_s16  }
   0x9   : > { %3730 = sst [smem:[#allocation18_spill]] %s3042_s19  ;;  %s248_s20 = sadd.s32 1, %s2933_s15 }
   0xa   : > { %s245_s21 = ssub.s32 %s2937_s16, %s3042_s19  ;;  %p258_p0 = scmp.ne.s32.totalorder %s2933_s15, %s2929_s14 }
   0xb   : > { %p246_p1 = scmp.eq.s32.totalorder %s245_s21, 0  ;;  %p259_p2 = scmp.eq.s32.totalorder %s3038_s17, 1 }
   0xc   : > { %p264_p3 = scmp.ne.s32.totalorder %s2929_s14, %s2925_s13  ;;  %p265_p4 = scmp.eq.s32.totalorder %s2413_s18, 1 }
   0xd   : > { %s3053_s22 = scalar_select %p246_p1, %s2933_s15, %s248_s20  }
   0xe   : > { %p3055_p5 = por %p259_p2, %p258_p0  ;;  %p3059_p6 = por %p265_p4, %p264_p3 }
   0xf   : > { %3731 = sst [smem:[#allocation19_spill]] %s3053_s22  ;;  %p2414_p7 = scmp.ge.s32.totalorder %s2937_s16, 1 }
  0x10   : > { %s3732_s23 = scalar_select %p3055_p5, 1, 0 }
  0x11   : > { %s3733_s24 = scalar_select %p3059_p6, 1, 0 }
  0x12   : > { %p272_p8 = scmp.lt.s32.totalorder %s2937_s16, 3  ;;  %p3719_p9 = scmp.eq.s32.totalorder %s3038_s17, 0 }
  0x13   : > { %3734 = sst [smem:[#allocation20_spill]] %s3733_s24  ;;  %s2939_s26 = smov [#allocation5]  }
  0x14   : > { %p3066_p10 = pnand %p2414_p7, %p272_p8  ;;  %s300_s27 = sshll.u32 %s2939_s26, 4  ;;  %s3072_s27 = int_to_ptr.vmem [resolvable:$true] %s300_s27 }
  0x15   : > { %s2940_s29 = smov [#allocation2]   ;;  %s2941_s11 = smov [#allocation7]  }
  0x16   : > { %s3735_s25 = scalar_select %p3066_p10, 1, 0 }
  0x17   : > { %p2633_p11 = pneg %p3066_p10  ;;  %s287_s30 = sshll.u32 %s2940_s29, 4  ;;  %s3080_s30 = int_to_ptr.vmem [resolvable:$true] %s287_s30 }
  0x18   : > { %s3082_s12 = sshll.u32 %s2941_s11, 4  ;;  %s2751_s21 = scalar_lea.hbm %s3710_s3, 256  ;;  %s317_s12 = int_to_ptr.vmem [resolvable:$true] %s3082_s12 }
  0x19   : > { %p3076_p12 = pnand %p3719_p9, %p2633_p11  ;;  %p2752_p13 = scmp.ne.s32.totalorder %s3710_s3, %s2751_s21 }
  0x1a   : > { %p2758_p3 = scmp.lt.u32.totalorder %s2751_s21, %s3710_s3 }
  0x1b   : > { %p3092_p0 = pneg %p3076_p12 }
  0x1d   : > { %p2754_p1 = pnand %p3092_p0, %p2752_p13 }
  0x1f   : > { %p2755_p2 = pneg %p2754_p1 }
  0x21   : > { %p2760_p4 = pnand %p2758_p3, %p2755_p2 }
  0x23   : > { %2763 = shalt.err (!%p2760_p4)
}
  0x24   : > { %s2764_s22 = scalar_lea.vmem %s3072_s27, 256  ;;  %p2772_p9 = scmp.lt.s32.totalorder %s3072_s27, %s3072_s27 }
  0x25   : > { %p2765_p7 = scmp.ne.s32.totalorder %s3072_s27, %s2764_s22  ;;  %p2773_p6 = scmp.lt.s32.totalorder %s2764_s22, %s2764_s22 }
  0x27   : > { %p2767_p8 = pnand %p2765_p7, %p3092_p0  ;;  %p2774_p13 = por %p2773_p6, %p2772_p9 }
  0x29   : > { %p2768_p11 = pneg %p2767_p8 }
  0x2b   : > { %p2775_p1 = pnand %p2774_p13, %p2768_p11 }
  0x2d   : > { %2778 = shalt.err (!%p2775_p1)
}
  0x2e   : > { %s2942_s18 = smov 128   ;;  %s2943_s20 = smov 8  }
  0x2f   : > { %2639 = dma.hbm_to_vmem [thread:$0]  (!%p3076_p12), %s3710_s3, 256, %s3072_s27, [#allocation6], %s2942_s18, %s2942_s18, %s2943_s20  }
  0x30   : > { %s2779_s22 = scalar_lea.hbm %s3709_s2, 256 }
  0x31   : > { %p2780_p6 = scmp.ne.s32.totalorder %s3709_s2, %s2779_s22  ;;  %p2786_p3 = scmp.lt.u32.totalorder %s2779_s22, %s3709_s2 }
  0x33   : > { %p2782_p9 = pnand %p2780_p6, %p3092_p0 }
  0x35   : > { %p2783_p2 = pneg %p2782_p9 }
  0x37   : > { %p2788_p4 = pnand %p2786_p3, %p2783_p2 }
  0x39   : > { %2791 = shalt.err (!%p2788_p4)
}
  0x3a   : > { %s2792_s27 = scalar_lea.vmem %s3080_s30, 256  ;;  %p2800_p13 = scmp.lt.s32.totalorder %s3080_s30, %s3080_s30 }
  0x3b   : > { %p2793_p7 = scmp.ne.s32.totalorder %s3080_s30, %s2792_s27  ;;  %p2801_p1 = scmp.lt.s32.totalorder %s2792_s27, %s2792_s27 }
  0x3d   : > { %p2795_p8 = pnand %p2793_p7, %p3092_p0  ;;  %p2802_p6 = por %p2801_p1, %p2800_p13 }
  0x3f   : > { %p2796_p11 = pneg %p2795_p8 }
  0x41   : > { %p2803_p9 = pnand %p2802_p6, %p2796_p11 }
  0x43   : > { %2806 = shalt.err (!%p2803_p9)
}
  0x44   : > { %2636 = dma.hbm_to_vmem [thread:$0]  (!%p3076_p12), %s3709_s2, 256, %s3080_s30, [#allocation3], %s2942_s18, %s2942_s18, %s2943_s20  }
  0x45   : > { %s2807_s21 = scalar_lea.hbm %s3712_s5, 256 }
  0x46   : > { %p2808_p2 = scmp.ne.s32.totalorder %s3712_s5, %s2807_s21  ;;  %p2814_p7 = scmp.lt.u32.totalorder %s2807_s21, %s3712_s5 }
  0x48   : > { %p2810_p3 = pnand %p2808_p2, %p3092_p0 }
  0x4a   : > { %p2811_p4 = pneg %p2810_p3 }
  0x4c   : > { %p2816_p8 = pnand %p2814_p7, %p2811_p4 }
  0x4e   : > { %2819 = shalt.err (!%p2816_p8)
}
  0x4f   : > { %s2820_s27 = scalar_lea.vmem %s317_s12, 256  ;;  %p2828_p6 = scmp.lt.s32.totalorder %s317_s12, %s317_s12 }
  0x50   : > { %p2821_p11 = scmp.ne.s32.totalorder %s317_s12, %s2820_s27  ;;  %p2829_p9 = scmp.lt.s32.totalorder %s2820_s27, %s2820_s27 }
  0x52   : > { %p2823_p13 = pnand %p2821_p11, %p3092_p0  ;;  %p2830_p5 = por %p2829_p9, %p2828_p6 }
  0x54   : > { %p2824_p1 = pneg %p2823_p13 }
  0x56   : > { %p2831_p10 = pnand %p2830_p5, %p2824_p1 }
  0x58   : > { %2834 = shalt.err (!%p2831_p10)
}
  0x59   : > { %2642 = dma.hbm_to_vmem [thread:$0]  (!%p3076_p12), %s3712_s5, 256, %s317_s12, [#allocation6], %s2942_s18, %s2942_s18, %s2943_s20  }
  0x5a   : > { %s2944_s16 = smov [#allocation8]   ;;  %s2835_s26 = scalar_lea.hbm %s3713_s6, 128 }
  0x5b   : > { %s330_s19 = sshll.u32 %s2944_s16, 4  ;;  %p2836_p5 = scmp.ne.s32.totalorder %s3713_s6, %s2835_s26  ;;  %s331_s19 = int_to_ptr.vmem [resolvable:$true] %s330_s19 }
  0x5c   : > { %p2842_p3 = scmp.lt.u32.totalorder %s2835_s26, %s3713_s6 }
  0x5d   : > { %p2838_p10 = pnand %p2836_p5, %p3092_p0 }
  0x5f   : > { %p2839_p2 = pneg %p2838_p10 }
  0x61   : > { %p2844_p4 = pnand %p2842_p3, %p2839_p2 }
  0x63   : > { %2847 = shalt.err (!%p2844_p4)
}
  0x64   : > { %s2848_s12 = scalar_lea.vmem %s331_s19, 128  ;;  %p2856_p13 = scmp.lt.s32.totalorder %s331_s19, %s331_s19 }
  0x65   : > { %p2849_p7 = scmp.ne.s32.totalorder %s331_s19, %s2848_s12  ;;  %p2857_p1 = scmp.lt.s32.totalorder %s2848_s12, %s2848_s12 }
  0x67   : > { %p2851_p8 = pnand %p2849_p7, %p3092_p0  ;;  %p2858_p6 = por %p2857_p1, %p2856_p13 }
  0x69   : > { %p2852_p11 = pneg %p2851_p8 }
  0x6b   : > { %p2859_p9 = pnand %p2858_p6, %p2852_p11 }
  0x6d   : > { %2862 = shalt.err (!%p2859_p9)
}
  0x6e   : > { %2645 = dma.hbm_to_vmem [thread:$0]  (!%p3076_p12), %s3713_s6, 128, %s331_s19, [#allocation9]  }
  0x6f   : > { %p3738_p5 = scmp.ne.s32.totalorder %s3735_s25, 0 }
  0x70   : > { %p3739_p10 = scmp.eq.s32.totalorder (!%p3738_p5), %s3038_s17, 0 }
  0x71   : > { %360 = sbr.rel (%p3738_p5) target bundleno = 4076 (0xfec), region = 60 }
  0x78   : > { %2908 = dma.done.wait (%p3739_p10), [#allocation3], 256   ;;  %p3740_p0 = pmov %p3739_p10 }
  0x7a   : > { %2910 = vsyncadd (%p3740_p0), [#allocation3], 4294967040  ;;  %p3741_p2 = pmov %p3740_p0 }
  0x7b   : > { %p3742_p3 = pmov %p3740_p0 }
  0x7c   : > { %2912 = dma.done.wait (%p3741_p2), [#allocation6], 512  }
  0x7d   : > { %2914 = vsyncadd (%p3742_p3), [#allocation6], 4294966784  ;;  %p3743_p4 = pmov %p3740_p0 }
  0x7e   : > { %p3744_p12 = pmov %p3740_p0 }
  0x7f   : > { %2916 = dma.done.wait (%p3743_p4), [#allocation9], 128  }
  0x80   : > { %2918 = vsyncadd (%p3744_p12), [#allocation9], 4294967168  ;;  %p410_p7 = scmp.lt.s32.totalorder %s3038_s17, 1  ;;  %v2945_v0 = vmov 0.0   ;;  %v426_v7 = vld [vmem:[#allocation2] sm:$0xff]  ;;  %vm428_vm0 = vcmask 130048   ;;  %v524_v13 = vlaneseq }
  0x81   : > { %499 = vmatprep.mubr.f32.mxu0 %v2945_v0  ;;  %847 = vmatprep.mubr.f32.mxu1 %v2945_v0  ;;  %v427_v8 = vld [vmem:[#allocation2 + $0x8] sm:$0xff]  ;;  %s2946_s16 = smov 1   ;;  %s2947_s19 = smov 127   ;;  %v3243_v19 = vld [vmem:[%s3716_s9] sm:$0xff]  ;;  %vm770_vm5 = vcmask 261120   ;;  %vm940_vm10 = vcmask 1040384  }
  0x82   : > { %s411_s15 = scalar_select %p410_p7, %s3038_s17, 1  ;;  %v3233_v14 = vshrl.u32 %v524_v13, 7  ;;  %v3235_v16 = vand.u32 127, %v524_v13  ;;  %v3249_v22 = vld [vmem:[%s3716_s9 + $0x8] sm:$0xff]  ;;  %vm927_vm11 = vcmask 7168   ;;  %vm1126_vm12 = vcmask 64512  }
  0x83   : > { %s2948_s11 = smov 16   ;;  %s2949_s22 = smov 112  }
  0x84   : > { %s2462_s25 = sshll.u32 %s411_s15, 5  ;;  %v3238_v18 = vsub.s32 0, %v3233_v14  ;;  %vm526_vm1 = vcmp.lt.s32.totalorder %v3235_v16, 1  ;;  %v3254_v24 = vsub.s32 1, %v3233_v14  ;;  %vm555_vm2 = vcmp.lt.s32.totalorder %v3235_v16, 127  ;;  %s2954_s12 = smov 3  }
  0x85   : > { %s3203_s13 = scalar_lea.vmem %s3707_s0, %s2462_s25  ;;  %v3288_v62 = vsub.s32 2, %v3233_v14  ;;  %vm588_vm3 = vcmp.lt.s32.totalorder %v3235_v16, 16  ;;  %vm617_vm4 = vcmp.lt.s32.totalorder %v3235_v16, 112  ;;  %v1117_v16 = vld [vmem:[%s3711_s4 + $0x8] sm:$0xff]  ;;  %s2955_s18 = smov 124  }
  0x86   : > { %v3206_v1 = vld [vmem:[%s3203_s13 + $0x8] sm:$0xff]  ;;  %v3209_v2 = vld [vmem:[%s3203_s13 + $0x18] sm:$0xff]  ;;  %v3212_v3 = vld [vmem:[%s3203_s13] sm:$0xff]  ;;  %v534_v23 = vrot.slane %v3243_v19, %v3238_v18  ;;  %v538_v27 = vrot.slane %v3249_v22, %v3238_v18  ;;  %v563_v32 = vrot.slane %v3243_v19, %v3254_v24  ;;  %v567_v36 = vrot.slane %v3249_v22, %v3254_v24  ;;  %s407_s21 = sand.u32 1, %s2929_s14   ;;  %s2463_s27 = sshll.u32 %s3038_s17, 9 }
  0x87   : > { %v2559_v4 = vpack.c.bf16 %v3209_v2, %v3206_v1  ;;  %v3217_v5 = vld [vmem:[%s3203_s13 + $0x10] sm:$0xff]  ;;  %s2425_s26 = sshll.u32 %s407_s21, 5  ;;  %s3665_s17 = scalar_lea.sflag [#allocation4], %s407_s21 }
  0x88   : > { %v2561_v6 = vpack.c.bf16 %v3217_v5, %v3212_v3  ;;  %s409_s29 = scalar_lea.vmem [#allocation10], %s2425_s26  ;;  %p3745_p11 = scmp.ne.s32.totalorder %s3732_s23, 0 }
  0x89   : > { %2560 = vmatprep.subr.bf16.mxu0 %v2559_v4  ;;  %v596_v4 = vrot.slane %v3243_v19, %v3288_v62 }
  0x8a   : > { %2562 = vmatpush1.bf16.msra.mxu0 %v2561_v6  ;;  %v600_v6 = vrot.slane %v3249_v22, %v3288_v62 }
  0x8d   : > { %2428 = vmatmul.mubr.msk.f32.vlgmr.msra.gmra.mrb[0].mxu0 %vm428_vm0, %v426_v7 }
  0x8e   : > { %505 = vmatprep.mubr.f32.mxu0 %v2945_v0 }
  0x91   : > { %2429 = vmatmul.mubr.msk.f32.gmra.mrb[2].mxu0 %vm428_vm0, %v427_v8 }
  0x92   : > { %841 = vmatprep.mubr.f32.mxu0 %v2945_v0 }
 0x160   : > { %v501_v9 = vpop.f32.mrb[0].mxu0 }
 0x161   : > { %516 = vrot.lane.b32.xlu0 %v501_v9, %s2946_s16  ;;  %v503_v10 = vpop.f32.mrb[1].mxu0  ;;  %v512_v34 = vmul.f32 0.4078072, %v501_v9 }
 0x162   : > { %520 = vrot.lane.b32.xlu1 %v503_v10, %s2946_s16  ;;  %v513_v50 = vmul.f32 0.4078072, %v503_v10 }
 0x164   : > { %v507_v11 = vpop.f32.mrb[2].mxu0 }
 0x165   : > { %547 = vrot.lane.b32.xlu0 %v501_v9, %s2947_s19  ;;  %v509_v12 = vpop.f32.mrb[3].mxu0  ;;  %v514_v38 = vmul.f32 0.4078072, %v507_v11 }
 0x166   : > { %549 = vrot.lane.b32.xlu1 %v507_v11, %s2947_s19  ;;  %v515_v53 = vmul.f32 0.4078072, %v509_v12 }
 0x169   : > { %518 = vrot.lane.b32.xlu0 %v507_v11, %s2946_s16 }
 0x16a   : > { %522 = vrot.lane.b32.xlu1 %v509_v12, %s2946_s16 }
 0x16d   : > { %551 = vrot.lane.b32.xlu0 %v503_v10, %s2947_s19  ;;  %v3300_v10 = vsub.s32 3, %v3233_v14 }
 0x16e   : > { %553 = vrot.lane.b32.xlu1 %v509_v12, %s2947_s19 }
 0x1d3   : > { %v517_v15 = vpop.permute.xlu0 %516 }
 0x1d4   : > { %v521_v17 = vpop.permute.xlu1 %520 }
 0x1d5   : > { %v529_v25 = vsel %vm526_vm1, %v521_v17, %v517_v15  ;;  %v527_v29 = vsel %vm526_vm1, %v517_v15, %v521_v17 }
 0x1d6   : > { %v539_v30 = vmul.f32 %v534_v23, %v529_v25  ;;  %v540_v39 = vmul.f32 %v538_v27, %v527_v29 }
 0x1d7   : > { %v548_v20 = vpop.permute.xlu0 %547 }
 0x1d8   : > { %v550_v21 = vpop.permute.xlu1 %549  ;;  %v543_v43 = vadd.f32 %v539_v30, %v512_v34  ;;  %v544_v56 = vadd.f32 %v540_v39, %v513_v50 }
 0x1db   : > { %v519_v26 = vpop.permute.xlu0 %518 }
 0x1dc   : > { %v523_v28 = vpop.permute.xlu1 %522 }
 0x1dd   : > { %v530_v31 = vsel %vm526_vm1, %v523_v28, %v519_v26  ;;  %v528_v35 = vsel %vm526_vm1, %v519_v26, %v523_v28 }
 0x1de   : > { %v541_v33 = vmul.f32 %v534_v23, %v530_v31  ;;  %v542_v47 = vmul.f32 %v538_v27, %v528_v35  ;;  %v629_v23 = vrot.slane %v3249_v22, %v3300_v10 }
 0x1df   : > { %v552_v37 = vpop.permute.xlu0 %551 }
 0x1e0   : > { %v556_v40 = vsel %vm555_vm2, %v548_v20, %v552_v37  ;;  %v558_v41 = vsel %vm555_vm2, %v552_v37, %v548_v20  ;;  %v554_v42 = vpop.permute.xlu1 %553  ;;  %v545_v48 = vadd.f32 %v541_v33, %v514_v38  ;;  %v546_v57 = vadd.f32 %v542_v47, %v515_v53 }
 0x1e1   : > { %v568_v44 = vmul.f32 %v563_v32, %v556_v40  ;;  %v557_v45 = vsel %vm555_vm2, %v550_v21, %v554_v42  ;;  %v559_v46 = vsel %vm555_vm2, %v554_v42, %v550_v21  ;;  %v569_v51 = vmul.f32 %v567_v36, %v558_v41 }
 0x1e2   : > { %v570_v49 = vmul.f32 %v563_v32, %v557_v45  ;;  %v571_v54 = vmul.f32 %v567_v36, %v559_v46  ;;  %v625_v21 = vrot.slane %v3243_v19, %v3300_v10 }
 0x1e3   : > { %v572_v52 = vadd.f32 %v568_v44, %v543_v43  ;;  %v573_v58 = vadd.f32 %v569_v51, %v544_v56 }
 0x1e4   : > { %v574_v55 = vadd.f32 %v570_v49, %v545_v48  ;;  %v575_v59 = vadd.f32 %v571_v54, %v546_v57 }
 0x1e5   : > { %580 = vrot.lane.b32.xlu0 %v572_v52, %s2948_s11  ;;  %v577_v25 = vmul.f32 0.36702648, %v573_v58  ;;  %v576_v26 = vmul.f32 0.36702648, %v572_v52 }
 0x1e6   : > { %582 = vrot.lane.b32.xlu1 %v574_v55, %s2948_s11  ;;  %v578_v29 = vmul.f32 0.36702648, %v574_v55  ;;  %v579_v30 = vmul.f32 0.36702648, %v575_v59 }
 0x1e9   : > { %584 = vrot.lane.b32.xlu0 %v573_v58, %s2948_s11 }
 0x1ea   : > { %586 = vrot.lane.b32.xlu1 %v575_v59, %s2948_s11 }
 0x1ed   : > { %609 = vrot.lane.b32.xlu0 %v572_v52, %s2949_s22 }
 0x1ee   : > { %611 = vrot.lane.b32.xlu1 %v574_v55, %s2949_s22 }
 0x1f1   : > { %613 = vrot.lane.b32.xlu0 %v573_v58, %s2949_s22 }
 0x1f2   : > { %615 = vrot.lane.b32.xlu1 %v575_v59, %s2949_s22 }
 0x257   : > { %v581_v60 = vpop.permute.xlu0 %580 }
 0x258   : > { %v583_v61 = vpop.permute.xlu1 %582 }
 0x25b   : > { %v585_v63 = vpop.permute.xlu0 %584 }
 0x25c   : > { %v587_v7 = vpop.permute.xlu1 %586  ;;  %v589_v8 = vsel %vm588_vm3, %v581_v60, %v585_v63  ;;  %v591_v9 = vsel %vm588_vm3, %v585_v63, %v581_v60  ;;  %v656_v63 = vsub.s32 6, %v3233_v14 }
 0x25d   : > { %v590_v11 = vsel %vm588_vm3, %v583_v61, %v587_v7  ;;  %v592_v12 = vsel %vm588_vm3, %v587_v7, %v583_v61  ;;  %v601_v15 = vmul.f32 %v596_v4, %v591_v9  ;;  %v602_v17 = vmul.f32 %v600_v6, %v589_v8 }
 0x25e   : > { %v603_v27 = vmul.f32 %v596_v4, %v592_v12  ;;  %v604_v28 = vmul.f32 %v600_v6, %v590_v11  ;;  %v684_v4 = vsub.s32 7, %v3233_v14  ;;  %v712_v7 = vsub.s32 4, %v3233_v14 }
 0x25f   : > { %v610_v13 = vpop.permute.xlu0 %609  ;;  %v605_v32 = vadd.f32 %v601_v15, %v576_v26  ;;  %v606_v33 = vadd.f32 %v602_v17, %v577_v25  ;;  %v657_v9 = vrot.slane %v3243_v19, %v656_v63  ;;  %v661_v11 = vrot.slane %v3249_v22, %v656_v63 }
 0x260   : > { %v612_v20 = vpop.permute.xlu1 %611  ;;  %v607_v41 = vadd.f32 %v603_v27, %v578_v29  ;;  %v608_v42 = vadd.f32 %v604_v28, %v579_v30  ;;  %v685_v12 = vrot.slane %v3243_v19, %v684_v4  ;;  %v713_v27 = vrot.slane %v3243_v19, %v712_v7 }
 0x261   : > { %v717_v30 = vrot.slane %v3249_v22, %v712_v7 }
 0x263   : > { %v614_v31 = vpop.permute.xlu0 %613 }
 0x264   : > { %v618_v34 = vsel %vm617_vm4, %v610_v13, %v614_v31  ;;  %v620_v35 = vsel %vm617_vm4, %v614_v31, %v610_v13  ;;  %v616_v36 = vpop.permute.xlu1 %615 }
 0x265   : > { %v630_v37 = vmul.f32 %v625_v21, %v618_v34  ;;  %v631_v38 = vmul.f32 %v629_v23, %v620_v35  ;;  %v619_v39 = vsel %vm617_vm4, %v612_v20, %v616_v36  ;;  %v621_v40 = vsel %vm617_vm4, %v616_v36, %v612_v20 }
 0x266   : > { %v632_v43 = vmul.f32 %v625_v21, %v619_v39  ;;  %v633_v44 = vmul.f32 %v629_v23, %v621_v40  ;;  %v689_v21 = vrot.slane %v3249_v22, %v684_v4 }
 0x267   : > { %v634_v45 = vadd.f32 %v630_v37, %v605_v32  ;;  %v635_v46 = vadd.f32 %v631_v38, %v606_v33  ;;  %v740_v32 = vsub.s32 5, %v3233_v14 }
 0x268   : > { %v3319_v47 = vadd.f32 %v632_v43, %v607_v41  ;;  %v3321_v48 = vadd.f32 %v633_v44, %v608_v42 }
 0x269   : > { %642 = vrot.lane.b32.xlu0 %v634_v45, %s2948_s11  ;;  %v757_v49 = vsub.f32 %v635_v46, %v3206_v1  ;;  %v756_v50 = vsub.f32 %v634_v45, %v3212_v3  ;;  %v2950_v1 = vmov 1   ;;  %v3356_v3 = vld [vmem:[%s3715_s8] sm:$0xff]  ;;  %v639_v15 = vmul.f32 -14.4, %v635_v46 }
 0x26a   : > { %644 = vrot.lane.b32.xlu1 %v3319_v47, %s2948_s11  ;;  %v759_v51 = vsub.f32 %v3321_v48, %v3209_v2  ;;  %v758_v52 = vsub.f32 %v3319_v47, %v3217_v5  ;;  %v2951_v2 = vmov 0   ;;  %v3363_v5 = vld [vmem:[%s3715_s8 + $0x8] sm:$0xff]  ;;  %v638_v23 = vmul.f32 -14.4, %v634_v45 }
 0x26b   : > { %2714 = vset.pattern.permute.xlu1 %v2950_v1  ;;  %2713 = vset.pattern.permute.xlu0 %v2951_v2  ;;  %v640_v42 = vmul.f32 -14.4, %v3319_v47  ;;  %v641_v14 = vmul.f32 -14.4, %v3321_v48 }
 0x26c   : > { %v2563_v53 = vpack.c.bf16 %v759_v51, %v757_v49  ;;  %v2565_v54 = vpack.c.bf16 %v758_v52, %v756_v50 }
 0x26d   : > { %646 = vrot.lane.b32.xlu0 %v635_v46, %s2948_s11 }
 0x26e   : > { %648 = vrot.lane.b32.xlu1 %v3321_v48, %s2948_s11  ;;  %2564 = vmatprep.subr.bf16.mxu0 %v2563_v53 }
 0x26f   : > { %2601 = vmatprep.subr.bf16.mxu1 %v2563_v53  ;;  %2566 = vmatpush1.bf16.msra.mxu0 %v2565_v54 }
 0x270   : > { %2603 = vmatpush1.bf16.msra.mxu1 %v2565_v54 }
 0x271   : > { %670 = vrot.lane.b32.xlu0 %v634_v45, %s2949_s22 }
 0x272   : > { %672 = vrot.lane.b32.xlu1 %v3319_v47, %s2949_s22 }
 0x275   : > { %674 = vrot.lane.b32.xlu0 %v635_v46, %s2949_s22 }
 0x276   : > { %676 = vrot.lane.b32.xlu1 %v3321_v48, %s2949_s22 }
 0x279   : > { %698 = vrot.lane.b32.xlu0 %v634_v45, %s2946_s16 }
 0x27a   : > { %700 = vrot.lane.b32.xlu1 %v3319_v47, %s2946_s16 }
 0x27d   : > { %702 = vrot.lane.b32.xlu0 %v635_v46, %s2946_s16 }
 0x27e   : > { %704 = vrot.lane.b32.xlu1 %v3321_v48, %s2946_s16 }
 0x281   : > { %726 = vrot.lane.b32.xlu0 %v634_v45, %s2947_s19 }
 0x282   : > { %728 = vrot.lane.b32.xlu1 %v3319_v47, %s2947_s19 }
 0x285   : > { %730 = vrot.lane.b32.xlu0 %v635_v46, %s2947_s19 }
 0x286   : > { %732 = vrot.lane.b32.xlu1 %v3321_v48, %s2947_s19  ;;  %v741_v48 = vrot.slane %v3243_v19, %v740_v32 }
 0x289   : > { %762 = vperm.xlu0 %2713, %v3356_v3  }
 0x28a   : > { %859 = vperm.xlu1 %2714, %v3356_v3  }
 0x28d   : > { %2716 = vset.pattern.permute.xlu0 %v2950_v1 }
 0x28e   : > { %2715 = vset.pattern.permute.xlu1 %v2951_v2  ;;  %863 = vperm.xlu0 %2716, %v3363_v5  }
 0x28f   : > { %767 = vperm.xlu1 %2715, %v3363_v5  }
 0x2db   : > { %v643_v55 = vpop.permute.xlu0 %642 }
 0x2dc   : > { %v645_v56 = vpop.permute.xlu1 %644 }
 0x2df   : > { %v647_v57 = vpop.permute.xlu0 %646 }
 0x2e0   : > { %v649_v58 = vpop.permute.xlu1 %648  ;;  %v650_v17 = vsel %vm588_vm3, %v643_v55, %v647_v57  ;;  %v652_v20 = vsel %vm588_vm3, %v647_v57, %v643_v55 }
 0x2e1   : > { %v651_v25 = vsel %vm588_vm3, %v645_v56, %v649_v58  ;;  %v653_v26 = vsel %vm588_vm3, %v649_v58, %v645_v56  ;;  %v662_v33 = vmul.f32 %v657_v9, %v652_v20  ;;  %v663_v34 = vmul.f32 %v661_v11, %v650_v17 }
 0x2e2   : > { %v664_v38 = vmul.f32 %v657_v9, %v653_v26  ;;  %v665_v39 = vmul.f32 %v661_v11, %v651_v25  ;;  %v745_v56 = vrot.slane %v3249_v22, %v740_v32 }
 0x2e3   : > { %v671_v59 = vpop.permute.xlu0 %670  ;;  %v666_v52 = vadd.f32 %v662_v33, %v638_v23  ;;  %v667_v53 = vadd.f32 %v663_v34, %v639_v15 }
 0x2e4   : > { %v673_v60 = vpop.permute.xlu1 %672  ;;  %v668_v55 = vadd.f32 %v664_v38, %v640_v42  ;;  %v669_v47 = vadd.f32 %v665_v39, %v641_v14 }
 0x2e7   : > { %v675_v61 = vpop.permute.xlu0 %674 }
 0x2e8   : > { %v677_v6 = vpop.permute.xlu1 %676  ;;  %v678_v28 = vsel %vm617_vm4, %v671_v59, %v675_v61  ;;  %v680_v29 = vsel %vm617_vm4, %v675_v61, %v671_v59 }
 0x2e9   : > { %v679_v35 = vsel %vm617_vm4, %v673_v60, %v677_v6  ;;  %v681_v36 = vsel %vm617_vm4, %v677_v6, %v673_v60  ;;  %v690_v43 = vmul.f32 %v685_v12, %v678_v28  ;;  %v691_v44 = vmul.f32 %v689_v21, %v680_v29 }
 0x2ea   : > { %v692_v45 = vmul.f32 %v685_v12, %v679_v35  ;;  %v693_v46 = vmul.f32 %v689_v21, %v681_v36  ;;  %v419_v35 = vld [vmem:[%s3708_s1] sm:$0x3] }
 0x2eb   : > { %v699_v8 = vpop.permute.xlu0 %698  ;;  %v694_v57 = vadd.f32 %v690_v43, %v666_v52  ;;  %v695_v58 = vadd.f32 %v691_v44, %v667_v53  ;;  %v3421_v14 = vrot.slane %v419_v35, %v3238_v18  ;;  %v3424_v43 = vrot.slane %v419_v35, %v3254_v24 }
 0x2ec   : > { %v701_v13 = vpop.permute.xlu1 %700  ;;  %v696_v61 = vadd.f32 %v692_v45, %v668_v55  ;;  %v697_v63 = vadd.f32 %v693_v46, %v669_v47 }
 0x2ef   : > { %v703_v31 = vpop.permute.xlu0 %702 }
 0x2f0   : > { %v705_v37 = vpop.permute.xlu1 %704  ;;  %v706_v40 = vsel %vm526_vm1, %v699_v8, %v703_v31  ;;  %v708_v41 = vsel %vm526_vm1, %v703_v31, %v699_v8  ;;  %v755_v31 = vld [vmem:[#allocation5 + $0x8] sm:$0xff] }
 0x2f1   : > { %v707_v49 = vsel %vm526_vm1, %v701_v13, %v705_v37  ;;  %v709_v50 = vsel %vm526_vm1, %v705_v37, %v701_v13  ;;  %v718_v54 = vmul.f32 %v713_v27, %v708_v41  ;;  %v719_v1 = vmul.f32 %v717_v30, %v706_v40 }
 0x2f2   : > { %v720_v59 = vmul.f32 %v713_v27, %v709_v50  ;;  %v721_v60 = vmul.f32 %v717_v30, %v707_v49  ;;  %v754_v30 = vld [vmem:[#allocation5] sm:$0xff] }
 0x2f3   : > { %v727_v51 = vpop.permute.xlu0 %726  ;;  %v722_v6 = vadd.f32 %v718_v54, %v694_v57  ;;  %v723_v7 = vadd.f32 %v719_v1, %v695_v58 }
 0x2f4   : > { %v729_v2 = vpop.permute.xlu1 %728  ;;  %v724_v15 = vadd.f32 %v720_v59, %v696_v61  ;;  %v725_v17 = vadd.f32 %v721_v60, %v697_v63 }
 0x2f7   : > { %v731_v4 = vpop.permute.xlu0 %730 }
 0x2f8   : > { %v734_v8 = vsel %vm555_vm2, %v727_v51, %v731_v4  ;;  %v736_v9 = vsel %vm555_vm2, %v731_v4, %v727_v51  ;;  %v733_v11 = vpop.permute.xlu1 %732 }
 0x2f9   : > { %v746_v12 = vmul.f32 %v741_v48, %v734_v8  ;;  %v747_v19 = vmul.f32 %v745_v56, %v736_v9  ;;  %v735_v22 = vsel %vm555_vm2, %v729_v2, %v733_v11  ;;  %v737_v13 = vsel %vm555_vm2, %v733_v11, %v729_v2 }
 0x2fa   : > { %v748_v20 = vmul.f32 %v741_v48, %v735_v22  ;;  %v749_v21 = vmul.f32 %v745_v56, %v737_v13 }
 0x2fb   : > { %v750_v23 = vadd.f32 %v746_v12, %v722_v6  ;;  %v751_v25 = vadd.f32 %v747_v19, %v723_v7 }
 0x2fc   : > { %v752_v26 = vadd.f32 %v748_v20, %v724_v15  ;;  %v753_v27 = vadd.f32 %v749_v21, %v725_v17 }
 0x2fe   : > { %v2569_v28 = vpack.c.bf16 %v752_v26, %v750_v23  ;;  %v2567_v29 = vpack.c.bf16 %v753_v27, %v751_v25 }
 0x300   : > { %2568 = vmatprep.subr.bf16.mxu0 %v2567_v29  ;;  %2602 = vmatprep.subr.bf16.mxu1 %v2567_v29 }
 0x301   : > { %2570 = vmatpush1.bf16.msra.mxu0 %v2569_v28  ;;  %2604 = vmatpush1.bf16.msra.mxu1 %v2569_v28 }
 0x302   : > { %2432 = vmatprep.subr.msk.mxu0 %vm940_vm10, %v3424_v43 }
 0x304   : > { %2430 = vmatmul.mubr.msk.f32.vlgmr.msra.gmra.mrb[4].mxu0 %vm770_vm5, %v754_v30  ;;  %2431 = vmatmul.mubr.msk.f32.vlgmr.msra.gmra.mrb[0].mxu1 %vm770_vm5, %v755_v31 }
 0x305   : > { %1009 = vmatprep.mubr.f32.mxu0 %v2945_v0  ;;  %1197 = vmatprep.mubr.f32.mxu1 %v2945_v0 }
 0x306   : > { %2433 = vmatpush1.msk.msra.mxu0 %vm940_vm10, %v3421_v14 }
 0x307   : > { %2440 = vmatprep.subr.msk.mxu0 %vm940_vm10, %v3424_v43 }
 0x308   : > { %v763_v33 = vpop.permute.xlu0 %762 }
 0x309   : > { %v860_v32 = vpop.permute.xlu1 %859 }
 0x30d   : > { %v864_v36 = vpop.permute.xlu0 %863 }
 0x30e   : > { %v768_v34 = vpop.permute.xlu1 %767 }
 0x3d7   : > { %v843_v37 = vpop.f32.mrb[4].mxu0  ;;  %v849_v38 = vpop.f32.mrb[0].mxu1 }
 0x3d8   : > { %v844_v39 = vadd.f32 %v843_v37, %v763_v33  ;;  %v845_v40 = vpop.f32.mrb[5].mxu0  ;;  %v850_v41 = vadd.f32 %v849_v38, %v768_v34  ;;  %v851_v42 = vpop.f32.mrb[1].mxu1 }
 0x3d9   : > { %v846_v44 = vadd.f32 %v845_v40, %v763_v33  ;;  %v852_v45 = vadd.f32 %v851_v42, %v768_v34 }
 0x3da   : > { %vm854_vm6 = vcmp.ge.f32.partialorder %v844_v39, 0.0  ;;  %v866_v46 = vmul.f32 %v860_v32, %v844_v39  ;;  %vm856_vm7 = vcmp.ge.f32.partialorder %v850_v41, 0.0  ;;  %v868_v49 = vmul.f32 %v864_v36, %v850_v41 }
 0x3db   : > { %vm855_vm8 = vcmp.ge.f32.partialorder %v846_v44, 0.0  ;;  %v867_v50 = vmul.f32 %v860_v32, %v846_v44  ;;  %vm857_vm9 = vcmp.ge.f32.partialorder %v852_v45, 0.0  ;;  %v869_v51 = vmul.f32 %v864_v36, %v852_v45 }
 0x3dc   : > { %v3426_v52 = vsel %vm854_vm6, %v844_v39, %v866_v46  ;;  %v3428_v53 = vsel %vm856_vm7, %v850_v41, %v868_v49 }
 0x3dd   : > { %v3430_v54 = vsel %vm855_vm8, %v846_v44, %v867_v50  ;;  %v889_v1 = vmul.f32 %v3421_v14, %v3426_v52  ;;  %v874_v2 = vmul.f32 %v3426_v52, %v3426_v52  ;;  %v3436_v55 = vsel %vm857_vm9, %v852_v45, %v869_v51 }
 0x3de   : > { %v890_v47 = vmul.f32 %v3424_v43, %v3430_v54  ;;  %v875_v48 = vmul.f32 %v3430_v54, %v3430_v54  ;;  %v876_v57 = vmul.f32 %v3428_v53, %v3428_v53  ;;  %v877_v58 = vmul.f32 %v3436_v55, %v3436_v55 }
 0x3df   : > { %v893_v56 = vmul.f32 %v3421_v14, %v874_v2  ;;  %v891_v61 = vmul.f32 %v3421_v14, %v3428_v53  ;;  %v892_v63 = vmul.f32 %v3424_v43, %v3436_v55 }
 0x3e0   : > { %v897_v59 = vadd.f32 %v890_v47, %v889_v1  ;;  %v894_v60 = vmul.f32 %v3424_v43, %v875_v48  ;;  %v895_v6 = vmul.f32 %v3421_v14, %v876_v57  ;;  %v896_v7 = vmul.f32 %v3424_v43, %v877_v58 }
 0x3e1   : > { %v900_v8 = vadd.f32 %v892_v63, %v891_v61 }
 0x3e2   : > { %898 = vadd.xlane.f32.xlu1 %v897_v59  ;;  %v903_v4 = vadd.f32 %v894_v60, %v893_v56  ;;  %v906_v9 = vadd.f32 %v896_v7, %v895_v6 }
 0x3e4   : > { %904 = vadd.xlane.f32.xlu0 %v903_v4 }
 0x3e6   : > { %901 = vadd.xlane.f32.xlu1 %v900_v8 }
 0x3e8   : > { %907 = vadd.xlane.f32.xlu0 %v906_v9 }
 0x46f   : > { %v899_v11 = vpop.xlane.xlu1 %898 }
 0x470   : > { %v909_v12 = vmul.f32 0.00390625, %v899_v11 }
 0x471   : > { %v905_v19 = vpop.xlane.xlu0 %904 }
 0x472   : > { %v913_v22 = vmul.f32 %v909_v12, %v909_v12  ;;  %v911_v13 = vmul.f32 0.00390625, %v905_v19  ;;  %v923_v33 = vsub.f32 0.0, %v909_v12 }
 0x473   : > { %v902_v15 = vpop.xlane.xlu1 %901 }
 0x474   : > { %v915_v17 = vsub.f32 %v911_v13, %v913_v22  ;;  %v910_v20 = vmul.f32 0.00390625, %v902_v15 }
 0x475   : > { %v908_v21 = vpop.xlane.xlu0 %907 }
 0x476   : > { %v917_v23 = vmax.f32 %v915_v17, 0.0  ;;  %v914_v25 = vmul.f32 %v910_v20, %v910_v20  ;;  %v912_v26 = vmul.f32 0.00390625, %v908_v21  ;;  %v924_v35 = vsub.f32 0.0, %v910_v20 }
 0x477   : > { %v2952_v17 = vmov 2   ;;  %v2953_v20 = vmov 3  }
 0x478   : > { %v919_v27 = vadd.f32 1e-05, %v917_v23  ;;  %v916_v28 = vsub.f32 %v912_v26, %v914_v25  ;;  %2718 = vset.pattern.permute.xlu1 %v2952_v17  ;;  %2717 = vset.pattern.permute.xlu0 %v2952_v17 }
 0x47a   : > { %2723 = vrsqrt.f32 %v919_v27  ;;  %v918_v29 = vmax.f32 %v916_v28, 0.0 }
 0x47c   : > { %v920_v30 = vadd.f32 1e-05, %v918_v29 }
 0x47e   : > { %2725 = vrsqrt.f32 %v920_v30 }
 0x484   : > { %v2724_v31 = vpop.eup %2723 }
 0x485   : > { %2434 = vmatmul.mubr.msk.f32.vlgmr.msra.gmra.mrb[6].mxu0 %vm927_vm11, %v2724_v31  ;;  %v925_v34 = vmul.f32 %v2724_v31, %v923_v33 }
 0x486   : > { %1015 = vmatprep.mubr.f32.mxu0 %v2945_v0  ;;  %2441 = vmatpush1.msk.msra.mxu0 %vm940_vm10, %v3421_v14 }
 0x488   : > { %v2726_v32 = vpop.eup %2725 }
 0x489   : > { %2435 = vmatmul.mubr.msk.f32.gmra.mrb[8].mxu0 %vm927_vm11, %v2726_v32  ;;  %v926_v36 = vmul.f32 %v2726_v32, %v924_v35 }
 0x48a   : > { %1021 = vmatprep.mubr.f32.mxu0 %v2945_v0 }
 0x48d   : > { %2436 = vmatmul.mubr.msk.f32.gmra.mrb[10].mxu0 %vm927_vm11, %v925_v34 }
 0x48e   : > { %1027 = vmatprep.mubr.f32.mxu0 %v2945_v0 }
 0x491   : > { %2437 = vmatmul.mubr.msk.f32.gmra.mrb[12].mxu0 %vm927_vm11, %v926_v36 }
 0x492   : > { %1898 = vmatprep.mubr.f32.mxu0 %v2945_v0 }
 0x558   : > { %v1011_v37 = vpop.f32.mrb[6].mxu0 }
 0x559   : > { %v1013_v38 = vpop.f32.mrb[7].mxu0  ;;  %v1034_v41 = vmul.f32 %v1011_v37, %v3426_v52 }
 0x55a   : > { %v1035_v42 = vmul.f32 %v1013_v38, %v3430_v54  ;;  %v425_v54 = vld [vmem:[%s3716_s9 + $0x18] sm:$0xf] }
 0x55b   : > { %v1057_v60 = vrot.slane %v425_v54, %v3238_v18  ;;  %v1073_v63 = vrot.slane %v425_v54, %v3254_v24  ;;  %v1093_v26 = vrot.slane %v425_v54, %v3288_v62  ;;  %v1109_v28 = vrot.slane %v425_v54, %v3300_v10 }
 0x55c   : > { %v1017_v39 = vpop.f32.mrb[8].mxu0 }
 0x55d   : > { %v1019_v40 = vpop.f32.mrb[9].mxu0  ;;  %v1036_v50 = vmul.f32 %v1017_v39, %v3428_v53  ;;  %v424_v53 = vld [vmem:[%s3716_s9 + $0x10] sm:$0xf] }
 0x55e   : > { %v1037_v51 = vmul.f32 %v1019_v40, %v3436_v55  ;;  %v1053_v59 = vrot.slane %v424_v53, %v3238_v18  ;;  %v1069_v61 = vrot.slane %v424_v53, %v3254_v24  ;;  %v1089_v25 = vrot.slane %v424_v53, %v3288_v62 }
 0x55f   : > { %v1105_v27 = vrot.slane %v424_v53, %v3300_v10 }
 0x560   : > { %v1023_v44 = vpop.f32.mrb[10].mxu0 }
 0x561   : > { %v1038_v45 = vadd.f32 %v1034_v41, %v1023_v44  ;;  %v1025_v46 = vpop.f32.mrb[11].mxu0  ;;  %v1116_v41 = vld [vmem:[%s3711_s4] sm:$0xff] }
 0x562   : > { %v1039_v49 = vadd.f32 %v1035_v42, %v1025_v46 }
 0x564   : > { %v1029_v1 = vpop.f32.mrb[12].mxu0 }
 0x565   : > { %v1040_v2 = vadd.f32 %v1036_v50, %v1029_v1  ;;  %v1031_v47 = vpop.f32.mrb[13].mxu0 }
 0x566   : > { %v1041_v48 = vadd.f32 %v1037_v51, %v1031_v47 }
 0x567   : > { %v1042_v56 = vmul.f32 %v1040_v2, %v1038_v45 }
 0x568   : > { %v1043_v57 = vmul.f32 %v1041_v48, %v1039_v49 }
 0x569   : > { %1044 = vrot.lane.b32.xlu1 %v1042_v56, %s2946_s16 }
 0x56a   : > { %1046 = vrot.lane.b32.xlu0 %v1043_v57, %s2946_s16 }
 0x56d   : > { %1060 = vrot.lane.b32.xlu1 %v1042_v56, %s2947_s19 }
 0x571   : > { %1062 = vrot.lane.b32.xlu1 %v1043_v57, %s2947_s19 }
 0x5db   : > { %v1045_v52 = vpop.permute.xlu1 %1044 }
 0x5dc   : > { %v1047_v55 = vpop.permute.xlu0 %1046 }
 0x5dd   : > { %v1048_v4 = vsel %vm526_vm1, %v1045_v52, %v1047_v55  ;;  %v1049_v6 = vsel %vm526_vm1, %v1047_v55, %v1045_v52 }
 0x5de   : > { %v1058_v11 = vadd.f32 %v1053_v59, %v1049_v6  ;;  %v1059_v12 = vadd.f32 %v1057_v60, %v1048_v4 }
 0x5df   : > { %v1061_v58 = vpop.permute.xlu1 %1060 }
 0x5e3   : > { %v1063_v7 = vpop.permute.xlu1 %1062 }
 0x5e4   : > { %v1064_v8 = vsel %vm555_vm2, %v1061_v58, %v1063_v7  ;;  %v1065_v9 = vsel %vm555_vm2, %v1063_v7, %v1061_v58 }
 0x5e5   : > { %v1074_v18 = vadd.f32 %v1069_v61, %v1064_v8  ;;  %v1075_v19 = vadd.f32 %v1073_v63, %v1065_v9 }
 0x5e7   : > { %v1076_v22 = vmax.f32 %v1058_v11, %v1074_v18  ;;  %v1077_v13 = vmax.f32 %v1059_v12, %v1075_v19 }
 0x5e9   : > { %v1078_v24 = vmax.f32 %v1042_v56, %v1076_v22  ;;  %v1079_v15 = vmax.f32 %v1043_v57, %v1077_v13 }
 0x5eb   : > { %1080 = vrot.lane.b32.xlu0 %v1078_v24, %s2948_s11  ;;  %1082 = vrot.lane.b32.xlu1 %v1079_v15, %s2948_s11 }
 0x5ef   : > { %1096 = vrot.lane.b32.xlu0 %v1078_v24, %s2949_s22  ;;  %1098 = vrot.lane.b32.xlu1 %v1079_v15, %s2949_s22  ;;  %s2310_s22 = sshll.u32 %s409_s29, 4  ;;  %s3656_s22 = int_to_ptr.vmem [resolvable:$true] %s2310_s22 }
 0x5f3   : > { %1123 = vperm.xlu1 %2718, %v3363_v5   ;;  %1119 = vperm.xlu0 %2717, %v3356_v3  }
 0x5f7   : > { %2719 = vset.pattern.permute.xlu1 %v2953_v20  ;;  %2720 = vset.pattern.permute.xlu0 %v2953_v20  ;;  %v1254_v20 = vld [vmem:[#allocation7] sm:$0xff] }
 0x5f8   : > { %1215 = vperm.xlu1 %2719, %v3356_v3   ;;  %1219 = vperm.xlu0 %2720, %v3363_v5  }
 0x65d   : > { %v1081_v21 = vpop.permute.xlu0 %1080  ;;  %v1083_v23 = vpop.permute.xlu1 %1082 }
 0x65e   : > { %v1084_v29 = vsel %vm588_vm3, %v1081_v21, %v1083_v23  ;;  %v1085_v30 = vsel %vm588_vm3, %v1083_v23, %v1081_v21  ;;  %v1259_v21 = vsel %vm428_vm0, %v1254_v20, 0 }
 0x65f   : > { %v1094_v35 = vadd.f32 %v1089_v25, %v1085_v30  ;;  %v1095_v62 = vadd.f32 %v1093_v26, %v1084_v29  ;;  %v1331_v23 = vand.u32 4294901760, %v1259_v21  ;;  %v1255_v29 = vld [vmem:[#allocation7 + $0x8] sm:$0xff] }
 0x660   : > { %v1262_v30 = vsel %vm428_vm0, %v1255_v29, 0  ;;  %vm2958_vm0 = vmmov 0  }
 0x661   : > { %v1097_v31 = vpop.permute.xlu0 %1096  ;;  %v1099_v32 = vpop.permute.xlu1 %1098  ;;  %v1332_v25 = vsub.f32 %v1259_v21, %v1331_v23 }
 0x662   : > { %v1100_v33 = vsel %vm617_vm4, %v1097_v31, %v1099_v32  ;;  %v1101_v34 = vsel %vm617_vm4, %v1099_v32, %v1097_v31  ;;  %v1341_v31 = vand.u32 4294901760, %v1262_v30 }
 0x663   : > { %v1110_v36 = vadd.f32 %v1105_v27, %v1100_v33  ;;  %v1111_v37 = vadd.f32 %v1109_v28, %v1101_v34  ;;  %v1333_v26 = vand.u32 4294901760, %v1332_v25 }
 0x664   : > { %v1342_v33 = vsub.f32 %v1262_v30, %v1341_v31 }
 0x665   : > { %v1112_v38 = vmax.f32 %v1094_v35, %v1110_v36  ;;  %v1113_v10 = vmax.f32 %v1095_v62, %v1111_v37  ;;  %v1334_v27 = vsub.f32 %v1332_v25, %v1333_v26 }
 0x666   : > { %v1343_v36 = vand.u32 4294901760, %v1342_v33 }
 0x667   : > { %v1114_v39 = vmax.f32 %v1078_v24, %v1112_v38  ;;  %v1115_v40 = vmax.f32 %v1079_v15, %v1113_v10  ;;  %v1335_v28 = vand.u32 4294901760, %v1334_v27 }
 0x669   : > { %1133 = vmatprep.subr.mxu1 %v1115_v40 }
 0x66a   : > { %1134 = vmatpush1.msra.mxu1 %v1114_v39 }
 0x66b   : > { %2438 = vmatmul.mubr.msk.f32.vlgmr.msra.gmra.mrb[2].mxu1 %vm1126_vm12, %v1116_v41 }
 0x66c   : > { %1203 = vmatprep.mubr.f32.mxu1 %v2945_v0 }
 0x66f   : > { %2439 = vmatmul.mubr.msk.f32.gmra.mrb[4].mxu1 %vm1126_vm12, %v1117_v16  ;;  %v1344_v16 = vsub.f32 %v1342_v33, %v1343_v36 }
 0x670   : > { %2502 = vmatprep.mubr.f32.mxu1 %v1335_v28 }
 0x672   : > { %v1124_v42 = vpop.permute.xlu1 %1123  ;;  %v1120_v44 = vpop.permute.xlu0 %1119 }
 0x677   : > { %v1216_v46 = vpop.permute.xlu1 %1215  ;;  %v1220_v48 = vpop.permute.xlu0 %1219 }
 0x73e   : > { %v1199_v45 = vpop.f32.mrb[2].mxu1 }
 0x73f   : > { %v1200_v49 = vadd.f32 %v1199_v45, %v1120_v44  ;;  %v1201_v50 = vpop.f32.mrb[3].mxu1 }
 0x740   : > { %v1202_v51 = vadd.f32 %v1201_v50, %v1120_v44 }
 0x741   : > { %vm1210_vm13 = vcmp.ge.f32.partialorder %v1200_v49, 0.0  ;;  %v1222_v1 = vmul.f32 %v1216_v46, %v1200_v49 }
 0x742   : > { %vm1211_vm14 = vcmp.ge.f32.partialorder %v1202_v51, 0.0  ;;  %v1223_v2 = vmul.f32 %v1216_v46, %v1202_v51  ;;  %v1205_v47 = vpop.f32.mrb[4].mxu1  ;;  %v1345_v46 = vand.u32 4294901760, %v1344_v16 }
 0x743   : > { %v1206_v56 = vadd.f32 %v1205_v47, %v1124_v42  ;;  %v1207_v57 = vpop.f32.mrb[5].mxu1  ;;  %v3525_v52 = vsel %vm1210_vm13, %v1200_v49, %v1222_v1 }
 0x744   : > { %v1208_v53 = vadd.f32 %v1207_v57, %v1124_v42  ;;  %v3527_v54 = vsel %vm1211_vm14, %v1202_v51, %v1223_v2  ;;  %v1234_v55 = vmul.f32 %v3525_v52, %v3421_v14  ;;  %v1230_v58 = vmul.f32 %v3525_v52, %v3525_v52 }
 0x745   : > { %vm1212_vm15 = vcmp.ge.f32.partialorder %v1206_v56, 0.0  ;;  %v1224_v59 = vmul.f32 %v1220_v48, %v1206_v56  ;;  %v1235_v60 = vmul.f32 %v3527_v54, %v3424_v43  ;;  %v1231_v61 = vmul.f32 %v3527_v54, %v3527_v54 }
 0x746   : > { %vm1213_vm1 = vcmp.ge.f32.partialorder %v1208_v53, 0.0  ;;  %v1225_v63 = vmul.f32 %v1220_v48, %v1208_v53  ;;  %v1238_v7 = vmul.f32 %v1230_v58, %v3421_v14 }
 0x747   : > { %v1242_v4 = vadd.f32 %v1235_v60, %v1234_v55  ;;  %v3537_v6 = vsel %vm1212_vm15, %v1206_v56, %v1224_v59  ;;  %v1239_v8 = vmul.f32 %v1231_v61, %v3424_v43 }
 0x748   : > { %v3541_v9 = vsel %vm1213_vm1, %v1208_v53, %v1225_v63  ;;  %v1236_v11 = vmul.f32 %v3537_v6, %v3421_v14  ;;  %v1232_v12 = vmul.f32 %v3537_v6, %v3537_v6 }
 0x749   : > { %1243 = vadd.xlane.f32.xlu1 %v1242_v4  ;;  %v1237_v18 = vmul.f32 %v3541_v9, %v3424_v43  ;;  %v1233_v19 = vmul.f32 %v3541_v9, %v3541_v9  ;;  %v1248_v13 = vadd.f32 %v1239_v8, %v1238_v7 }
 0x74a   : > { %v1240_v24 = vmul.f32 %v1232_v12, %v3421_v14 }
 0x74b   : > { %v1245_v22 = vadd.f32 %v1237_v18, %v1236_v11  ;;  %v1241_v15 = vmul.f32 %v1233_v19, %v3424_v43 }
 0x74d   : > { %1246 = vadd.xlane.f32.xlu0 %v1245_v22  ;;  %1249 = vadd.xlane.f32.xlu1 %v1248_v13  ;;  %v1251_v17 = vadd.f32 %v1241_v15, %v1240_v24 }
 0x751   : > { %1252 = vadd.xlane.f32.xlu0 %v1251_v17 }
 0x7d6   : > { %v1244_v32 = vpop.xlane.xlu1 %1243 }
 0x7da   : > { %v1247_v34 = vpop.xlane.xlu0 %1246  ;;  %v1250_v35 = vpop.xlane.xlu1 %1249 }
 0x7db   : > { %v1256_v62 = vsel %vm927_vm11, %v1244_v32, %v1250_v35 }
 0x7dc   : > { %v1265_v37 = vand.u32 4294901760, %v1256_v62 }
 0x7de   : > { %v1353_v38 = vsub.f32 %v1256_v62, %v1265_v37  ;;  %v1253_v10 = vpop.xlane.xlu0 %1252 }
 0x7df   : > { %v1257_v39 = vsel %vm927_vm11, %v1247_v34, %v1253_v10 }
 0x7e0   : > { %v1354_v40 = vand.u32 4294901760, %v1353_v38  ;;  %v1268_v41 = vand.u32 4294901760, %v1257_v39 }
 0x7e2   : > { %v2571_v42 = vpack.c.bf16 %v1268_v41, %v1265_v37  ;;  %v1360_v44 = vsub.f32 %v1257_v39, %v1268_v41  ;;  %v1355_v49 = vsub.f32 %v1353_v38, %v1354_v40 }
 0x7e4   : > { %v1361_v45 = vand.u32 4294901760, %v1360_v44  ;;  %2572 = vmatprep.subr.bf16.mxu1 %v2571_v42  ;;  %v1356_v51 = vand.u32 4294901760, %v1355_v49  ;;  %v2579_v47 = vpack.c.bf16 %v1360_v44, %v1353_v38 }
 0x7e5   : > { %2574 = vmatpush3.bf16.msra.mxu1 %v2571_v42 }
 0x7e6   : > { %v1362_v50 = vsub.f32 %v1360_v44, %v1361_v45  ;;  %v2587_v48 = vpack.c.bf16 %v1361_v45, %v1354_v40 }
 0x7e8   : > { %2503 = vmatmul.mubr.f32.vlgmr.msra.gmra.mrb[6].mxu1 %v1345_v46  ;;  %v1363_v1 = vand.u32 4294901760, %v1362_v50  ;;  %v3595_v46 = vld [vmem:[%s3203_s13 + $0x8] sm:$0xff] }
 0x7e9   : > { %2509 = vmatprep.mubr.f32.mxu1 %v1331_v23 }
 0x7ea   : > { %v2575_v2 = vpack.c.bf16 %v1363_v1, %v1356_v51 }
 0x7ec   : > { %2576 = vmatprep.subr.bf16.mxu1 %v2575_v2 }
 0x7ed   : > { %2578 = vmatpush3.bf16.msra.mxu1 %v2575_v2 }
 0x7ee   : > { %2580 = vmatprep.subr.bf16.mxu1 %v2579_v47 }
 0x7f0   : > { %2510 = vmatmul.mubr.f32.vlgmr.msra.gmra.mrb[6].mxu1 %v1341_v31 }
 0x7f1   : > { %2582 = vmatpush3.bf16.msra.mxu1 %v2579_v47  ;;  %2516 = vmatprep.mubr.f32.mxu1 %v1332_v25 }
 0x7f2   : > { %2584 = vmatprep.subr.bf16.mxu1 %v2571_v42 }
 0x7f8   : > { %2517 = vmatmul.mubr.f32.vlgmr.msra.gmra.mrb[6].mxu1 %v1342_v33 }
 0x7f9   : > { %2586 = vmatpush3.bf16.msra.mxu1 %v2571_v42  ;;  %2523 = vmatprep.mubr.f32.mxu1 %v1333_v26 }
 0x7fa   : > { %2588 = vmatprep.subr.bf16.mxu1 %v2587_v48 }
 0x800   : > { %2524 = vmatmul.mubr.f32.vlgmr.msra.gmra.mrb[6].mxu1 %v1343_v36 }
 0x801   : > { %2590 = vmatpush3.bf16.msra.mxu1 %v2587_v48  ;;  %2530 = vmatprep.mubr.f32.mxu1 %v1331_v23  ;;  %v3608_v48 = vld [vmem:[%s3203_s13 + $0x10] sm:$0xff] }
 0x802   : > { %2592 = vmatprep.subr.bf16.mxu1 %v2571_v42 }
 0x808   : > { %2531 = vmatmul.mubr.f32.vlgmr.msra.gmra.mrb[6].mxu1 %v1341_v31 }
 0x809   : > { %2594 = vmatpush3.bf16.msra.mxu1 %v2571_v42  ;;  %2537 = vmatprep.mubr.f32.mxu1 %v1331_v23 }
 0x80a   : > { %2451 = vmatprep.subr.msk.mxu1 %vm940_vm10, %v3424_v43 }
 0x810   : > { %2538 = vmatmul.mubr.f32.vlgmr.msra.gmra.mrb[6].mxu1 %v1341_v31 }
 0x811   : > { %2452 = vmatpush1.msk.msra.mxu1 %vm940_vm10, %v3421_v14  ;;  %2227 = vmatprep.mubr.f32.mxu1 %v2945_v0 }
 0x8e3   : > { %v2539_v56 = vpop.f32.mrb[6].mxu1 }
 0x8e4   : > { %v1767_v57 = vmul.f32 0.0009765625, %v2539_v56  ;;  %v1756_v53 = vpop.f32.mrb[7].mxu1  ;;  %v1937_v56 = vmul.f32 %v3608_v48, %v3421_v14 }
 0x8e5   : > { %v1766_v55 = vmul.f32 0.0009765625, %v1756_v53 }
 0x8e6   : > { %v1769_v58 = vmul.f32 %v1767_v57, %v1767_v57 }
 0x8e7   : > { %v1768_v59 = vmul.f32 %v1766_v55, %v1766_v55 }
 0x8e8   : > { %1774 = vrot.lane.b32.xlu0 %v1769_v58, %s2946_s16 }
 0x8e9   : > { %1772 = vrot.lane.b32.xlu1 %v1768_v59, %s2946_s16  ;;  %s2956_s16 = smov 5   ;;  %v2957_v59 = vmov 0.0|0.0  }
 0x8ea   : > { %2595 = vmatprep.subr.bf16.mxu0 %v2957_v59 }
 0x95a   : > { %v1775_v60 = vpop.permute.xlu0 %1774 }
 0x95b   : > { %v1779_v61 = vsub.f32 %v1767_v57, %v1775_v60  ;;  %v1773_v63 = vpop.permute.xlu1 %1772 }
 0x95c   : > { %v1778_v4 = vsub.f32 %v1766_v55, %v1773_v63 }
 0x95d   : > { %v1781_v7 = vmax.f32 %v1779_v61, 0.0 }
 0x95e   : > { %v1780_v8 = vmax.f32 %v1778_v4, 0.0 }
 0x95f   : > { %v1783_v12 = vadd.f32 1e-05, %v1781_v7 }
 0x960   : > { %v1782_v11 = vadd.f32 1e-05, %v1780_v8 }
 0x962   : > { %2727 = vrsqrt.f32 %v1782_v11 }
 0x963   : > { %2729 = vrsqrt.f32 %v1783_v12 }
 0x96c   : > { %v2728_v18 = vpop.eup %2727 }
 0x96d   : > { %1788 = vrot.lane.b32.xlu1 %v2728_v18, %s2954_s12  ;;  %v2730_v19 = vpop.eup %2729  ;;  %v1955_v18 = vld [vmem:[#allocation8] sm:$0xff] }
 0x971   : > { %1790 = vrot.lane.b32.xlu1 %v2730_v19, %s2954_s12  ;;  %v2030_v19 = vld [vmem:[%s3714_s7] sm:$0xff] }
 0x9df   : > { %v1789_v22 = vpop.permute.xlu1 %1788 }
 0x9e0   : > { %v1794_v13 = vmul.f32 %v1789_v22, %v3356_v3 }
 0x9e2   : > { %1798 = vrot.lane.b32.xlu0 %v1794_v13, %s2955_s18 }
 0x9e3   : > { %v1791_v24 = vpop.permute.xlu1 %1790 }
 0x9e4   : > { %v1795_v15 = vmul.f32 %v1791_v24, %v3363_v5 }
 0x9e6   : > { %1800 = vrot.lane.b32.xlu1 %v1795_v15, %s2955_s18  ;;  %v2031_v15 = vld [vmem:[%s3714_s7 + $0x8] sm:$0xff] }
 0xa54   : > { %v1799_v17 = vpop.permute.xlu0 %1798 }
 0xa55   : > { %v1804_v20 = vmul.f32 %v1799_v17, %v1766_v55  ;;  %2442 = vmatmul.mubr.msk.f32.vlgmr.msra.gmra.mrb[14].mxu0 %vm927_vm11, %v1799_v17  ;;  %v2032_v17 = vld [vmem:[%s3714_s7 + $0x10] sm:$0xff] }
 0xa56   : > { %1904 = vmatprep.mubr.f32.mxu0 %v2945_v0 }
 0xa57   : > { %1808 = vrot.lane.b32.xlu0 %v1804_v20, %s2956_s16  ;;  %v2033_v20 = vld [vmem:[%s3714_s7 + $0x18] sm:$0xff] }
 0xa58   : > { %v1801_v21 = vpop.permute.xlu1 %1800 }
 0xa59   : > { %v1805_v23 = vmul.f32 %v1801_v21, %v1767_v57  ;;  %2443 = vmatmul.mubr.msk.f32.gmra.mrb[16].mxu0 %vm927_vm11, %v1801_v21  ;;  %v3613_v57 = vld [vmem:[%s3203_s13 + $0x18] sm:$0xff]  ;;  %v2959_v21 = vmov 6  }
 0xa5a   : > { %1910 = vmatprep.mubr.f32.mxu0 %v2945_v0  ;;  %v1938_v53 = vmul.f32 %v3613_v57, %v3424_v43  ;;  %2721 = vset.pattern.permute.xlu1 %v2959_v21 }
 0xa5b   : > { %1810 = vrot.lane.b32.xlu1 %v1805_v23, %s2956_s16  ;;  %2722 = vset.pattern.permute.xlu0 %v2959_v21  ;;  %s3661_s16 = scalar_lea.hbm %s3717_s10, %s2463_s27 }
 0xa5c   : > { %v1948_v58 = vadd.f32 %v1938_v53, %v1937_v56 }
 0xac9   : > { %v1809_v25 = vpop.permute.xlu0 %1808 }
 0xaca   : > { %v1814_v26 = vsub.f32 %v3356_v3, %v1809_v25 }
 0xacc   : > { %1818 = vrot.lane.b32.xlu0 %v1814_v26, %s2947_s19 }
 0xacd   : > { %v1811_v27 = vpop.permute.xlu1 %1810 }
 0xace   : > { %v1815_v28 = vsub.f32 %v3363_v5, %v1811_v27 }
 0xad0   : > { %1820 = vrot.lane.b32.xlu1 %v1815_v28, %s2947_s19  ;;  %s2960_s19 = smov [#allocation10]  }
 0xad1   : > { %s2867_s20 = sshll.u32 %s2960_s19, 4  ;;  %s2868_s20 = int_to_ptr.vmem [resolvable:$false] %s2867_s20 }
 0xad2   : > { %s2869_s15 = scalar_lea.vmem %s2868_s20, 1024  ;;  %p2870_p6 = scmp.lt.s32.totalorder %s3656_s22, %s2868_s20 }
 0xb28   : > { %v1900_v29 = vpop.f32.mrb[14].mxu0 }
 0xb29   : > { %v1902_v30 = vpop.f32.mrb[15].mxu0  ;;  %v1923_v36 = vmul.f32 %v1900_v29, %v3525_v52 }
 0xb2a   : > { %v1924_v37 = vmul.f32 %v1902_v30, %v3527_v54  ;;  %v3590_v54 = vld [vmem:[%s3203_s13] sm:$0xff]  ;;  %s2863_s13 = scalar_lea.vmem %s3656_s22, 512 }
 0xb2b   : > { %v1935_v45 = vmul.f32 %v3590_v54, %v3421_v14  ;;  %p2864_p8 = scmp.ne.s32.totalorder %s3656_s22, %s2863_s13  ;;  %p2871_p9 = scmp.lt.s32.totalorder %s2869_s15, %s2863_s13 }
 0xb2c   : > { %v1906_v31 = vpop.f32.mrb[16].mxu0 }
 0xb2d   : > { %v1908_v32 = vpop.f32.mrb[17].mxu0  ;;  %v1925_v41 = vmul.f32 %v1906_v31, %v3537_v6  ;;  %v1936_v6 = vmul.f32 %v3595_v46, %v3424_v43  ;;  %p2865_p13 = pnand %p2864_p8, %p3745_p11  ;;  %p2872_p5 = por %p2871_p9, %p2870_p6 }
 0xb2e   : > { %v1926_v42 = vmul.f32 %v1908_v32, %v3541_v9 }
 0xb2f   : > { %v1945_v47 = vadd.f32 %v1936_v6, %v1935_v45  ;;  %p2866_p1 = pneg %p2865_p13 }
 0xb31   : > { %p2873_p10 = pnand %p2872_p5, %p2866_p1 }
 0xb3e   : > { %v1819_v33 = vpop.permute.xlu0 %1818 }
 0xb3f   : > { %1822 = vrot.lane.b32.xlu0 %v1819_v33, %s2955_s18 }
 0xb42   : > { %v1821_v34 = vpop.permute.xlu1 %1820 }
 0xb43   : > { %1824 = vrot.lane.b32.xlu1 %v1821_v34, %s2955_s18 }
 0xbb1   : > { %v1823_v35 = vpop.permute.xlu0 %1822 }
 0xbb2   : > { %2444 = vmatmul.mubr.msk.f32.gmra.mrb[18].mxu0 %vm927_vm11, %v1823_v35 }
 0xbb3   : > { %1916 = vmatprep.mubr.f32.mxu0 %v2945_v0 }
 0xbb5   : > { %v1825_v62 = vpop.permute.xlu1 %1824 }
 0xbb6   : > { %2445 = vmatmul.mubr.msk.f32.gmra.mrb[20].mxu0 %vm927_vm11, %v1825_v62 }
 0xbb7   : > { %2548 = vmatprep.mubr.msk.f32.mxu0 %vm2958_vm0, %v2945_v0 }
 0xc85   : > { %v1912_v38 = vpop.f32.mrb[18].mxu0 }
 0xc86   : > { %v3579_v10 = vadd.f32 %v1923_v36, %v1912_v38  ;;  %v1914_v39 = vpop.f32.mrb[19].mxu0 }
 0xc87   : > { %v3581_v40 = vadd.f32 %v1924_v37, %v1914_v39 }
 0xc88   : > { %v1931_v16 = vmul.f32 %v3579_v10, %v3421_v14 }
 0xc89   : > { %v1932_v44 = vmul.f32 %v3581_v40, %v3424_v43  ;;  %v1918_v52 = vpop.f32.mrb[20].mxu0 }
 0xc8a   : > { %v3599_v49 = vadd.f32 %v1925_v41, %v1918_v52  ;;  %v1920_v50 = vpop.f32.mrb[21].mxu0 }
 0xc8b   : > { %v3601_v51 = vadd.f32 %v1926_v42, %v1920_v50  ;;  %v1939_v9 = vadd.f32 %v1932_v44, %v1931_v16 }
 0xc8c   : > { %v1933_v1 = vmul.f32 %v3599_v49, %v3421_v14 }
 0xc8d   : > { %v1934_v2 = vmul.f32 %v3601_v51, %v3424_v43  ;;  %1940 = vadd.xlane.f32.xlu0 %v1939_v9 }
 0xc8f   : > { %v1942_v55 = vadd.f32 %v1934_v2, %v1933_v1 }
 0xc91   : > { %1946 = vadd.xlane.f32.xlu0 %v1945_v47  ;;  %1943 = vadd.xlane.f32.xlu1 %v1942_v55 }
 0xc95   : > { %1949 = vadd.xlane.f32.xlu0 %v1948_v58 }
 0xca2   : > { %2277 = vperm.xlu1 %2721, %v3356_v3  }
 0xcab   : > { %2281 = vperm.xlu0 %2722, %v3363_v5  }
 0xd1a   : > { %v1941_v60 = vpop.xlane.xlu0 %1940 }
 0xd1b   : > { %v1951_v4 = vmul.f32 0.00390625, %v1941_v60 }
 0xd1e   : > { %v1947_v61 = vpop.xlane.xlu0 %1946  ;;  %v1944_v63 = vpop.xlane.xlu1 %1943 }
 0xd1f   : > { %v1952_v14 = vmul.f32 0.00390625, %v1944_v63  ;;  %v1953_v11 = vmul.f32 0.00390625, %v1947_v61 }
 0xd21   : > { %v2596_v7 = vpack.c.bf16 %v1952_v14, %v1951_v4 }
 0xd22   : > { %v1950_v8 = vpop.xlane.xlu0 %1949  ;;  %v2278_v14 = vpop.permute.xlu1 %2277 }
 0xd23   : > { %v1954_v12 = vmul.f32 0.00390625, %v1950_v8  ;;  %2597 = vmatpush3.bf16.msra.mxu0 %v2596_v7 }
 0xd24   : > { %2598 = vmatprep.subr.bf16.mxu0 %v2957_v59 }
 0xd25   : > { %v2599_v43 = vpack.c.bf16 %v1954_v12, %v1953_v11 }
 0xd27   : > { %2600 = vmatpush3.bf16.msra.mxu0 %v2599_v43 }
 0xd2a   : > { %2549 = vmatmul.mubr.msk.f32.vlgmr.msra.gmra.mrb[22].mxu0 %vm770_vm5, %v1955_v18 }
 0xd2b   : > { %2553 = vmatprep.mubr.msk.f32.mxu0 %vm1126_vm12, %v2030_v19 }
 0xdfd   : > { %v2025_v22 = vpop.f32.mrb[22].mxu0 }
 0xdfe   : > { %v2029_v13 = vmax.f32 %v2025_v22, 0.0  ;;  %v2550_v24 = vpop.f32.mrb[23].mxu0  ;;  %v2282_v22 = vpop.permute.xlu0 %2281 }
 0xe00   : > { %2551 = vmatprep.subr.mxu0 %v2029_v13 }
 0xe01   : > { %2552 = vmatpush3.msra.mxu0 %v2029_v13 }
 0xe02   : > { %2554 = vmatmul.mubr.msk.f32.vlgmr.msra.gmra.mrb[24].mxu0 %vm1126_vm12, %v2031_v15 }
 0xe03   : > { %2556 = vmatprep.mubr.msk.f32.mxu0 %vm1126_vm12, %v2032_v17 }
 0xe06   : > { %2557 = vmatmul.mubr.msk.f32.gmra.mrb[26].mxu0 %vm1126_vm12, %v2033_v20 }
 0xed5   : > { %v2555_v23 = vpop.f32.mrb[24].mxu0 }
 0xed6   : > { %v2132_v25 = vsub.f32 0.0, %v2555_v23  ;;  %v2112_v26 = vpop.f32.mrb[25].mxu0 }
 0xed7   : > { %v2131_v27 = vsub.f32 0.0, %v2112_v26 }
 0xed8   : > { %v2137_v28 = vmul.f32 1.442695, %v2132_v25 }
 0xed9   : > { %v2135_v29 = vmul.f32 1.442695, %v2131_v27  ;;  %v2558_v30 = vpop.f32.mrb[26].mxu0 }
 0xeda   : > { %2731 = vpow2.f32 %v2137_v28  ;;  %v2122_v31 = vpop.f32.mrb[27].mxu0  ;;  %v2134_v32 = vsub.f32 0.0, %v2558_v30 }
 0xedb   : > { %2733 = vpow2.f32 %v2135_v29  ;;  %v2133_v33 = vsub.f32 0.0, %v2122_v31 }
 0xedc   : > { %v2141_v35 = vmul.f32 1.442695, %v2134_v32 }
 0xedd   : > { %v2139_v34 = vmul.f32 1.442695, %v2133_v33 }
 0xedf   : > { %2735 = vpow2.f32 %v2139_v34 }
 0xee0   : > { %2737 = vpow2.f32 %v2141_v35 }
 0xee4   : > { %v2732_v62 = vpop.eup %2731 }
 0xee5   : > { %v2734_v3 = vpop.eup %2733  ;;  %v2144_v5 = vadd.f32 1.0, %v2732_v62 }
 0xee6   : > { %v2143_v36 = vadd.f32 1.0, %v2734_v3 }
 0xee8   : > { %2739 = vrcp.f32 %v2143_v36 }
 0xee9   : > { %v2736_v37 = vpop.eup %2735  ;;  %2741 = vrcp.f32 %v2144_v5 }
 0xeea   : > { %v2145_v38 = vadd.f32 1.0, %v2736_v37  ;;  %v2738_v39 = vpop.eup %2737 }
 0xeeb   : > { %v2146_v41 = vadd.f32 1.0, %v2738_v39 }
 0xeec   : > { %2743 = vrcp.f32 %v2145_v38 }
 0xeed   : > { %2745 = vrcp.f32 %v2146_v41 }
 0xef2   : > { %v2740_v16 = vpop.eup %2739 }
 0xef3   : > { %2453 = vmatmul.mubr.msk.f32.vlgmr.msra.gmra.mrb[8].mxu1 %vm927_vm11, %v2740_v16  ;;  %v2742_v42 = vpop.eup %2741 }
 0xef4   : > { %2233 = vmatprep.mubr.f32.mxu1 %v2945_v0 }
 0xef6   : > { %v2744_v44 = vpop.eup %2743 }
 0xef7   : > { %2454 = vmatmul.mubr.msk.f32.gmra.mrb[10].mxu1 %vm927_vm11, %v2742_v42  ;;  %v2746_v52 = vpop.eup %2745 }
 0xef8   : > { %2239 = vmatprep.mubr.f32.mxu1 %v2945_v0 }
 0xefb   : > { %2455 = vmatmul.mubr.msk.f32.gmra.mrb[12].mxu1 %vm927_vm11, %v2744_v44 }
 0xefc   : > { %2245 = vmatprep.mubr.f32.mxu1 %v2945_v0 }
 0xeff   : > { %2456 = vmatmul.mubr.msk.f32.gmra.mrb[14].mxu1 %vm927_vm11, %v2746_v52 }
 0xfc6   : > { %v2229_v45 = vpop.f32.mrb[8].mxu1 }
 0xfc7   : > { %v2231_v6 = vpop.f32.mrb[9].mxu1  ;;  %v2260_v1 = vadd.f32 1.0, %v2229_v45 }
 0xfc8   : > { %v2261_v2 = vadd.f32 1.0, %v2231_v6 }
 0xfc9   : > { %v2264_v58 = vmul.f32 %v2260_v1, %v3579_v10 }
 0xfca   : > { %v2235_v50 = vpop.f32.mrb[10].mxu1  ;;  %v2265_v60 = vmul.f32 %v2261_v2, %v3581_v40 }
 0xfcb   : > { %v2237_v9 = vpop.f32.mrb[11].mxu1  ;;  %v2262_v59 = vadd.f32 1.0, %v2235_v50 }
 0xfcc   : > { %v2263_v61 = vadd.f32 1.0, %v2237_v9 }
 0xfcd   : > { %v2266_v18 = vmul.f32 %v2262_v59, %v3599_v49 }
 0xfce   : > { %v2241_v47 = vpop.f32.mrb[12].mxu1  ;;  %v2267_v40 = vmul.f32 %v2263_v61, %v3601_v51 }
 0xfcf   : > { %v2252_v56 = vadd.f32 1.0, %v2241_v47  ;;  %v2243_v53 = vpop.f32.mrb[13].mxu1 }
 0xfd0   : > { %v2253_v55 = vadd.f32 1.0, %v2243_v53 }
 0xfd1   : > { %v2256_v0 = vmul.f32 %v3590_v54, %v2252_v56 }
 0xfd2   : > { %v2257_v63 = vmul.f32 %v3595_v46, %v2253_v55  ;;  %v2247_v4 = vpop.f32.mrb[14].mxu1 }
 0xfd3   : > { %v2268_v7 = vadd.f32 %v2264_v58, %v2256_v0  ;;  %v2254_v8 = vadd.f32 1.0, %v2247_v4  ;;  %v2249_v11 = vpop.f32.mrb[15].mxu1 }
 0xfd4   : > { %v2269_v12 = vadd.f32 %v2265_v60, %v2257_v63  ;;  %v2255_v43 = vadd.f32 1.0, %v2249_v11 }
 0xfd5   : > { %v2258_v10 = vmul.f32 %v3608_v48, %v2254_v8  ;;  %vm2272_vm2 = vcmp.ge.f32.partialorder %v2268_v7, 0.0  ;;  %v2284_v54 = vmul.f32 %v2278_v14, %v2268_v7 }
 0xfd6   : > { %v2259_v46 = vmul.f32 %v3613_v57, %v2255_v43  ;;  %vm2273_vm3 = vcmp.ge.f32.partialorder %v2269_v12, 0.0  ;;  %v2285_v19 = vmul.f32 %v2278_v14, %v2269_v12 }
 0xfd7   : > { %v2270_v13 = vadd.f32 %v2266_v18, %v2258_v10  ;;  %v2288_v24 = vsel %vm2272_vm2, %v2268_v7, %v2284_v54 }
 0xfd8   : > { %v2271_v15 = vadd.f32 %v2267_v40, %v2259_v46  ;;  %v2289_v17 = vsel %vm2273_vm3, %v2269_v12, %v2285_v19  ;;  %2292 = vst [vmem:[%s409_s29] sm:$0xff] %v2288_v24 }
 0xfd9   : > { %2293 = vst [vmem:[%s409_s29 + $0x8] sm:$0xff] %v2289_v17  ;;  %vm2274_vm4 = vcmp.ge.f32.partialorder %v2270_v13, 0.0  ;;  %v2286_v49 = vmul.f32 %v2282_v22, %v2270_v13 }
 0xfda   : > { %vm2275_vm5 = vcmp.ge.f32.partialorder %v2271_v15, 0.0  ;;  %v2287_v51 = vmul.f32 %v2282_v22, %v2271_v15 }
 0xfdb   : > { %v2290_v48 = vsel %vm2274_vm4, %v2270_v13, %v2286_v49 }
 0xfdc   : > { %v2291_v57 = vsel %vm2275_vm5, %v2271_v15, %v2287_v51  ;;  %2294 = vst [vmem:[%s409_s29 + $0x10] sm:$0xff] %v2290_v48 }
 0xfdd   : > { %2295 = vst [vmem:[%s409_s29 + $0x18] sm:$0xff] %v2291_v57 }
 0xfde   : > { %2876 = shalt.err (!%p2873_p10)
}
 0xfdf   : > { %s2877_s25 = scalar_lea.hbm %s3661_s16, 512  ;;  %s2881_s24 = scalar_lea.hbm %s3717_s10, 1024 }
 0xfe0   : > { %p2878_p0 = scmp.ne.s32.totalorder %s3661_s16, %s2877_s25  ;;  %p2882_p4 = scmp.lt.u32.totalorder %s3661_s16, %s3717_s10 }
 0xfe1   : > { %p2883_p12 = scmp.lt.u32.totalorder %s2881_s24, %s2877_s25  ;;  %p2885_p8 = scmp.lt.u32.totalorder %s2877_s25, %s3661_s16 }
 0xfe2   : > { %p2879_p2 = pnand %p2878_p0, %p3745_p11 }
 0xfe3   : > { %p2884_p7 = por %p2883_p12, %p2882_p4 }
 0xfe4   : > { %p2880_p3 = pneg %p2879_p2 }
 0xfe5   : > { %p2886_p13 = por %p2885_p8, %p2884_p7 }
 0xfe7   : > { %p2887_p1 = pnand %p2886_p13, %p2880_p3 }
 0xfe9   : > { %2890 = shalt.err (!%p2887_p1)
}
 0xfea   : > { %s2961_s29 = smov 256  }
 0xfeb   : > { %2631 = dma.vmem_to_hbm [thread:$0]  (%p3745_p11), %s3656_s22, 512, %s3661_s16, %s3665_s17, %s2961_s29, %s2961_s29, %s2948_s11  }
 0xfec PF: > { %s3746_s27 = sld [smem:[#allocation17_spill]]  ;;  %s3747_s12 = sld [smem:[#allocation15_spill]] }
 0xfed   : > { %s3748_s18 = sld [smem:[#allocation20_spill]] }
 0xff2   : > { %p2658_p6 = scmp.ge.s32.totalorder %s3746_s27, 2  ;;  %s2325_s13 = sand.u32 1, %s3747_s12  }
 0xff3   : > { %p3749_p9 = scmp.ne.s32.totalorder %s3748_s18, 0  ;;  %s2326_s19 = scalar_lea.sflag [#allocation4], %s2325_s13 }
 0xff5   : > { %p2647_p5 = pnand %p2658_p6, %p3749_p9 }
 0xff7   : > { %2920 = dma.done.wait (!%p2647_p5), %s2326_s19, 512  }
 0xff8   : > { %2922 = vsyncadd (!%p2647_p5), %s2326_s19, 4294966784  ;;  %s3750_s16 = sld [smem:[#allocation18_spill]]  ;;  %s3751_s20 = sld [smem:[#allocation16_spill]] }
 0xff9   : > { %s3752_s15 = sld [smem:[#allocation19_spill]]  ;;  %s3753_s13 = smov %s2929_s14 }
 0xffe   : > { %p23_p10 = scmp.ge.s32.totalorder %s3750_s16, 4   ;;  %s3754_s14 = smov %s3751_s20 }
0x1000   :  { %25 = sbr.rel (!%p23_p10) target bundleno = 6 (0x6), region = 112 }
0x1007   :  { %2331 = vsyncpa [#allocation3], 1 }
0x1008   :  { %2333 = vsyncpa [#allocation3 + $0x1], 1 }
0x1009   :  { %2334 = vsyncpa [#allocation6], 1 }
0x100a   :  { %2335 = vsyncpa [#allocation9], 1 }
0x100b   :  { %2336 = vsyncpa [#allocation4], 1 }
0x100c   :  { %2338 = vsyncpa [#allocation4 + $0x1], 1 }

// kernel: tpu_custom_call.1
= control target key start
LH: loop header
LB: loop body
LE: loop exit
PB: predicated region body
PF: predicated region fallthrough
CT: control target
= control target key end

     0   :  { %15 = vsyncpa [#allocation3], 0  ;;  %s3193_s0 = inlined_call_operand.vmem [shape: f32[2,16,256], index: 0, kind: input, shape index: {}]   ;;  %s3194_s1 = inlined_call_operand.vmem [shape: f32[1,256], index: 1, kind: input, shape index: {}]   ;;  %s3195_s2 = inlined_call_operand.hbm [shape: f32[16,16], index: 2, kind: input, shape index: {}]   ;;  %s3196_s3 = inlined_call_operand.hbm [shape: f32[16,32], index: 3, kind: input, shape index: {}]   ;;  %s3197_s4 = inlined_call_operand.vmem [shape: f32[16,8], index: 4, kind: input, shape index: {}]   ;;  %s3198_s5 = inlined_call_operand.hbm [shape: f32[16,16], index: 5, kind: input, shape index: {}]   ;;  %s3199_s6 = inlined_call_operand.hbm [shape: f32[8,32], index: 6, kind: input, shape index: {}]   ;;  %s3200_s7 = inlined_call_operand.vmem [shape: f32[32,8], index: 7, kind: input, shape index: {}]   ;;  %s3201_s8 = inlined_call_operand.vmem [shape: f32[16,7], index: 8, kind: input, shape index: {}]   ;;  %s3202_s9 = inlined_call_operand.vmem [shape: f32[12,256], index: 9, kind: input, shape index: {}]   ;;  %s3203_s10 = inlined_call_operand.hbm [shape: f32[2,16,256], index: 10, kind: output, shape index: {}]  }
   0x1   :  { %16 = vsyncpa [#allocation6], 0 }
   0x2   :  { %17 = vsyncpa [#allocation9], 0 }
   0x3   :  { %18 = vsyncpa [#allocation4], 0 }
   0x4   :  { %20 = vsyncpa [#allocation4 + $0x1], 0  ;;  %s2503_s13 = smov 0   ;;  %s2505_s14 = smov 0  }
   0x5   :  { %s2507_s15 = smov 0   ;;  %s2509_s16 = smov 0  }
   0x6 LB: > { %3213 = sst [smem:[#allocation15_spill]] %s2411_s13  ;;  %s2524_s17 = sadd.s32 4294967295, %s2423_s16   ;;  %s2423_s16 = sphi %s2509_s16, %s3236_s16   ;;  %s2419_s15 = sphi %s2507_s15, %s3238_s15   ;;  %s2415_s14 = sphi %s2505_s14, %s3240_s14   ;;  %s2411_s13 = sphi %s2503_s13, %s3239_s13  }
   0x7   : > { %3214 = sst [smem:[#allocation16_spill]] %s2419_s15  ;;  %s1986_s18 = sadd.s32 4294967294, %s2423_s16  }
   0x8   : > { %3215 = sst [smem:[#allocation17_spill]] %s2423_s16  ;;  %s2528_s19 = sadd.s32 1, %s2423_s16  }
   0x9   : > { %3216 = sst [smem:[#allocation18_spill]] %s2528_s19  ;;  %s248_s20 = sadd.s32 1, %s2419_s15 }
   0xa   : > { %s245_s21 = ssub.s32 %s2423_s16, %s2528_s19  ;;  %p258_p0 = scmp.ne.s32.totalorder %s2419_s15, %s2415_s14 }
   0xb   : > { %p246_p1 = scmp.eq.s32.totalorder %s245_s21, 0  ;;  %p259_p2 = scmp.eq.s32.totalorder %s2524_s17, 1 }
   0xc   : > { %p264_p3 = scmp.ne.s32.totalorder %s2415_s14, %s2411_s13  ;;  %p265_p4 = scmp.eq.s32.totalorder %s1986_s18, 1 }
   0xd   : > { %s2539_s22 = scalar_select %p246_p1, %s2419_s15, %s248_s20  }
   0xe   : > { %p2541_p5 = por %p259_p2, %p258_p0  ;;  %p2545_p6 = por %p265_p4, %p264_p3 }
   0xf   : > { %3217 = sst [smem:[#allocation19_spill]] %s2539_s22  ;;  %p1987_p7 = scmp.ge.s32.totalorder %s2423_s16, 1 }
  0x10   : > { %s3218_s23 = scalar_select %p2541_p5, 1, 0 }
  0x11   : > { %s3219_s24 = scalar_select %p2545_p6, 1, 0 }
  0x12   : > { %p272_p8 = scmp.lt.s32.totalorder %s2423_s16, 3  ;;  %p3205_p9 = scmp.eq.s32.totalorder %s2524_s17, 0 }
  0x13   : > { %3220 = sst [smem:[#allocation20_spill]] %s3219_s24  ;;  %s2425_s26 = smov [#allocation5]  }
  0x14   : > { %p2552_p10 = pnand %p1987_p7, %p272_p8  ;;  %s300_s27 = sshll.u32 %s2425_s26, 4  ;;  %s2558_s27 = int_to_ptr.vmem [resolvable:$true] %s300_s27 }
  0x15   : > { %s2426_s29 = smov [#allocation2]   ;;  %s2427_s11 = smov [#allocation7]  }
  0x16   : > { %s3221_s25 = scalar_select %p2552_p10, 1, 0 }
  0x17   : > { %p2119_p11 = pneg %p2552_p10  ;;  %s287_s30 = sshll.u32 %s2426_s29, 4  ;;  %s2566_s30 = int_to_ptr.vmem [resolvable:$true] %s287_s30 }
  0x18   : > { %s2568_s12 = sshll.u32 %s2427_s11, 4  ;;  %s2237_s21 = scalar_lea.hbm %s3196_s3, 256  ;;  %s317_s12 = int_to_ptr.vmem [resolvable:$true] %s2568_s12 }
  0x19   : > { %p2562_p12 = pnand %p3205_p9, %p2119_p11  ;;  %p2238_p13 = scmp.ne.s32.totalorder %s3196_s3, %s2237_s21 }
  0x1a   : > { %p2244_p3 = scmp.lt.u32.totalorder %s2237_s21, %s3196_s3 }
  0x1b   : > { %p2578_p0 = pneg %p2562_p12 }
  0x1d   : > { %p2240_p1 = pnand %p2578_p0, %p2238_p13 }
  0x1f   : > { %p2241_p2 = pneg %p2240_p1 }
  0x21   : > { %p2246_p4 = pnand %p2244_p3, %p2241_p2 }
  0x23   : > { %2249 = shalt.err (!%p2246_p4)
}
  0x24   : > { %s2250_s22 = scalar_lea.vmem %s2558_s27, 256  ;;  %p2258_p9 = scmp.lt.s32.totalorder %s2558_s27, %s2558_s27 }
  0x25   : > { %p2251_p7 = scmp.ne.s32.totalorder %s2558_s27, %s2250_s22  ;;  %p2259_p6 = scmp.lt.s32.totalorder %s2250_s22, %s2250_s22 }
  0x27   : > { %p2253_p8 = pnand %p2251_p7, %p2578_p0  ;;  %p2260_p13 = por %p2259_p6, %p2258_p9 }
  0x29   : > { %p2254_p11 = pneg %p2253_p8 }
  0x2b   : > { %p2261_p1 = pnand %p2260_p13, %p2254_p11 }
  0x2d   : > { %2264 = shalt.err (!%p2261_p1)
}
  0x2e   : > { %s2428_s18 = smov 128   ;;  %s2429_s20 = smov 8  }
  0x2f   : > { %2125 = dma.hbm_to_vmem [thread:$0]  (!%p2562_p12), %s3196_s3, 256, %s2558_s27, [#allocation6], %s2428_s18, %s2428_s18, %s2429_s20  }
  0x30   : > { %s2265_s22 = scalar_lea.hbm %s3195_s2, 256 }
  0x31   : > { %p2266_p6 = scmp.ne.s32.totalorder %s3195_s2, %s2265_s22  ;;  %p2272_p3 = scmp.lt.u32.totalorder %s2265_s22, %s3195_s2 }
  0x33   : > { %p2268_p9 = pnand %p2266_p6, %p2578_p0 }
  0x35   : > { %p2269_p2 = pneg %p2268_p9 }
  0x37   : > { %p2274_p4 = pnand %p2272_p3, %p2269_p2 }
  0x39   : > { %2277 = shalt.err (!%p2274_p4)
}
  0x3a   : > { %s2278_s27 = scalar_lea.vmem %s2566_s30, 256  ;;  %p2286_p13 = scmp.lt.s32.totalorder %s2566_s30, %s2566_s30 }
  0x3b   : > { %p2279_p7 = scmp.ne.s32.totalorder %s2566_s30, %s2278_s27  ;;  %p2287_p1 = scmp.lt.s32.totalorder %s2278_s27, %s2278_s27 }
  0x3d   : > { %p2281_p8 = pnand %p2279_p7, %p2578_p0  ;;  %p2288_p6 = por %p2287_p1, %p2286_p13 }
  0x3f   : > { %p2282_p11 = pneg %p2281_p8 }
  0x41   : > { %p2289_p9 = pnand %p2288_p6, %p2282_p11 }
  0x43   : > { %2292 = shalt.err (!%p2289_p9)
}
  0x44   : > { %2122 = dma.hbm_to_vmem [thread:$0]  (!%p2562_p12), %s3195_s2, 256, %s2566_s30, [#allocation3], %s2428_s18, %s2428_s18, %s2429_s20  }
  0x45   : > { %s2293_s21 = scalar_lea.hbm %s3198_s5, 256 }
  0x46   : > { %p2294_p2 = scmp.ne.s32.totalorder %s3198_s5, %s2293_s21  ;;  %p2300_p7 = scmp.lt.u32.totalorder %s2293_s21, %s3198_s5 }
  0x48   : > { %p2296_p3 = pnand %p2294_p2, %p2578_p0 }
  0x4a   : > { %p2297_p4 = pneg %p2296_p3 }
  0x4c   : > { %p2302_p8 = pnand %p2300_p7, %p2297_p4 }
  0x4e   : > { %2305 = shalt.err (!%p2302_p8)
}
  0x4f   : > { %s2306_s27 = scalar_lea.vmem %s317_s12, 256  ;;  %p2314_p6 = scmp.lt.s32.totalorder %s317_s12, %s317_s12 }
  0x50   : > { %p2307_p11 = scmp.ne.s32.totalorder %s317_s12, %s2306_s27  ;;  %p2315_p9 = scmp.lt.s32.totalorder %s2306_s27, %s2306_s27 }
  0x52   : > { %p2309_p13 = pnand %p2307_p11, %p2578_p0  ;;  %p2316_p5 = por %p2315_p9, %p2314_p6 }
  0x54   : > { %p2310_p1 = pneg %p2309_p13 }
  0x56   : > { %p2317_p10 = pnand %p2316_p5, %p2310_p1 }
  0x58   : > { %2320 = shalt.err (!%p2317_p10)
}
  0x59   : > { %2128 = dma.hbm_to_vmem [thread:$0]  (!%p2562_p12), %s3198_s5, 256, %s317_s12, [#allocation6], %s2428_s18, %s2428_s18, %s2429_s20  }
  0x5a   : > { %s2430_s16 = smov [#allocation8]   ;;  %s2321_s26 = scalar_lea.hbm %s3199_s6, 128 }
  0x5b   : > { %s330_s19 = sshll.u32 %s2430_s16, 4  ;;  %p2322_p5 = scmp.ne.s32.totalorder %s3199_s6, %s2321_s26  ;;  %s331_s19 = int_to_ptr.vmem [resolvable:$true] %s330_s19 }
  0x5c   : > { %p2328_p3 = scmp.lt.u32.totalorder %s2321_s26, %s3199_s6 }
  0x5d   : > { %p2324_p10 = pnand %p2322_p5, %p2578_p0 }
  0x5f   : > { %p2325_p2 = pneg %p2324_p10 }
  0x61   : > { %p2330_p4 = pnand %p2328_p3, %p2325_p2 }
  0x63   : > { %2333 = shalt.err (!%p2330_p4)
}
  0x64   : > { %s2334_s12 = scalar_lea.vmem %s331_s19, 128  ;;  %p2342_p13 = scmp.lt.s32.totalorder %s331_s19, %s331_s19 }
  0x65   : > { %p2335_p7 = scmp.ne.s32.totalorder %s331_s19, %s2334_s12  ;;  %p2343_p1 = scmp.lt.s32.totalorder %s2334_s12, %s2334_s12 }
  0x67   : > { %p2337_p8 = pnand %p2335_p7, %p2578_p0  ;;  %p2344_p6 = por %p2343_p1, %p2342_p13 }
  0x69   : > { %p2338_p11 = pneg %p2337_p8 }
  0x6b   : > { %p2345_p9 = pnand %p2344_p6, %p2338_p11 }
  0x6d   : > { %2348 = shalt.err (!%p2345_p9)
}
  0x6e   : > { %2131 = dma.hbm_to_vmem [thread:$0]  (!%p2562_p12), %s3199_s6, 128, %s331_s19, [#allocation9]  }
  0x6f   : > { %p3224_p5 = scmp.ne.s32.totalorder %s3221_s25, 0 }
  0x70   : > { %p3225_p10 = scmp.eq.s32.totalorder (!%p3224_p5), %s2524_s17, 0 }
  0x71   : > { %360 = sbr.rel (%p3224_p5) target bundleno = 4034 (0xfc2), region = 60 }
  0x78   : > { %2394 = dma.done.wait (%p3225_p10), [#allocation3], 256   ;;  %p3226_p0 = pmov %p3225_p10 }
  0x7a   : > { %2396 = vsyncadd (%p3226_p0), [#allocation3], 4294967040  ;;  %p3227_p2 = pmov %p3226_p0 }
  0x7b   : > { %p3228_p3 = pmov %p3226_p0 }
  0x7c   : > { %2398 = dma.done.wait (%p3227_p2), [#allocation6], 512  }
  0x7d   : > { %2400 = vsyncadd (%p3228_p3), [#allocation6], 4294966784  ;;  %p3229_p4 = pmov %p3226_p0 }
  0x7e   : > { %p3230_p12 = pmov %p3226_p0 }
  0x7f   : > { %2402 = dma.done.wait (%p3229_p4), [#allocation9], 128  }
  0x80   : > { %2404 = vsyncadd (%p3230_p12), [#allocation9], 4294967168  ;;  %p410_p7 = scmp.lt.s32.totalorder %s2524_s17, 1  ;;  %v2431_v0 = vmov 0.0   ;;  %v426_v7 = vld [vmem:[#allocation2] sm:$0xff]  ;;  %vm428_vm0 = vcmask 130048   ;;  %v524_v13 = vlaneseq }
  0x81   : > { %499 = vmatprep.mubr.f32.mxu1 %v2431_v0  ;;  %1009 = vmatprep.mubr.f32.mxu0 %v2431_v0  ;;  %v427_v8 = vld [vmem:[#allocation2 + $0x8] sm:$0xff]  ;;  %s2432_s16 = smov 1   ;;  %s2433_s19 = smov 127   ;;  %v2729_v19 = vld [vmem:[%s3202_s9] sm:$0xff]  ;;  %vm770_vm5 = vcmask 261120   ;;  %vm940_vm10 = vcmask 1040384  }
  0x82   : > { %s411_s15 = scalar_select %p410_p7, %s2524_s17, 1  ;;  %v2719_v14 = vshrl.u32 %v524_v13, 7  ;;  %v2721_v16 = vand.u32 127, %v524_v13  ;;  %v2735_v22 = vld [vmem:[%s3202_s9 + $0x8] sm:$0xff]  ;;  %vm927_vm11 = vcmask 7168   ;;  %vm1126_vm12 = vcmask 64512  }
  0x83   : > { %s2434_s11 = smov 16   ;;  %s2435_s22 = smov 112  }
  0x84   : > { %s2037_s25 = sshll.u32 %s411_s15, 5  ;;  %v2724_v18 = vsub.s32 0, %v2719_v14  ;;  %vm526_vm1 = vcmp.lt.s32.totalorder %v2721_v16, 1  ;;  %v2740_v24 = vsub.s32 1, %v2719_v14  ;;  %vm555_vm2 = vcmp.lt.s32.totalorder %v2721_v16, 127  ;;  %s2440_s12 = smov 3  }
  0x85   : > { %s2689_s13 = scalar_lea.vmem %s3193_s0, %s2037_s25  ;;  %v2774_v62 = vsub.s32 2, %v2719_v14  ;;  %vm588_vm3 = vcmp.lt.s32.totalorder %v2721_v16, 16  ;;  %vm617_vm4 = vcmp.lt.s32.totalorder %v2721_v16, 112  ;;  %v1117_v16 = vld [vmem:[%s3197_s4 + $0x8] sm:$0xff]  ;;  %s2441_s18 = smov 124  }
  0x86   : > { %v2692_v1 = vld [vmem:[%s2689_s13 + $0x8] sm:$0xff]  ;;  %v2695_v2 = vld [vmem:[%s2689_s13 + $0x18] sm:$0xff]  ;;  %v2698_v3 = vld [vmem:[%s2689_s13] sm:$0xff]  ;;  %v534_v23 = vrot.slane %v2729_v19, %v2724_v18  ;;  %v538_v27 = vrot.slane %v2735_v22, %v2724_v18  ;;  %v563_v32 = vrot.slane %v2729_v19, %v2740_v24  ;;  %v567_v36 = vrot.slane %v2735_v22, %v2740_v24  ;;  %s407_s21 = sand.u32 1, %s2415_s14   ;;  %s2038_s27 = sshll.u32 %s2524_s17, 9 }
  0x87   : > { %v2079_v4 = vpack.c.bf16 %v2695_v2, %v2692_v1  ;;  %v2703_v5 = vld [vmem:[%s2689_s13 + $0x10] sm:$0xff]  ;;  %s1998_s26 = sshll.u32 %s407_s21, 5  ;;  %s3151_s17 = scalar_lea.sflag [#allocation4], %s407_s21 }
  0x88   : > { %v2081_v6 = vpack.c.bf16 %v2703_v5, %v2698_v3  ;;  %s409_s29 = scalar_lea.vmem [#allocation10], %s1998_s26  ;;  %p3231_p11 = scmp.ne.s32.totalorder %s3218_s23, 0 }
  0x89   : > { %2080 = vmatprep.subr.bf16.mxu1 %v2079_v4  ;;  %v596_v4 = vrot.slane %v2729_v19, %v2774_v62 }
  0x8a   : > { %2082 = vmatpush1.bf16.msra.mxu1 %v2081_v6  ;;  %v600_v6 = vrot.slane %v2735_v22, %v2774_v62 }
  0x8d   : > { %2001 = vmatmul.mubr.msk.f32.vlgmr.msra.gmra.mrb[0].mxu1 %vm428_vm0, %v426_v7 }
  0x8e   : > { %505 = vmatprep.mubr.f32.mxu1 %v2431_v0 }
  0x91   : > { %2002 = vmatmul.mubr.msk.f32.gmra.mrb[2].mxu1 %vm428_vm0, %v427_v8 }
  0x92   : > { %841 = vmatprep.mubr.f32.mxu1 %v2431_v0 }
 0x160   : > { %v501_v9 = vpop.f32.mrb[0].mxu1 }
 0x161   : > { %516 = vrot.lane.b32.xlu0 %v501_v9, %s2432_s16  ;;  %v503_v10 = vpop.f32.mrb[1].mxu1  ;;  %v512_v34 = vmul.f32 0.4078072, %v501_v9 }
 0x162   : > { %520 = vrot.lane.b32.xlu1 %v503_v10, %s2432_s16  ;;  %v513_v50 = vmul.f32 0.4078072, %v503_v10 }
 0x164   : > { %v507_v11 = vpop.f32.mrb[2].mxu1 }
 0x165   : > { %547 = vrot.lane.b32.xlu0 %v501_v9, %s2433_s19  ;;  %v509_v12 = vpop.f32.mrb[3].mxu1  ;;  %v514_v38 = vmul.f32 0.4078072, %v507_v11 }
 0x166   : > { %549 = vrot.lane.b32.xlu1 %v507_v11, %s2433_s19  ;;  %v515_v53 = vmul.f32 0.4078072, %v509_v12 }
 0x169   : > { %518 = vrot.lane.b32.xlu0 %v507_v11, %s2432_s16 }
 0x16a   : > { %522 = vrot.lane.b32.xlu1 %v509_v12, %s2432_s16 }
 0x16d   : > { %551 = vrot.lane.b32.xlu0 %v503_v10, %s2433_s19  ;;  %v2786_v10 = vsub.s32 3, %v2719_v14 }
 0x16e   : > { %553 = vrot.lane.b32.xlu1 %v509_v12, %s2433_s19 }
 0x1d3   : > { %v517_v15 = vpop.permute.xlu0 %516 }
 0x1d4   : > { %v521_v17 = vpop.permute.xlu1 %520 }
 0x1d5   : > { %v529_v25 = vsel %vm526_vm1, %v521_v17, %v517_v15  ;;  %v527_v29 = vsel %vm526_vm1, %v517_v15, %v521_v17 }
 0x1d6   : > { %v539_v30 = vmul.f32 %v534_v23, %v529_v25  ;;  %v540_v39 = vmul.f32 %v538_v27, %v527_v29 }
 0x1d7   : > { %v548_v20 = vpop.permute.xlu0 %547 }
 0x1d8   : > { %v550_v21 = vpop.permute.xlu1 %549  ;;  %v543_v43 = vadd.f32 %v539_v30, %v512_v34  ;;  %v544_v56 = vadd.f32 %v540_v39, %v513_v50 }
 0x1db   : > { %v519_v26 = vpop.permute.xlu0 %518 }
 0x1dc   : > { %v523_v28 = vpop.permute.xlu1 %522 }
 0x1dd   : > { %v530_v31 = vsel %vm526_vm1, %v523_v28, %v519_v26  ;;  %v528_v35 = vsel %vm526_vm1, %v519_v26, %v523_v28 }
 0x1de   : > { %v541_v33 = vmul.f32 %v534_v23, %v530_v31  ;;  %v542_v47 = vmul.f32 %v538_v27, %v528_v35  ;;  %v629_v23 = vrot.slane %v2735_v22, %v2786_v10 }
 0x1df   : > { %v552_v37 = vpop.permute.xlu0 %551 }
 0x1e0   : > { %v556_v40 = vsel %vm555_vm2, %v548_v20, %v552_v37  ;;  %v558_v41 = vsel %vm555_vm2, %v552_v37, %v548_v20  ;;  %v554_v42 = vpop.permute.xlu1 %553  ;;  %v545_v48 = vadd.f32 %v541_v33, %v514_v38  ;;  %v546_v57 = vadd.f32 %v542_v47, %v515_v53 }
 0x1e1   : > { %v568_v44 = vmul.f32 %v563_v32, %v556_v40  ;;  %v557_v45 = vsel %vm555_vm2, %v550_v21, %v554_v42  ;;  %v559_v46 = vsel %vm555_vm2, %v554_v42, %v550_v21  ;;  %v569_v51 = vmul.f32 %v567_v36, %v558_v41 }
 0x1e2   : > { %v570_v49 = vmul.f32 %v563_v32, %v557_v45  ;;  %v571_v54 = vmul.f32 %v567_v36, %v559_v46  ;;  %v625_v21 = vrot.slane %v2729_v19, %v2786_v10 }
 0x1e3   : > { %v572_v52 = vadd.f32 %v568_v44, %v543_v43  ;;  %v573_v58 = vadd.f32 %v569_v51, %v544_v56 }
 0x1e4   : > { %v574_v55 = vadd.f32 %v570_v49, %v545_v48  ;;  %v575_v59 = vadd.f32 %v571_v54, %v546_v57 }
 0x1e5   : > { %580 = vrot.lane.b32.xlu0 %v572_v52, %s2434_s11  ;;  %v577_v25 = vmul.f32 0.36702648, %v573_v58  ;;  %v576_v26 = vmul.f32 0.36702648, %v572_v52 }
 0x1e6   : > { %582 = vrot.lane.b32.xlu1 %v574_v55, %s2434_s11  ;;  %v578_v29 = vmul.f32 0.36702648, %v574_v55  ;;  %v579_v30 = vmul.f32 0.36702648, %v575_v59 }
 0x1e9   : > { %584 = vrot.lane.b32.xlu0 %v573_v58, %s2434_s11 }
 0x1ea   : > { %586 = vrot.lane.b32.xlu1 %v575_v59, %s2434_s11 }
 0x1ed   : > { %609 = vrot.lane.b32.xlu0 %v572_v52, %s2435_s22 }
 0x1ee   : > { %611 = vrot.lane.b32.xlu1 %v574_v55, %s2435_s22 }
 0x1f1   : > { %613 = vrot.lane.b32.xlu0 %v573_v58, %s2435_s22 }
 0x1f2   : > { %615 = vrot.lane.b32.xlu1 %v575_v59, %s2435_s22 }
 0x257   : > { %v581_v60 = vpop.permute.xlu0 %580 }
 0x258   : > { %v583_v61 = vpop.permute.xlu1 %582 }
 0x25b   : > { %v585_v63 = vpop.permute.xlu0 %584 }
 0x25c   : > { %v587_v7 = vpop.permute.xlu1 %586  ;;  %v589_v8 = vsel %vm588_vm3, %v581_v60, %v585_v63  ;;  %v591_v9 = vsel %vm588_vm3, %v585_v63, %v581_v60  ;;  %v656_v63 = vsub.s32 6, %v2719_v14 }
 0x25d   : > { %v590_v11 = vsel %vm588_vm3, %v583_v61, %v587_v7  ;;  %v592_v12 = vsel %vm588_vm3, %v587_v7, %v583_v61  ;;  %v601_v15 = vmul.f32 %v596_v4, %v591_v9  ;;  %v602_v17 = vmul.f32 %v600_v6, %v589_v8 }
 0x25e   : > { %v603_v27 = vmul.f32 %v596_v4, %v592_v12  ;;  %v604_v28 = vmul.f32 %v600_v6, %v590_v11  ;;  %v684_v4 = vsub.s32 7, %v2719_v14  ;;  %v712_v7 = vsub.s32 4, %v2719_v14 }
 0x25f   : > { %v610_v13 = vpop.permute.xlu0 %609  ;;  %v605_v32 = vadd.f32 %v601_v15, %v576_v26  ;;  %v606_v33 = vadd.f32 %v602_v17, %v577_v25  ;;  %v657_v9 = vrot.slane %v2729_v19, %v656_v63  ;;  %v661_v11 = vrot.slane %v2735_v22, %v656_v63 }
 0x260   : > { %v612_v20 = vpop.permute.xlu1 %611  ;;  %v607_v41 = vadd.f32 %v603_v27, %v578_v29  ;;  %v608_v42 = vadd.f32 %v604_v28, %v579_v30  ;;  %v685_v12 = vrot.slane %v2729_v19, %v684_v4  ;;  %v713_v27 = vrot.slane %v2729_v19, %v712_v7 }
 0x261   : > { %v717_v30 = vrot.slane %v2735_v22, %v712_v7 }
 0x263   : > { %v614_v31 = vpop.permute.xlu0 %613 }
 0x264   : > { %v618_v34 = vsel %vm617_vm4, %v610_v13, %v614_v31  ;;  %v620_v35 = vsel %vm617_vm4, %v614_v31, %v610_v13  ;;  %v616_v36 = vpop.permute.xlu1 %615 }
 0x265   : > { %v630_v37 = vmul.f32 %v625_v21, %v618_v34  ;;  %v631_v38 = vmul.f32 %v629_v23, %v620_v35  ;;  %v619_v39 = vsel %vm617_vm4, %v612_v20, %v616_v36  ;;  %v621_v40 = vsel %vm617_vm4, %v616_v36, %v612_v20 }
 0x266   : > { %v632_v43 = vmul.f32 %v625_v21, %v619_v39  ;;  %v633_v44 = vmul.f32 %v629_v23, %v621_v40  ;;  %v689_v21 = vrot.slane %v2735_v22, %v684_v4 }
 0x267   : > { %v634_v45 = vadd.f32 %v630_v37, %v605_v32  ;;  %v635_v46 = vadd.f32 %v631_v38, %v606_v33  ;;  %v740_v32 = vsub.s32 5, %v2719_v14 }
 0x268   : > { %v2805_v47 = vadd.f32 %v632_v43, %v607_v41  ;;  %v2807_v48 = vadd.f32 %v633_v44, %v608_v42 }
 0x269   : > { %642 = vrot.lane.b32.xlu0 %v634_v45, %s2434_s11  ;;  %v757_v49 = vsub.f32 %v635_v46, %v2692_v1  ;;  %v756_v50 = vsub.f32 %v634_v45, %v2698_v3  ;;  %v2842_v1 = vld [vmem:[%s3201_s8] sm:$0xff]  ;;  %v2437_v3 = vmov 0   ;;  %v639_v15 = vmul.f32 -14.4, %v635_v46 }
 0x26a   : > { %644 = vrot.lane.b32.xlu1 %v2805_v47, %s2434_s11  ;;  %v759_v51 = vsub.f32 %v2807_v48, %v2695_v2  ;;  %v758_v52 = vsub.f32 %v2805_v47, %v2703_v5  ;;  %v2436_v2 = vmov 1   ;;  %2199 = vset.pattern.permute.xlu0 %v2437_v3  ;;  %v2849_v5 = vld [vmem:[%s3201_s8 + $0x8] sm:$0xff]  ;;  %v638_v23 = vmul.f32 -14.4, %v634_v45 }
 0x26b   : > { %2200 = vset.pattern.permute.xlu1 %v2436_v2  ;;  %v640_v42 = vmul.f32 -14.4, %v2805_v47  ;;  %v641_v14 = vmul.f32 -14.4, %v2807_v48 }
 0x26c   : > { %v2083_v53 = vpack.c.bf16 %v759_v51, %v757_v49  ;;  %v2085_v54 = vpack.c.bf16 %v758_v52, %v756_v50 }
 0x26d   : > { %646 = vrot.lane.b32.xlu0 %v635_v46, %s2434_s11 }
 0x26e   : > { %648 = vrot.lane.b32.xlu1 %v2807_v48, %s2434_s11  ;;  %2084 = vmatprep.subr.bf16.mxu1 %v2083_v53 }
 0x26f   : > { %2086 = vmatpush1.bf16.msra.mxu1 %v2085_v54 }
 0x271   : > { %670 = vrot.lane.b32.xlu0 %v634_v45, %s2435_s22 }
 0x272   : > { %672 = vrot.lane.b32.xlu1 %v2805_v47, %s2435_s22 }
 0x275   : > { %674 = vrot.lane.b32.xlu0 %v635_v46, %s2435_s22 }
 0x276   : > { %676 = vrot.lane.b32.xlu1 %v2807_v48, %s2435_s22 }
 0x279   : > { %698 = vrot.lane.b32.xlu0 %v634_v45, %s2432_s16 }
 0x27a   : > { %700 = vrot.lane.b32.xlu1 %v2805_v47, %s2432_s16 }
 0x27d   : > { %702 = vrot.lane.b32.xlu0 %v635_v46, %s2432_s16 }
 0x27e   : > { %704 = vrot.lane.b32.xlu1 %v2807_v48, %s2432_s16 }
 0x281   : > { %726 = vrot.lane.b32.xlu0 %v634_v45, %s2433_s19 }
 0x282   : > { %728 = vrot.lane.b32.xlu1 %v2805_v47, %s2433_s19 }
 0x285   : > { %730 = vrot.lane.b32.xlu0 %v635_v46, %s2433_s19 }
 0x286   : > { %732 = vrot.lane.b32.xlu1 %v2807_v48, %s2433_s19  ;;  %v741_v48 = vrot.slane %v2729_v19, %v740_v32 }
 0x289   : > { %762 = vperm.xlu0 %2199, %v2842_v1  }
 0x28a   : > { %859 = vperm.xlu1 %2200, %v2842_v1  }
 0x28d   : > { %2202 = vset.pattern.permute.xlu0 %v2436_v2 }
 0x28e   : > { %2201 = vset.pattern.permute.xlu1 %v2437_v3  ;;  %863 = vperm.xlu0 %2202, %v2849_v5  }
 0x28f   : > { %767 = vperm.xlu1 %2201, %v2849_v5  }
 0x2db   : > { %v643_v55 = vpop.permute.xlu0 %642 }
 0x2dc   : > { %v645_v56 = vpop.permute.xlu1 %644 }
 0x2df   : > { %v647_v57 = vpop.permute.xlu0 %646 }
 0x2e0   : > { %v649_v58 = vpop.permute.xlu1 %648  ;;  %v650_v17 = vsel %vm588_vm3, %v643_v55, %v647_v57  ;;  %v652_v20 = vsel %vm588_vm3, %v647_v57, %v643_v55 }
 0x2e1   : > { %v651_v25 = vsel %vm588_vm3, %v645_v56, %v649_v58  ;;  %v653_v26 = vsel %vm588_vm3, %v649_v58, %v645_v56  ;;  %v662_v33 = vmul.f32 %v657_v9, %v652_v20  ;;  %v663_v34 = vmul.f32 %v661_v11, %v650_v17 }
 0x2e2   : > { %v664_v38 = vmul.f32 %v657_v9, %v653_v26  ;;  %v665_v39 = vmul.f32 %v661_v11, %v651_v25  ;;  %v745_v56 = vrot.slane %v2735_v22, %v740_v32 }
 0x2e3   : > { %v671_v59 = vpop.permute.xlu0 %670  ;;  %v666_v52 = vadd.f32 %v662_v33, %v638_v23  ;;  %v667_v53 = vadd.f32 %v663_v34, %v639_v15  ;;  %v419_v34 = vld [vmem:[%s3194_s1] sm:$0x3] }
 0x2e4   : > { %v673_v60 = vpop.permute.xlu1 %672  ;;  %v668_v55 = vadd.f32 %v664_v38, %v640_v42  ;;  %v669_v47 = vadd.f32 %v665_v39, %v641_v14  ;;  %v2907_v38 = vrot.slane %v419_v34, %v2724_v18 }
 0x2e7   : > { %v675_v61 = vpop.permute.xlu0 %674 }
 0x2e8   : > { %v677_v6 = vpop.permute.xlu1 %676  ;;  %v678_v28 = vsel %vm617_vm4, %v671_v59, %v675_v61  ;;  %v680_v29 = vsel %vm617_vm4, %v675_v61, %v671_v59 }
 0x2e9   : > { %v679_v35 = vsel %vm617_vm4, %v673_v60, %v677_v6  ;;  %v681_v36 = vsel %vm617_vm4, %v677_v6, %v673_v60  ;;  %v690_v43 = vmul.f32 %v685_v12, %v678_v28  ;;  %v691_v44 = vmul.f32 %v689_v21, %v680_v29 }
 0x2ea   : > { %v692_v45 = vmul.f32 %v685_v12, %v679_v35  ;;  %v693_v46 = vmul.f32 %v689_v21, %v681_v36 }
 0x2eb   : > { %v699_v8 = vpop.permute.xlu0 %698  ;;  %v694_v57 = vadd.f32 %v690_v43, %v666_v52  ;;  %v695_v58 = vadd.f32 %v691_v44, %v667_v53 }
 0x2ec   : > { %v701_v13 = vpop.permute.xlu1 %700  ;;  %v696_v61 = vadd.f32 %v692_v45, %v668_v55  ;;  %v697_v63 = vadd.f32 %v693_v46, %v669_v47 }
 0x2ef   : > { %v703_v31 = vpop.permute.xlu0 %702 }
 0x2f0   : > { %v705_v37 = vpop.permute.xlu1 %704  ;;  %v706_v40 = vsel %vm526_vm1, %v699_v8, %v703_v31  ;;  %v708_v41 = vsel %vm526_vm1, %v703_v31, %v699_v8  ;;  %v755_v31 = vld [vmem:[#allocation5 + $0x8] sm:$0xff] }
 0x2f1   : > { %v707_v49 = vsel %vm526_vm1, %v701_v13, %v705_v37  ;;  %v709_v50 = vsel %vm526_vm1, %v705_v37, %v701_v13  ;;  %v718_v54 = vmul.f32 %v713_v27, %v708_v41  ;;  %v719_v2 = vmul.f32 %v717_v30, %v706_v40 }
 0x2f2   : > { %v720_v59 = vmul.f32 %v713_v27, %v709_v50  ;;  %v721_v60 = vmul.f32 %v717_v30, %v707_v49  ;;  %v754_v30 = vld [vmem:[#allocation5] sm:$0xff]  ;;  %v2910_v41 = vrot.slane %v419_v34, %v2740_v24 }
 0x2f3   : > { %v727_v51 = vpop.permute.xlu0 %726  ;;  %v722_v6 = vadd.f32 %v718_v54, %v694_v57  ;;  %v723_v7 = vadd.f32 %v719_v2, %v695_v58 }
 0x2f4   : > { %v729_v3 = vpop.permute.xlu1 %728  ;;  %v724_v15 = vadd.f32 %v720_v59, %v696_v61  ;;  %v725_v17 = vadd.f32 %v721_v60, %v697_v63  ;;  %2005 = vmatprep.subr.msk.mxu0 %vm940_vm10, %v2910_v41 }
 0x2f5   : > { %2006 = vmatpush1.msk.msra.mxu0 %vm940_vm10, %v2907_v38 }
 0x2f6   : > { %2015 = vmatprep.subr.msk.mxu0 %vm940_vm10, %v2910_v41 }
 0x2f7   : > { %v731_v4 = vpop.permute.xlu0 %730 }
 0x2f8   : > { %v734_v8 = vsel %vm555_vm2, %v727_v51, %v731_v4  ;;  %v736_v9 = vsel %vm555_vm2, %v731_v4, %v727_v51  ;;  %v733_v11 = vpop.permute.xlu1 %732 }
 0x2f9   : > { %v746_v12 = vmul.f32 %v741_v48, %v734_v8  ;;  %v747_v19 = vmul.f32 %v745_v56, %v736_v9  ;;  %v735_v22 = vsel %vm555_vm2, %v729_v3, %v733_v11  ;;  %v737_v13 = vsel %vm555_vm2, %v733_v11, %v729_v3 }
 0x2fa   : > { %v748_v20 = vmul.f32 %v741_v48, %v735_v22  ;;  %v749_v21 = vmul.f32 %v745_v56, %v737_v13 }
 0x2fb   : > { %v750_v23 = vadd.f32 %v746_v12, %v722_v6  ;;  %v751_v25 = vadd.f32 %v747_v19, %v723_v7 }
 0x2fc   : > { %v752_v26 = vadd.f32 %v748_v20, %v724_v15  ;;  %v753_v27 = vadd.f32 %v749_v21, %v725_v17 }
 0x2fe   : > { %v2089_v28 = vpack.c.bf16 %v752_v26, %v750_v23  ;;  %v2087_v29 = vpack.c.bf16 %v753_v27, %v751_v25 }
 0x300   : > { %2088 = vmatprep.subr.bf16.mxu1 %v2087_v29 }
 0x301   : > { %2090 = vmatpush1.bf16.msra.mxu1 %v2089_v28 }
 0x304   : > { %2003 = vmatmul.mubr.msk.f32.vlgmr.msra.gmra.mrb[4].mxu1 %vm770_vm5, %v754_v30 }
 0x305   : > { %847 = vmatprep.mubr.f32.mxu1 %v2431_v0 }
 0x308   : > { %2004 = vmatmul.mubr.msk.f32.gmra.mrb[6].mxu1 %vm770_vm5, %v755_v31  ;;  %v763_v33 = vpop.permute.xlu0 %762 }
 0x309   : > { %1197 = vmatprep.mubr.f32.mxu1 %v2431_v0  ;;  %v860_v32 = vpop.permute.xlu1 %859 }
 0x30d   : > { %v864_v44 = vpop.permute.xlu0 %863 }
 0x30e   : > { %v768_v40 = vpop.permute.xlu1 %767 }
 0x3d7   : > { %v843_v35 = vpop.f32.mrb[4].mxu1 }
 0x3d8   : > { %v844_v36 = vadd.f32 %v843_v35, %v763_v33  ;;  %v845_v37 = vpop.f32.mrb[5].mxu1 }
 0x3d9   : > { %v846_v39 = vadd.f32 %v845_v37, %v763_v33 }
 0x3da   : > { %vm854_vm6 = vcmp.ge.f32.partialorder %v844_v36, 0.0  ;;  %v866_v42 = vmul.f32 %v860_v32, %v844_v36 }
 0x3db   : > { %vm855_vm7 = vcmp.ge.f32.partialorder %v846_v39, 0.0  ;;  %v867_v14 = vmul.f32 %v860_v32, %v846_v39  ;;  %v849_v43 = vpop.f32.mrb[6].mxu1 }
 0x3dc   : > { %v2912_v45 = vsel %vm854_vm6, %v844_v36, %v866_v42  ;;  %v850_v46 = vadd.f32 %v849_v43, %v768_v40  ;;  %v851_v49 = vpop.f32.mrb[7].mxu1 }
 0x3dd   : > { %v2914_v50 = vsel %vm855_vm7, %v846_v39, %v867_v14  ;;  %v852_v51 = vadd.f32 %v851_v49, %v768_v40  ;;  %v889_v52 = vmul.f32 %v2907_v38, %v2912_v45  ;;  %v874_v53 = vmul.f32 %v2912_v45, %v2912_v45 }
 0x3de   : > { %vm856_vm8 = vcmp.ge.f32.partialorder %v850_v46, 0.0  ;;  %v868_v54 = vmul.f32 %v864_v44, %v850_v46  ;;  %v890_v2 = vmul.f32 %v2910_v41, %v2914_v50  ;;  %v875_v3 = vmul.f32 %v2914_v50, %v2914_v50 }
 0x3df   : > { %vm857_vm9 = vcmp.ge.f32.partialorder %v852_v51, 0.0  ;;  %v869_v55 = vmul.f32 %v864_v44, %v852_v51  ;;  %v893_v47 = vmul.f32 %v2907_v38, %v874_v53 }
 0x3e0   : > { %v897_v48 = vadd.f32 %v890_v2, %v889_v52  ;;  %v894_v56 = vmul.f32 %v2910_v41, %v875_v3  ;;  %v2926_v57 = vsel %vm856_vm8, %v850_v46, %v868_v54 }
 0x3e1   : > { %v2928_v58 = vsel %vm857_vm9, %v852_v51, %v869_v55  ;;  %v891_v59 = vmul.f32 %v2907_v38, %v2926_v57  ;;  %v876_v60 = vmul.f32 %v2926_v57, %v2926_v57 }
 0x3e2   : > { %898 = vadd.xlane.f32.xlu1 %v897_v48  ;;  %v903_v61 = vadd.f32 %v894_v56, %v893_v47  ;;  %v892_v63 = vmul.f32 %v2910_v41, %v2928_v58  ;;  %v877_v4 = vmul.f32 %v2928_v58, %v2928_v58  ;;  %v425_v56 = vld [vmem:[%s3202_s9 + $0x18] sm:$0xf] }
 0x3e3   : > { %v895_v6 = vmul.f32 %v2907_v38, %v876_v60  ;;  %v1057_v60 = vrot.slane %v425_v56, %v2724_v18 }
 0x3e4   : > { %904 = vadd.xlane.f32.xlu0 %v903_v61  ;;  %v900_v7 = vadd.f32 %v892_v63, %v891_v59  ;;  %v896_v8 = vmul.f32 %v2910_v41, %v877_v4  ;;  %v1073_v63 = vrot.slane %v425_v56, %v2740_v24 }
 0x3e6   : > { %901 = vadd.xlane.f32.xlu1 %v900_v7  ;;  %v906_v9 = vadd.f32 %v896_v8, %v895_v6 }
 0x3e8   : > { %907 = vadd.xlane.f32.xlu0 %v906_v9 }
 0x46f   : > { %v899_v11 = vpop.xlane.xlu1 %898 }
 0x470   : > { %v909_v12 = vmul.f32 0.00390625, %v899_v11 }
 0x471   : > { %v905_v19 = vpop.xlane.xlu0 %904 }
 0x472   : > { %v913_v22 = vmul.f32 %v909_v12, %v909_v12  ;;  %v911_v13 = vmul.f32 0.00390625, %v905_v19  ;;  %v923_v33 = vsub.f32 0.0, %v909_v12 }
 0x473   : > { %v902_v15 = vpop.xlane.xlu1 %901 }
 0x474   : > { %v915_v17 = vsub.f32 %v911_v13, %v913_v22  ;;  %v910_v20 = vmul.f32 0.00390625, %v902_v15 }
 0x475   : > { %v908_v21 = vpop.xlane.xlu0 %907 }
 0x476   : > { %v917_v23 = vmax.f32 %v915_v17, 0.0  ;;  %v914_v25 = vmul.f32 %v910_v20, %v910_v20  ;;  %v912_v26 = vmul.f32 0.00390625, %v908_v21  ;;  %v924_v35 = vsub.f32 0.0, %v910_v20 }
 0x477   : > { %v2438_v17 = vmov 2   ;;  %v2439_v20 = vmov 3  }
 0x478   : > { %v919_v27 = vadd.f32 1e-05, %v917_v23  ;;  %v916_v28 = vsub.f32 %v912_v26, %v914_v25  ;;  %2204 = vset.pattern.permute.xlu1 %v2438_v17  ;;  %2203 = vset.pattern.permute.xlu0 %v2438_v17  ;;  %v1093_v26 = vrot.slane %v425_v56, %v2774_v62 }
 0x47a   : > { %2209 = vrsqrt.f32 %v919_v27  ;;  %v918_v29 = vmax.f32 %v916_v28, 0.0  ;;  %v1109_v28 = vrot.slane %v425_v56, %v2786_v10 }
 0x47c   : > { %v920_v30 = vadd.f32 1e-05, %v918_v29 }
 0x47e   : > { %2211 = vrsqrt.f32 %v920_v30 }
 0x484   : > { %v2210_v31 = vpop.eup %2209 }
 0x485   : > { %2007 = vmatmul.mubr.msk.f32.vlgmr.msra.gmra.mrb[0].mxu0 %vm927_vm11, %v2210_v31  ;;  %v925_v34 = vmul.f32 %v2210_v31, %v923_v33 }
 0x486   : > { %1015 = vmatprep.mubr.f32.mxu0 %v2431_v0  ;;  %2016 = vmatpush1.msk.msra.mxu0 %vm940_vm10, %v2907_v38 }
 0x487   : > { %2026 = vmatprep.subr.msk.mxu0 %vm940_vm10, %v2910_v41 }
 0x488   : > { %v2212_v32 = vpop.eup %2211 }
 0x489   : > { %2008 = vmatmul.mubr.msk.f32.gmra.mrb[2].mxu0 %vm927_vm11, %v2212_v32  ;;  %v926_v36 = vmul.f32 %v2212_v32, %v924_v35 }
 0x48a   : > { %1021 = vmatprep.mubr.f32.mxu0 %v2431_v0 }
 0x48d   : > { %2009 = vmatmul.mubr.msk.f32.gmra.mrb[4].mxu0 %vm927_vm11, %v925_v34 }
 0x48e   : > { %1027 = vmatprep.mubr.f32.mxu0 %v2431_v0 }
 0x491   : > { %2010 = vmatmul.mubr.msk.f32.gmra.mrb[6].mxu0 %vm927_vm11, %v926_v36 }
 0x492   : > { %1471 = vmatprep.mubr.f32.mxu0 %v2431_v0 }
 0x558   : > { %v1011_v37 = vpop.f32.mrb[0].mxu0 }
 0x559   : > { %v1013_v39 = vpop.f32.mrb[1].mxu0  ;;  %v1034_v14 = vmul.f32 %v1011_v37, %v2912_v45 }
 0x55a   : > { %v1035_v43 = vmul.f32 %v1013_v39, %v2914_v50  ;;  %v424_v50 = vld [vmem:[%s3202_s9 + $0x10] sm:$0xf] }
 0x55b   : > { %v1053_v59 = vrot.slane %v424_v50, %v2724_v18  ;;  %v1069_v61 = vrot.slane %v424_v50, %v2740_v24  ;;  %v1089_v25 = vrot.slane %v424_v50, %v2774_v62  ;;  %v1105_v27 = vrot.slane %v424_v50, %v2786_v10 }
 0x55c   : > { %v1017_v40 = vpop.f32.mrb[2].mxu0 }
 0x55d   : > { %v1019_v42 = vpop.f32.mrb[3].mxu0  ;;  %v1036_v52 = vmul.f32 %v1017_v40, %v2926_v57 }
 0x55e   : > { %v1037_v53 = vmul.f32 %v1019_v42, %v2928_v58 }
 0x560   : > { %v1023_v44 = vpop.f32.mrb[4].mxu0 }
 0x561   : > { %v1038_v46 = vadd.f32 %v1034_v14, %v1023_v44  ;;  %v1025_v49 = vpop.f32.mrb[5].mxu0  ;;  %v1116_v14 = vld [vmem:[%s3197_s4] sm:$0xff] }
 0x562   : > { %v1039_v51 = vadd.f32 %v1035_v43, %v1025_v49 }
 0x564   : > { %v1029_v54 = vpop.f32.mrb[6].mxu0 }
 0x565   : > { %v1040_v2 = vadd.f32 %v1036_v52, %v1029_v54  ;;  %v1031_v3 = vpop.f32.mrb[7].mxu0 }
 0x566   : > { %v1041_v55 = vadd.f32 %v1037_v53, %v1031_v3 }
 0x567   : > { %v1042_v47 = vmul.f32 %v1040_v2, %v1038_v46 }
 0x568   : > { %v1043_v48 = vmul.f32 %v1041_v55, %v1039_v51 }
 0x569   : > { %1044 = vrot.lane.b32.xlu1 %v1042_v47, %s2432_s16 }
 0x56a   : > { %1046 = vrot.lane.b32.xlu0 %v1043_v48, %s2432_s16 }
 0x56d   : > { %1060 = vrot.lane.b32.xlu1 %v1042_v47, %s2433_s19 }
 0x571   : > { %1062 = vrot.lane.b32.xlu1 %v1043_v48, %s2433_s19 }
 0x5db   : > { %v1045_v45 = vpop.permute.xlu1 %1044 }
 0x5dc   : > { %v1047_v57 = vpop.permute.xlu0 %1046 }
 0x5dd   : > { %v1048_v4 = vsel %vm526_vm1, %v1045_v45, %v1047_v57  ;;  %v1049_v6 = vsel %vm526_vm1, %v1047_v57, %v1045_v45 }
 0x5de   : > { %v1058_v11 = vadd.f32 %v1053_v59, %v1049_v6  ;;  %v1059_v12 = vadd.f32 %v1057_v60, %v1048_v4 }
 0x5df   : > { %v1061_v58 = vpop.permute.xlu1 %1060 }
 0x5e3   : > { %v1063_v7 = vpop.permute.xlu1 %1062 }
 0x5e4   : > { %v1064_v8 = vsel %vm555_vm2, %v1061_v58, %v1063_v7  ;;  %v1065_v9 = vsel %vm555_vm2, %v1063_v7, %v1061_v58 }
 0x5e5   : > { %v1074_v18 = vadd.f32 %v1069_v61, %v1064_v8  ;;  %v1075_v19 = vadd.f32 %v1073_v63, %v1065_v9 }
 0x5e7   : > { %v1076_v22 = vmax.f32 %v1058_v11, %v1074_v18  ;;  %v1077_v13 = vmax.f32 %v1059_v12, %v1075_v19 }
 0x5e9   : > { %v1078_v24 = vmax.f32 %v1042_v47, %v1076_v22  ;;  %v1079_v15 = vmax.f32 %v1043_v48, %v1077_v13 }
 0x5eb   : > { %1080 = vrot.lane.b32.xlu0 %v1078_v24, %s2434_s11  ;;  %1082 = vrot.lane.b32.xlu1 %v1079_v15, %s2434_s11 }
 0x5ef   : > { %1096 = vrot.lane.b32.xlu0 %v1078_v24, %s2435_s22  ;;  %1098 = vrot.lane.b32.xlu1 %v1079_v15, %s2435_s22  ;;  %s1883_s22 = sshll.u32 %s409_s29, 4  ;;  %s3142_s22 = int_to_ptr.vmem [resolvable:$true] %s1883_s22 }
 0x5f3   : > { %1123 = vperm.xlu1 %2204, %v2849_v5   ;;  %1119 = vperm.xlu0 %2203, %v2842_v1  }
 0x5f7   : > { %2205 = vset.pattern.permute.xlu1 %v2439_v20  ;;  %2206 = vset.pattern.permute.xlu0 %v2439_v20  ;;  %v1254_v20 = vld [vmem:[#allocation7] sm:$0xff] }
 0x5f8   : > { %1215 = vperm.xlu1 %2205, %v2842_v1   ;;  %1219 = vperm.xlu0 %2206, %v2849_v5  }
 0x65d   : > { %v1081_v21 = vpop.permute.xlu0 %1080  ;;  %v1083_v23 = vpop.permute.xlu1 %1082 }
 0x65e   : > { %v1084_v29 = vsel %vm588_vm3, %v1081_v21, %v1083_v23  ;;  %v1085_v30 = vsel %vm588_vm3, %v1083_v23, %v1081_v21 }
 0x65f   : > { %v1094_v35 = vadd.f32 %v1089_v25, %v1085_v30  ;;  %v1095_v62 = vadd.f32 %v1093_v26, %v1084_v29  ;;  %v1255_v30 = vld [vmem:[#allocation7 + $0x8] sm:$0xff] }
 0x661   : > { %v1097_v31 = vpop.permute.xlu0 %1096  ;;  %v1099_v32 = vpop.permute.xlu1 %1098 }
 0x662   : > { %v1100_v33 = vsel %vm617_vm4, %v1097_v31, %v1099_v32  ;;  %v1101_v34 = vsel %vm617_vm4, %v1099_v32, %v1097_v31 }
 0x663   : > { %v1110_v36 = vadd.f32 %v1105_v27, %v1100_v33  ;;  %v1111_v37 = vadd.f32 %v1109_v28, %v1101_v34 }
 0x665   : > { %v1112_v39 = vmax.f32 %v1094_v35, %v1110_v36  ;;  %v1113_v10 = vmax.f32 %v1095_v62, %v1111_v37 }
 0x667   : > { %v1114_v40 = vmax.f32 %v1078_v24, %v1112_v39  ;;  %v1115_v42 = vmax.f32 %v1079_v15, %v1113_v10 }
 0x669   : > { %1133 = vmatprep.subr.mxu1 %v1115_v42 }
 0x66a   : > { %1134 = vmatpush1.msra.mxu1 %v1114_v40 }
 0x66b   : > { %2011 = vmatmul.mubr.msk.f32.vlgmr.msra.gmra.mrb[8].mxu1 %vm1126_vm12, %v1116_v14 }
 0x66c   : > { %1203 = vmatprep.mubr.f32.mxu1 %v2431_v0 }
 0x66f   : > { %2012 = vmatmul.mubr.msk.f32.gmra.mrb[10].mxu1 %vm1126_vm12, %v1117_v16 }
 0x670   : > { %2057 = vmatprep.mubr.msk.f32.mxu1 %vm428_vm0, %v1254_v20 }
 0x672   : > { %v1124_v43 = vpop.permute.xlu1 %1123  ;;  %v1120_v44 = vpop.permute.xlu0 %1119 }
 0x677   : > { %v1216_v49 = vpop.permute.xlu1 %1215  ;;  %v1220_v55 = vpop.permute.xlu0 %1219 }
 0x73e   : > { %v1199_v46 = vpop.f32.mrb[8].mxu1 }
 0x73f   : > { %v1200_v51 = vadd.f32 %v1199_v46, %v1120_v44  ;;  %v1201_v52 = vpop.f32.mrb[9].mxu1 }
 0x740   : > { %v1202_v53 = vadd.f32 %v1201_v52, %v1120_v44 }
 0x741   : > { %vm1210_vm13 = vcmp.ge.f32.partialorder %v1200_v51, 0.0  ;;  %v1222_v54 = vmul.f32 %v1216_v49, %v1200_v51 }
 0x742   : > { %vm1211_vm14 = vcmp.ge.f32.partialorder %v1202_v53, 0.0  ;;  %v1223_v2 = vmul.f32 %v1216_v49, %v1202_v53  ;;  %v1205_v3 = vpop.f32.mrb[10].mxu1 }
 0x743   : > { %v1206_v47 = vadd.f32 %v1205_v3, %v1124_v43  ;;  %v1207_v48 = vpop.f32.mrb[11].mxu1  ;;  %v3013_v45 = vsel %vm1210_vm13, %v1200_v51, %v1222_v54 }
 0x744   : > { %v1208_v50 = vadd.f32 %v1207_v48, %v1124_v43  ;;  %v3015_v56 = vsel %vm1211_vm14, %v1202_v53, %v1223_v2  ;;  %v1234_v57 = vmul.f32 %v3013_v45, %v2907_v38  ;;  %v1230_v58 = vmul.f32 %v3013_v45, %v3013_v45 }
 0x745   : > { %vm1212_vm15 = vcmp.ge.f32.partialorder %v1206_v47, 0.0  ;;  %v1224_v59 = vmul.f32 %v1220_v55, %v1206_v47  ;;  %v1235_v60 = vmul.f32 %v3015_v56, %v2910_v41  ;;  %v1231_v61 = vmul.f32 %v3015_v56, %v3015_v56 }
 0x746   : > { %vm1213_vm1 = vcmp.ge.f32.partialorder %v1208_v50, 0.0  ;;  %v1225_v63 = vmul.f32 %v1220_v55, %v1208_v50  ;;  %v1238_v7 = vmul.f32 %v1230_v58, %v2907_v38 }
 0x747   : > { %v1242_v4 = vadd.f32 %v1235_v60, %v1234_v57  ;;  %v3025_v6 = vsel %vm1212_vm15, %v1206_v47, %v1224_v59  ;;  %v1239_v8 = vmul.f32 %v1231_v61, %v2910_v41 }
 0x748   : > { %v3029_v9 = vsel %vm1213_vm1, %v1208_v50, %v1225_v63  ;;  %v1236_v11 = vmul.f32 %v3025_v6, %v2907_v38  ;;  %v1232_v12 = vmul.f32 %v3025_v6, %v3025_v6 }
 0x749   : > { %1243 = vadd.xlane.f32.xlu1 %v1242_v4  ;;  %v1237_v18 = vmul.f32 %v3029_v9, %v2910_v41  ;;  %v1233_v19 = vmul.f32 %v3029_v9, %v3029_v9  ;;  %v1248_v13 = vadd.f32 %v1239_v8, %v1238_v7 }
 0x74a   : > { %v1240_v24 = vmul.f32 %v1232_v12, %v2907_v38 }
 0x74b   : > { %v1245_v22 = vadd.f32 %v1237_v18, %v1236_v11  ;;  %v1241_v15 = vmul.f32 %v1233_v19, %v2910_v41 }
 0x74d   : > { %1246 = vadd.xlane.f32.xlu0 %v1245_v22  ;;  %1249 = vadd.xlane.f32.xlu1 %v1248_v13  ;;  %v1251_v17 = vadd.f32 %v1241_v15, %v1240_v24 }
 0x751   : > { %1252 = vadd.xlane.f32.xlu0 %v1251_v17 }
 0x7d6   : > { %v1244_v21 = vpop.xlane.xlu1 %1243 }
 0x7da   : > { %v1247_v23 = vpop.xlane.xlu0 %1246  ;;  %v1250_v25 = vpop.xlane.xlu1 %1249 }
 0x7db   : > { %v1256_v27 = vsel %vm927_vm11, %v1244_v21, %v1250_v25  ;;  %v3081_v21 = vld [vmem:[%s2689_s13 + $0x8] sm:$0xff] }
 0x7de   : > { %v1253_v26 = vpop.xlane.xlu0 %1252 }
 0x7df   : > { %v1257_v28 = vsel %vm927_vm11, %v1247_v23, %v1253_v26 }
 0x7e0   : > { %v2091_v29 = vpack.c.bf16 %v1257_v28, %v1256_v27 }
 0x7e2   : > { %2092 = vmatprep.subr.bf16.mxu1 %v2091_v29 }
 0x7e3   : > { %2094 = vmatpush3.bf16.msra.mxu1 %v2091_v29 }
 0x7e6   : > { %2058 = vmatmul.mubr.msk.f32.vlgmr.msra.gmra.mrb[12].mxu1 %vm428_vm0, %v1255_v30  ;;  %v3094_v30 = vld [vmem:[%s2689_s13 + $0x10] sm:$0xff]  ;;  %vm2444_vm0 = vmmov 0  }
 0x7e7   : > { %2068 = vmatprep.mubr.msk.f32.mxu1 %vm2444_vm0, %v2431_v0 }
 0x8b9   : > { %v2059_v31 = vpop.f32.mrb[12].mxu1 }
 0x8ba   : > { %v1340_v32 = vmul.f32 0.0009765625, %v2059_v31  ;;  %v1330_v33 = vpop.f32.mrb[13].mxu1  ;;  %v1510_v31 = vmul.f32 %v3094_v30, %v2907_v38 }
 0x8bb   : > { %v1339_v34 = vmul.f32 0.0009765625, %v1330_v33 }
 0x8bc   : > { %v1342_v35 = vmul.f32 %v1340_v32, %v1340_v32 }
 0x8bd   : > { %v1341_v62 = vmul.f32 %v1339_v34, %v1339_v34 }
 0x8be   : > { %1347 = vrot.lane.b32.xlu0 %v1342_v35, %s2432_s16 }
 0x8bf   : > { %1345 = vrot.lane.b32.xlu1 %v1341_v62, %s2432_s16  ;;  %s2442_s16 = smov 5   ;;  %v2443_v62 = vmov 0.0|0.0  }
 0x8c0   : > { %2095 = vmatprep.subr.bf16.mxu1 %v2443_v62 }
 0x930   : > { %v1348_v36 = vpop.permute.xlu0 %1347 }
 0x931   : > { %v1352_v37 = vsub.f32 %v1340_v32, %v1348_v36  ;;  %v1346_v39 = vpop.permute.xlu1 %1345 }
 0x932   : > { %v1351_v10 = vsub.f32 %v1339_v34, %v1346_v39 }
 0x933   : > { %v1354_v40 = vmax.f32 %v1352_v37, 0.0 }
 0x934   : > { %v1353_v42 = vmax.f32 %v1351_v10, 0.0 }
 0x935   : > { %v1356_v16 = vadd.f32 1e-05, %v1354_v40 }
 0x936   : > { %v1355_v14 = vadd.f32 1e-05, %v1353_v42 }
 0x938   : > { %2213 = vrsqrt.f32 %v1355_v14 }
 0x939   : > { %2215 = vrsqrt.f32 %v1356_v16 }
 0x942   : > { %v2214_v43 = vpop.eup %2213 }
 0x943   : > { %1361 = vrot.lane.b32.xlu1 %v2214_v43, %s2440_s12  ;;  %v2216_v44 = vpop.eup %2215  ;;  %v1528_v43 = vld [vmem:[#allocation8] sm:$0xff] }
 0x947   : > { %1363 = vrot.lane.b32.xlu1 %v2216_v44, %s2440_s12  ;;  %v1603_v44 = vld [vmem:[%s3200_s7] sm:$0xff] }
 0x9b5   : > { %v1362_v46 = vpop.permute.xlu1 %1361 }
 0x9b6   : > { %v1367_v49 = vmul.f32 %v1362_v46, %v2842_v1 }
 0x9b8   : > { %1371 = vrot.lane.b32.xlu0 %v1367_v49, %s2441_s18 }
 0x9b9   : > { %v1364_v51 = vpop.permute.xlu1 %1363 }
 0x9ba   : > { %v1368_v52 = vmul.f32 %v1364_v51, %v2849_v5 }
 0x9bc   : > { %1373 = vrot.lane.b32.xlu1 %v1368_v52, %s2441_s18  ;;  %v1604_v52 = vld [vmem:[%s3200_s7 + $0x8] sm:$0xff] }
 0xa2a   : > { %v1372_v53 = vpop.permute.xlu0 %1371 }
 0xa2b   : > { %v1377_v54 = vmul.f32 %v1372_v53, %v1339_v34  ;;  %2017 = vmatmul.mubr.msk.f32.vlgmr.msra.gmra.mrb[8].mxu0 %vm927_vm11, %v1372_v53  ;;  %v1605_v53 = vld [vmem:[%s3200_s7 + $0x10] sm:$0xff] }
 0xa2c   : > { %1477 = vmatprep.mubr.f32.mxu0 %v2431_v0  ;;  %2027 = vmatpush1.msk.msra.mxu0 %vm940_vm10, %v2907_v38 }
 0xa2d   : > { %1381 = vrot.lane.b32.xlu0 %v1377_v54, %s2442_s16  ;;  %v1606_v54 = vld [vmem:[%s3200_s7 + $0x18] sm:$0xff] }
 0xa2e   : > { %v1374_v2 = vpop.permute.xlu1 %1373 }
 0xa2f   : > { %v1378_v3 = vmul.f32 %v1374_v2, %v1340_v32  ;;  %2018 = vmatmul.mubr.msk.f32.gmra.mrb[10].mxu0 %vm927_vm11, %v1374_v2  ;;  %v3099_v32 = vld [vmem:[%s2689_s13 + $0x18] sm:$0xff]  ;;  %v2445_v2 = vmov 6  }
 0xa30   : > { %1483 = vmatprep.mubr.f32.mxu0 %v2431_v0  ;;  %v1511_v33 = vmul.f32 %v3099_v32, %v2910_v41  ;;  %2207 = vset.pattern.permute.xlu1 %v2445_v2 }
 0xa31   : > { %1383 = vrot.lane.b32.xlu1 %v1378_v3, %s2442_s16  ;;  %2208 = vset.pattern.permute.xlu0 %v2445_v2  ;;  %s3147_s16 = scalar_lea.hbm %s3203_s10, %s2038_s27 }
 0xa32   : > { %v1521_v35 = vadd.f32 %v1511_v33, %v1510_v31 }
 0xa9f   : > { %v1382_v55 = vpop.permute.xlu0 %1381 }
 0xaa0   : > { %v1387_v47 = vsub.f32 %v2842_v1, %v1382_v55 }
 0xaa2   : > { %1391 = vrot.lane.b32.xlu0 %v1387_v47, %s2433_s19 }
 0xaa3   : > { %v1384_v48 = vpop.permute.xlu1 %1383 }
 0xaa4   : > { %v1388_v50 = vsub.f32 %v2849_v5, %v1384_v48 }
 0xaa6   : > { %1393 = vrot.lane.b32.xlu1 %v1388_v50, %s2433_s19  ;;  %s2446_s19 = smov [#allocation10]  }
 0xaa7   : > { %s2353_s20 = sshll.u32 %s2446_s19, 4  ;;  %s2354_s20 = int_to_ptr.vmem [resolvable:$false] %s2353_s20 }
 0xaa8   : > { %s2355_s15 = scalar_lea.vmem %s2354_s20, 1024  ;;  %p2356_p6 = scmp.lt.s32.totalorder %s3142_s22, %s2354_s20 }
 0xafe   : > { %v1473_v57 = vpop.f32.mrb[8].mxu0 }
 0xaff   : > { %v1475_v58 = vpop.f32.mrb[9].mxu0  ;;  %v1496_v8 = vmul.f32 %v1473_v57, %v3013_v45 }
 0xb00   : > { %v1497_v11 = vmul.f32 %v1475_v58, %v3015_v56  ;;  %v3076_v56 = vld [vmem:[%s2689_s13] sm:$0xff]  ;;  %s2349_s13 = scalar_lea.vmem %s3142_s22, 512 }
 0xb01   : > { %v1508_v20 = vmul.f32 %v3076_v56, %v2907_v38  ;;  %p2350_p8 = scmp.ne.s32.totalorder %s3142_s22, %s2349_s13  ;;  %p2357_p9 = scmp.lt.s32.totalorder %s2355_s15, %s2349_s13 }
 0xb02   : > { %v1479_v59 = vpop.f32.mrb[10].mxu0 }
 0xb03   : > { %v1481_v60 = vpop.f32.mrb[11].mxu0  ;;  %v1498_v13 = vmul.f32 %v1479_v59, %v3025_v6  ;;  %v1509_v6 = vmul.f32 %v3081_v21, %v2910_v41  ;;  %p2351_p13 = pnand %p2350_p8, %p3231_p11  ;;  %p2358_p5 = por %p2357_p9, %p2356_p6 }
 0xb04   : > { %v1499_v15 = vmul.f32 %v1481_v60, %v3029_v9 }
 0xb05   : > { %v1518_v29 = vadd.f32 %v1509_v6, %v1508_v20  ;;  %p2352_p1 = pneg %p2351_p13 }
 0xb07   : > { %p2359_p10 = pnand %p2358_p5, %p2352_p1 }
 0xb14   : > { %v1392_v61 = vpop.permute.xlu0 %1391 }
 0xb15   : > { %1395 = vrot.lane.b32.xlu0 %v1392_v61, %s2441_s18 }
 0xb18   : > { %v1394_v63 = vpop.permute.xlu1 %1393 }
 0xb19   : > { %1397 = vrot.lane.b32.xlu1 %v1394_v63, %s2441_s18 }
 0xb87   : > { %v1396_v4 = vpop.permute.xlu0 %1395 }
 0xb88   : > { %2019 = vmatmul.mubr.msk.f32.gmra.mrb[12].mxu0 %vm927_vm11, %v1396_v4 }
 0xb89   : > { %1489 = vmatprep.mubr.f32.mxu0 %v2431_v0 }
 0xb8b   : > { %v1398_v7 = vpop.permute.xlu1 %1397 }
 0xb8c   : > { %2020 = vmatmul.mubr.msk.f32.gmra.mrb[14].mxu0 %vm927_vm11, %v1398_v7 }
 0xb8d   : > { %1800 = vmatprep.mubr.f32.mxu0 %v2431_v0 }
 0xc5b   : > { %v1485_v12 = vpop.f32.mrb[12].mxu0 }
 0xc5c   : > { %v3065_v18 = vadd.f32 %v1496_v8, %v1485_v12  ;;  %v1487_v19 = vpop.f32.mrb[13].mxu0 }
 0xc5d   : > { %v3067_v22 = vadd.f32 %v1497_v11, %v1487_v19 }
 0xc5e   : > { %v1504_v24 = vmul.f32 %v3065_v18, %v2907_v38 }
 0xc5f   : > { %v1505_v17 = vmul.f32 %v3067_v22, %v2910_v41  ;;  %v1491_v45 = vpop.f32.mrb[14].mxu0 }
 0xc60   : > { %v3085_v23 = vadd.f32 %v1498_v13, %v1491_v45  ;;  %v1493_v25 = vpop.f32.mrb[15].mxu0 }
 0xc61   : > { %v3087_v26 = vadd.f32 %v1499_v15, %v1493_v25  ;;  %v1512_v9 = vadd.f32 %v1505_v17, %v1504_v24 }
 0xc62   : > { %v1506_v27 = vmul.f32 %v3085_v23, %v2907_v38 }
 0xc63   : > { %v1507_v28 = vmul.f32 %v3087_v26, %v2910_v41  ;;  %1513 = vadd.xlane.f32.xlu0 %v1512_v9 }
 0xc65   : > { %v1515_v34 = vadd.f32 %v1507_v28, %v1506_v27 }
 0xc67   : > { %1519 = vadd.xlane.f32.xlu0 %v1518_v29  ;;  %1516 = vadd.xlane.f32.xlu1 %v1515_v34 }
 0xc6b   : > { %1522 = vadd.xlane.f32.xlu0 %v1521_v35 }
 0xc78   : > { %1850 = vperm.xlu1 %2207, %v2842_v1  }
 0xc81   : > { %1854 = vperm.xlu0 %2208, %v2849_v5  }
 0xcf0   : > { %v1514_v36 = vpop.xlane.xlu0 %1513 }
 0xcf1   : > { %v1524_v10 = vmul.f32 0.00390625, %v1514_v36 }
 0xcf4   : > { %v1520_v37 = vpop.xlane.xlu0 %1519  ;;  %v1517_v39 = vpop.xlane.xlu1 %1516 }
 0xcf5   : > { %v1525_v38 = vmul.f32 0.00390625, %v1517_v39  ;;  %v1526_v14 = vmul.f32 0.00390625, %v1520_v37 }
 0xcf7   : > { %v2096_v40 = vpack.c.bf16 %v1525_v38, %v1524_v10 }
 0xcf8   : > { %v1523_v42 = vpop.xlane.xlu0 %1522  ;;  %v1851_v38 = vpop.permute.xlu1 %1850 }
 0xcf9   : > { %v1527_v16 = vmul.f32 0.00390625, %v1523_v42  ;;  %2097 = vmatpush3.bf16.msra.mxu1 %v2096_v40 }
 0xcfa   : > { %2098 = vmatprep.subr.bf16.mxu1 %v2443_v62 }
 0xcfb   : > { %v2099_v41 = vpack.c.bf16 %v1527_v16, %v1526_v14 }
 0xcfd   : > { %2100 = vmatpush3.bf16.msra.mxu1 %v2099_v41 }
 0xd00   : > { %2069 = vmatmul.mubr.msk.f32.vlgmr.msra.gmra.mrb[14].mxu1 %vm770_vm5, %v1528_v43 }
 0xd01   : > { %2073 = vmatprep.mubr.msk.f32.mxu1 %vm1126_vm12, %v1603_v44 }
 0xdd3   : > { %v1598_v46 = vpop.f32.mrb[14].mxu1 }
 0xdd4   : > { %v1602_v49 = vmax.f32 %v1598_v46, 0.0  ;;  %v2070_v51 = vpop.f32.mrb[15].mxu1  ;;  %v1855_v46 = vpop.permute.xlu0 %1854 }
 0xdd6   : > { %2071 = vmatprep.subr.mxu1 %v1602_v49 }
 0xdd7   : > { %2072 = vmatpush3.msra.mxu1 %v1602_v49 }
 0xdd8   : > { %2074 = vmatmul.mubr.msk.f32.vlgmr.msra.gmra.mrb[16].mxu1 %vm1126_vm12, %v1604_v52 }
 0xdd9   : > { %2076 = vmatprep.mubr.msk.f32.mxu1 %vm1126_vm12, %v1605_v53 }
 0xddc   : > { %2077 = vmatmul.mubr.msk.f32.gmra.mrb[18].mxu1 %vm1126_vm12, %v1606_v54 }
 0xeab   : > { %v2075_v3 = vpop.f32.mrb[16].mxu1 }
 0xeac   : > { %v1705_v55 = vsub.f32 0.0, %v2075_v3  ;;  %v1685_v47 = vpop.f32.mrb[17].mxu1 }
 0xead   : > { %v1704_v48 = vsub.f32 0.0, %v1685_v47 }
 0xeae   : > { %v1710_v50 = vmul.f32 1.442695, %v1705_v55 }
 0xeaf   : > { %v1708_v57 = vmul.f32 1.442695, %v1704_v48  ;;  %v2078_v58 = vpop.f32.mrb[18].mxu1 }
 0xeb0   : > { %2217 = vpow2.f32 %v1710_v50  ;;  %v1695_v59 = vpop.f32.mrb[19].mxu1  ;;  %v1707_v60 = vsub.f32 0.0, %v2078_v58 }
 0xeb1   : > { %2219 = vpow2.f32 %v1708_v57  ;;  %v1706_v61 = vsub.f32 0.0, %v1695_v59 }
 0xeb2   : > { %v1714_v4 = vmul.f32 1.442695, %v1707_v60 }
 0xeb3   : > { %v1712_v63 = vmul.f32 1.442695, %v1706_v61 }
 0xeb5   : > { %2221 = vpow2.f32 %v1712_v63 }
 0xeb6   : > { %2223 = vpow2.f32 %v1714_v4 }
 0xeba   : > { %v2218_v7 = vpop.eup %2217 }
 0xebb   : > { %v2220_v1 = vpop.eup %2219  ;;  %v1717_v5 = vadd.f32 1.0, %v2218_v7 }
 0xebc   : > { %v1716_v8 = vadd.f32 1.0, %v2220_v1 }
 0xebe   : > { %2225 = vrcp.f32 %v1716_v8 }
 0xebf   : > { %v2222_v11 = vpop.eup %2221  ;;  %2227 = vrcp.f32 %v1717_v5 }
 0xec0   : > { %v1718_v12 = vadd.f32 1.0, %v2222_v11  ;;  %v2224_v19 = vpop.eup %2223 }
 0xec1   : > { %v1719_v13 = vadd.f32 1.0, %v2224_v19 }
 0xec2   : > { %2229 = vrcp.f32 %v1718_v12 }
 0xec3   : > { %2231 = vrcp.f32 %v1719_v13 }
 0xec8   : > { %v2226_v24 = vpop.eup %2225 }
 0xec9   : > { %2028 = vmatmul.mubr.msk.f32.vlgmr.msra.gmra.mrb[16].mxu0 %vm927_vm11, %v2226_v24  ;;  %v2228_v15 = vpop.eup %2227 }
 0xeca   : > { %1806 = vmatprep.mubr.f32.mxu0 %v2431_v0 }
 0xecc   : > { %v2230_v17 = vpop.eup %2229 }
 0xecd   : > { %2029 = vmatmul.mubr.msk.f32.gmra.mrb[18].mxu0 %vm927_vm11, %v2228_v15  ;;  %v2232_v45 = vpop.eup %2231 }
 0xece   : > { %1812 = vmatprep.mubr.f32.mxu0 %v2431_v0 }
 0xed1   : > { %2030 = vmatmul.mubr.msk.f32.gmra.mrb[20].mxu0 %vm927_vm11, %v2230_v17 }
 0xed2   : > { %1818 = vmatprep.mubr.f32.mxu0 %v2431_v0 }
 0xed5   : > { %2031 = vmatmul.mubr.msk.f32.gmra.mrb[22].mxu0 %vm927_vm11, %v2232_v45 }
 0xf9c   : > { %v1802_v20 = vpop.f32.mrb[16].mxu0 }
 0xf9d   : > { %v1804_v6 = vpop.f32.mrb[17].mxu0  ;;  %v1833_v27 = vadd.f32 1.0, %v1802_v20 }
 0xf9e   : > { %v1834_v28 = vadd.f32 1.0, %v1804_v6 }
 0xf9f   : > { %v1837_v35 = vmul.f32 %v1833_v27, %v3065_v18 }
 0xfa0   : > { %v1808_v25 = vpop.f32.mrb[18].mxu0  ;;  %v1838_v36 = vmul.f32 %v1834_v28, %v3067_v22 }
 0xfa1   : > { %v1810_v9 = vpop.f32.mrb[19].mxu0  ;;  %v1835_v62 = vadd.f32 1.0, %v1808_v25 }
 0xfa2   : > { %v1836_v37 = vadd.f32 1.0, %v1810_v9 }
 0xfa3   : > { %v1839_v43 = vmul.f32 %v1835_v62, %v3085_v23 }
 0xfa4   : > { %v1814_v29 = vpop.f32.mrb[20].mxu0  ;;  %v1840_v22 = vmul.f32 %v1836_v37, %v3087_v26 }
 0xfa5   : > { %v1825_v31 = vadd.f32 1.0, %v1814_v29  ;;  %v1816_v33 = vpop.f32.mrb[21].mxu0 }
 0xfa6   : > { %v1826_v34 = vadd.f32 1.0, %v1816_v33 }
 0xfa7   : > { %v1829_v0 = vmul.f32 %v3076_v56, %v1825_v31 }
 0xfa8   : > { %v1830_v39 = vmul.f32 %v3081_v21, %v1826_v34  ;;  %v1820_v10 = vpop.f32.mrb[22].mxu0 }
 0xfa9   : > { %v1841_v40 = vadd.f32 %v1837_v35, %v1829_v0  ;;  %v1827_v42 = vadd.f32 1.0, %v1820_v10  ;;  %v1822_v14 = vpop.f32.mrb[23].mxu0 }
 0xfaa   : > { %v1842_v16 = vadd.f32 %v1838_v36, %v1830_v39  ;;  %v1828_v41 = vadd.f32 1.0, %v1822_v14 }
 0xfab   : > { %v1831_v18 = vmul.f32 %v3094_v30, %v1827_v42  ;;  %vm1845_vm2 = vcmp.ge.f32.partialorder %v1841_v40, 0.0  ;;  %v1857_v56 = vmul.f32 %v1851_v38, %v1841_v40 }
 0xfac   : > { %v1832_v21 = vmul.f32 %v3099_v32, %v1828_v41  ;;  %vm1846_vm3 = vcmp.ge.f32.partialorder %v1842_v16, 0.0  ;;  %v1858_v44 = vmul.f32 %v1851_v38, %v1842_v16 }
 0xfad   : > { %v1843_v49 = vadd.f32 %v1839_v43, %v1831_v18  ;;  %v1861_v51 = vsel %vm1845_vm2, %v1841_v40, %v1857_v56 }
 0xfae   : > { %v1844_v52 = vadd.f32 %v1840_v22, %v1832_v21  ;;  %v1862_v53 = vsel %vm1846_vm3, %v1842_v16, %v1858_v44  ;;  %1865 = vst [vmem:[%s409_s29] sm:$0xff] %v1861_v51 }
 0xfaf   : > { %1866 = vst [vmem:[%s409_s29 + $0x8] sm:$0xff] %v1862_v53  ;;  %vm1847_vm4 = vcmp.ge.f32.partialorder %v1843_v49, 0.0  ;;  %v1859_v23 = vmul.f32 %v1855_v46, %v1843_v49 }
 0xfb0   : > { %vm1848_vm5 = vcmp.ge.f32.partialorder %v1844_v52, 0.0  ;;  %v1860_v26 = vmul.f32 %v1855_v46, %v1844_v52 }
 0xfb1   : > { %v1863_v30 = vsel %vm1847_vm4, %v1843_v49, %v1859_v23 }
 0xfb2   : > { %v1864_v32 = vsel %vm1848_vm5, %v1844_v52, %v1860_v26  ;;  %1867 = vst [vmem:[%s409_s29 + $0x10] sm:$0xff] %v1863_v30 }
 0xfb3   : > { %1868 = vst [vmem:[%s409_s29 + $0x18] sm:$0xff] %v1864_v32 }
 0xfb4   : > { %2362 = shalt.err (!%p2359_p10)
}
 0xfb5   : > { %s2363_s25 = scalar_lea.hbm %s3147_s16, 512  ;;  %s2367_s24 = scalar_lea.hbm %s3203_s10, 1024 }
 0xfb6   : > { %p2364_p0 = scmp.ne.s32.totalorder %s3147_s16, %s2363_s25  ;;  %p2368_p4 = scmp.lt.u32.totalorder %s3147_s16, %s3203_s10 }
 0xfb7   : > { %p2369_p12 = scmp.lt.u32.totalorder %s2367_s24, %s2363_s25  ;;  %p2371_p8 = scmp.lt.u32.totalorder %s2363_s25, %s3147_s16 }
 0xfb8   : > { %p2365_p2 = pnand %p2364_p0, %p3231_p11 }
 0xfb9   : > { %p2370_p7 = por %p2369_p12, %p2368_p4 }
 0xfba   : > { %p2366_p3 = pneg %p2365_p2 }
 0xfbb   : > { %p2372_p13 = por %p2371_p8, %p2370_p7 }
 0xfbd   : > { %p2373_p1 = pnand %p2372_p13, %p2366_p3 }
 0xfbf   : > { %2376 = shalt.err (!%p2373_p1)
}
 0xfc0   : > { %s2447_s29 = smov 256  }
 0xfc1   : > { %2117 = dma.vmem_to_hbm [thread:$0]  (%p3231_p11), %s3142_s22, 512, %s3147_s16, %s3151_s17, %s2447_s29, %s2447_s29, %s2434_s11  }
 0xfc2 PF: > { %s3232_s27 = sld [smem:[#allocation17_spill]]  ;;  %s3233_s12 = sld [smem:[#allocation15_spill]] }
 0xfc3   : > { %s3234_s18 = sld [smem:[#allocation20_spill]] }
 0xfc8   : > { %p2144_p6 = scmp.ge.s32.totalorder %s3232_s27, 2  ;;  %s1898_s13 = sand.u32 1, %s3233_s12  }
 0xfc9   : > { %p3235_p9 = scmp.ne.s32.totalorder %s3234_s18, 0  ;;  %s1899_s19 = scalar_lea.sflag [#allocation4], %s1898_s13 }
 0xfcb   : > { %p2133_p5 = pnand %p2144_p6, %p3235_p9 }
 0xfcd   : > { %2406 = dma.done.wait (!%p2133_p5), %s1899_s19, 512  }
 0xfce   : > { %2408 = vsyncadd (!%p2133_p5), %s1899_s19, 4294966784  ;;  %s3236_s16 = sld [smem:[#allocation18_spill]]  ;;  %s3237_s20 = sld [smem:[#allocation16_spill]] }
 0xfcf   : > { %s3238_s15 = sld [smem:[#allocation19_spill]]  ;;  %s3239_s13 = smov %s2415_s14 }
 0xfd4   : > { %p23_p10 = scmp.ge.s32.totalorder %s3236_s16, 4   ;;  %s3240_s14 = smov %s3237_s20 }
 0xfd6   :  { %25 = sbr.rel (!%p23_p10) target bundleno = 6 (0x6), region = 112 }
 0xfdd   :  { %1904 = vsyncpa [#allocation3], 1 }
 0xfde   :  { %1906 = vsyncpa [#allocation3 + $0x1], 1 }
 0xfdf   :  { %1907 = vsyncpa [#allocation6], 1 }
 0xfe0   :  { %1908 = vsyncpa [#allocation9], 1 }
 0xfe1   :  { %1909 = vsyncpa [#allocation4], 1 }
 0xfe2   :  { %1911 = vsyncpa [#allocation4 + $0x1], 1 }

</bundles_post_ra>
